<compile_context>
chip_gen: v5e
topology: v5e:2x2
jax: 0.10.0
libtpu: 0.0.40
codegen_flags: <defaults>
</compile_context>

<pallas_src>
import math
import numpy as np
import jax
import jax.numpy as jnp
from jax.experimental import pallas as pl
from jax.experimental.pallas import tpu as pltpu

INPUT_DIM = 16
HIDDEN_DIM = 64
NUM_HEADS = 4


# ----------------------------------------------------------------------------
# Host-side preprocessing (before dispatch, no mid-forward host sync):
# reproduce torch.unique + masked mean + pad_sequence as a dense
# row-normalized pooling matrix in TIME-MAJOR layout:
#   P2[l*B + b, t*B + b] = 1/count_b_l  if measure_pos[b, t] == l-th unique id
# TODO(synk): the unique/pad_sequence grouping has value-dependent output
#             shapes and cannot be expressed inside a static Pallas kernel;
#             only its structure is built here on host.
# ----------------------------------------------------------------------------
def build_pool_matrix_tm(pos):
    pos = np.asarray(pos)
    B, T = pos.shape
    rows_per_batch = []
    for i in range(B):
        feats = []
        for u in np.unique(pos[i]):
            if u < 0:
                continue
            mask = (pos[i] == u)
            if mask.sum() > 0:
                feats.append(mask.astype(np.float32) / float(mask.sum()))
        if not feats:
            feats = [np.zeros(T, np.float32)]  # == torch.zeros(1, hidden) fallback
        rows_per_batch.append(np.stack(feats))
    Lm = max(r.shape[0] for r in rows_per_batch)
    P2 = np.zeros((Lm * B, T * B), np.float32)
    for b, r in enumerate(rows_per_batch):
        for l in range(r.shape[0]):
            for t in range(T):
                P2[l * B + b, t * B + b] = r[l, t]
    return jnp.asarray(P2), Lm


def build_block_mask(B, N):
    # additive mask for time-major rows: 0 within the same batch, -1e30 across
    ri = np.arange(N)[:, None] % B
    ci = np.arange(N)[None, :] % B
    return jnp.asarray(np.where(ri == ci, 0.0, -1e30).astype(np.float32))


# ----------------------------------------------------------------------------
# Fused forward kernel
# ----------------------------------------------------------------------------
def make_fused_kernel(B, T, Lm, D, E, num_heads):
    H = E // 2                       # per-direction LSTM hidden size
    H4 = 4 * H
    Hd = E // num_heads              # attention head dim
    f32 = jnp.float32

    # ---- bidirectional LSTM, both directions merged into one recurrence ----
    # x_tm: [Tt*B, Din] time-major (row = t*B + b)
    # wih_cat: [Din, 8H] = [wih_f.T | wih_b.T]
    # bias_cat: [1, 8H]  = [b_ih_f + b_hh_f | b_ih_b + b_hh_b]
    # whh_blk: [2H, 4H]  = rows 0..H -> whh_f.T, rows H..2H -> whh_b.T
    def bilstm(x_tm, Tt, wih_cat, bias_cat, whh_blk):
        # hoisted input projection + bias for BOTH directions: one matmul
        xp = jnp.dot(x_tm, wih_cat, preferred_element_type=f32) + bias_cat  # [T*B, 8H]

        # direction row masks: rows [0, B) = forward, [B, 2B) = backward
        ridx = jax.lax.broadcasted_iota(jnp.int32, (2 * B, 1), 0)
        mf = (ridx < B).astype(f32)
        mb = 1.0 - mf

        c = jnp.zeros((2 * B, H), f32)
        hpad = jnp.zeros((2 * B, 2 * H), f32)
        fwd = [None] * Tt
        bwd = [None] * Tt
        for t in range(Tt):          # Tt is small & static -> unrolled
            # contiguous time-major slices of the hoisted projection:
            # forward rows use time t, backward rows use time Tt-1-t
            pre_f = xp[t * B:(t + 1) * B, 0:H4]
            pre_b = xp[(Tt - 1 - t) * B:(Tt - t) * B, H4:2 * H4]
            pre = jnp.concatenate([pre_f, pre_b], axis=0)            # [2B, 4H]
            if t == 0:
                gates = pre          # h0 == 0 -> recurrent term vanishes
            else:
                gates = jnp.dot(hpad, whh_blk,
                                preferred_element_type=f32) + pre    # [2B, 4H]
            i_g = jax.nn.sigmoid(gates[:, 0:H])
            f_g = jax.nn.sigmoid(gates[:, H:2 * H])
            g_g = jnp.tanh(gates[:, 2 * H:3 * H])
            o_g = jax.nn.sigmoid(gates[:, 3 * H:4 * H])
            c = f_g * c + i_g * g_g
            h = o_g * jnp.tanh(c)
            # block layout so one matmul applies whh_f to fwd rows, whh_b to bwd rows
            hpad = jnp.concatenate([h * mf, h * mb], axis=1)          # [2B, 2H]
            fwd[t] = h[:B, :]
            bwd[Tt - 1 - t] = h[B:, :]

        # dense time-major assembly of the [Tt*B, 2H] output
        return jnp.concatenate(
            [jnp.concatenate([fwd[t], bwd[t]], axis=1) for t in range(Tt)],
            axis=0)

    # ---- multi-head self attention (nn.MultiheadAttention semantics) ------
    # x_tm: [N, E] time-major; mask: [N, N] additive block-diagonal mask.
    # wqkv/bqkv already carry the 1/sqrt(Hd) scale on their q columns.
    def mha(x_tm, mask, wqkv, bqkv, wo, bo):
        qkv = jnp.dot(x_tm, wqkv, preferred_element_type=f32) + bqkv  # [N, 3E]
        q = qkv[:, 0:E]
        k = qkv[:, E:2 * E]
        v = qkv[:, 2 * E:3 * E]
        heads = []
        for hh in range(num_heads):
            cs = slice(hh * Hd, (hh + 1) * Hd)
            s = jax.lax.dot_general(q[:, cs], k[:, cs], (((1,), (1,)), ((), ())),
                                    preferred_element_type=f32) + mask  # [N, N]
            s = s - jnp.max(s, axis=-1, keepdims=True)
            p = jnp.exp(s)                      # masked entries underflow to 0
            p = p / jnp.sum(p, axis=-1, keepdims=True)
            heads.append(jnp.dot(p, v[:, cs], preferred_element_type=f32))
        ctx = jnp.concatenate(heads, axis=1)                          # [N, E]
        return jnp.dot(ctx, wo, preferred_element_type=f32) + bo      # [N, E]

    def kernel(x_ref, pm_ref, nmask_ref, mmask_ref,
               nl_wih, nl_b, nl_whh, na_wqkv, na_bqkv, na_wo, na_bo,
               ml_wih, ml_b, ml_whh, ma_wqkv, ma_bqkv, ma_wo, ma_bo,
               fcw_ref, fcb_ref, out_ref):
        # ---- note level ----
        note = bilstm(x_ref[...], T, nl_wih[...], nl_b[...], nl_whh[...])
        note = mha(note, nmask_ref[...],
                   na_wqkv[...], na_bqkv[...], na_wo[...], na_bo[...])

        # ---- measure level: segment-mean pooling as one matmul ----
        pooled = jnp.dot(pm_ref[...], note,
                         preferred_element_type=f32)                 # [Lm*B, E]
        meas = bilstm(pooled, Lm, ml_wih[...], ml_b[...], ml_whh[...])
        meas = mha(meas, mmask_ref[...],
                   ma_wqkv[...], ma_bqkv[...], ma_wo[...], ma_bo[...])

        # ---- final Linear on the last (padded) measure timestep ----
        last = meas[(Lm - 1) * B:Lm * B, :]                           # [B, E]
        out_ref[...] = (jnp.dot(last, fcw_ref[...],
                                preferred_element_type=f32) + fcb_ref[...])

    return kernel


# ----------------------------------------------------------------------------
# Weight packing (tiny one-time transposes/concats, done under jit)
# ----------------------------------------------------------------------------
def _pack_lstm(p):
    wih_cat = jnp.concatenate([p["wih_f"].T, p["wih_b"].T], axis=1)     # [D, 8H]
    b_f = (p["bih_f"] + p["bhh_f"]).reshape(1, -1)
    b_b = (p["bih_b"] + p["bhh_b"]).reshape(1, -1)
    bias_cat = jnp.concatenate([b_f, b_b], axis=1)                      # [1, 8H]
    whh_blk = jnp.concatenate([p["whh_f"].T, p["whh_b"].T], axis=0)     # [2H, 4H]
    return wih_cat, bias_cat, whh_blk


def _pack_mha(p, E, num_heads):
    # fold the 1/sqrt(head_dim) scale into the q projection columns
    scale = 1.0 / math.sqrt(E // num_heads)
    col_scale = jnp.concatenate(
        [jnp.full((E,), scale, jnp.float32),
         jnp.ones((2 * E,), jnp.float32)]).reshape(1, 3 * E)
    wqkv = p["in_proj_w"].T * col_scale                                 # [E, 3E]
    bqkv = p["in_proj_b"].reshape(1, -1) * col_scale                    # [1, 3E]
    return wqkv, bqkv, p["out_proj_w"].T, p["out_proj_b"].reshape(1, -1)


@jax.jit
def fused_forward(params, x, pool_tm, nmask, mmask):
    B, T, D = x.shape
    E = HIDDEN_DIM
    Lm = pool_tm.shape[0] // B
    # time-major input layout (row = t*B + b), built by XLA before the kernel
    x_tm = jnp.swapaxes(x, 0, 1).reshape(T * B, D)
    packed = (_pack_lstm(params["note_lstm"])
              + _pack_mha(params["note_attn"], E, NUM_HEADS)
              + _pack_lstm(params["measure_lstm"])
              + _pack_mha(params["measure_attn"], E, NUM_HEADS)
              + (params["fc_w"].T, params["fc_b"].reshape(1, 1)))
    kernel = make_fused_kernel(B, T, Lm, D, E, NUM_HEADS)
    n_in = 4 + len(packed)
    return pl.pallas_call(
        kernel,
        out_shape=jax.ShapeDtypeStruct((B, 1), jnp.float32),
        in_specs=[pl.BlockSpec(memory_space=pltpu.MemorySpace.VMEM)] * n_in,
        out_specs=pl.BlockSpec(memory_space=pltpu.MemorySpace.VMEM),
    )(x_tm, pool_tm, nmask, mmask, *packed)


def forward(params, x, note_pos, voice_pos, beat_pos, measure_pos):
    # note_pos is unused by the reference module; the voice/beat branches are
    # computed but never used by the returned output -> dropped here (manual
    # DCE; the returned value is identical to the PyTorch module's output).
    del note_pos, voice_pos, beat_pos
    B, T, _ = x.shape
    pool_tm, Lm = build_pool_matrix_tm(measure_pos)   # host-side, pre-dispatch
    nmask = build_block_mask(B, T * B)
    mmask = build_block_mask(B, Lm * B)
    return fused_forward(params, x, pool_tm, nmask, mmask)


# ----------------------------------------------------------------------------
# Deterministic parameter init (shapes follow nn.LSTM / nn.MHA / nn.Linear)
# ----------------------------------------------------------------------------
def init_params(key):
    H2 = HIDDEN_DIM // 2

    def lstm_params(k, D, H):
        ks = jax.random.split(k, 8)
        s = 1.0 / math.sqrt(H)
        u = lambda kk, shape: jax.random.uniform(kk, shape, jnp.float32, -s, s)
        return dict(
            wih_f=u(ks[0], (4 * H, D)), whh_f=u(ks[1], (4 * H, H)),
            bih_f=u(ks[2], (4 * H,)), bhh_f=u(ks[3], (4 * H,)),
            wih_b=u(ks[4], (4 * H, D)), whh_b=u(ks[5], (4 * H, H)),
            bih_b=u(ks[6], (4 * H,)), bhh_b=u(ks[7], (4 * H,)),
        )

    def mha_params(k, E):
        ks = jax.random.split(k, 2)
        s = 1.0 / math.sqrt(E)
        return dict(
            in_proj_w=jax.random.uniform(ks[0], (3 * E, E), jnp.float32, -s, s),
            in_proj_b=jnp.zeros((3 * E,), jnp.float32),
            out_proj_w=jax.random.uniform(ks[1], (E, E), jnp.float32, -s, s),
            out_proj_b=jnp.zeros((E,), jnp.float32),
        )

    keys = jax.random.split(key, 10)
    params = {
        "note_lstm": lstm_params(keys[0], INPUT_DIM, H2),
        "note_attn": mha_params(keys[1], HIDDEN_DIM),
        "voice_lstm": lstm_params(keys[2], HIDDEN_DIM, H2),   # unused by output
        "voice_attn": mha_params(keys[3], HIDDEN_DIM),        # unused by output
        "beat_lstm": lstm_params(keys[4], HIDDEN_DIM, H2),    # unused by output
        "beat_attn": mha_params(keys[5], HIDDEN_DIM),         # unused by output
        "measure_lstm": lstm_params(keys[6], HIDDEN_DIM, H2),
        "measure_attn": mha_params(keys[7], HIDDEN_DIM),
    }
    s = 1.0 / math.sqrt(HIDDEN_DIM)
    params["fc_w"] = jax.random.uniform(keys[8], (1, HIDDEN_DIM), jnp.float32, -s, s)
    params["fc_b"] = jax.random.uniform(keys[9], (1,), jnp.float32, -s, s)
    return params


if __name__ == "__main__":
    key = jax.random.PRNGKey(0)
    kp, kx, kv, kb, km = jax.random.split(key, 5)

    B, T = 2, 8
    params = init_params(kp)
    x = jax.random.normal(kx, (B, T, INPUT_DIM), jnp.float32)
    note_pos = jnp.tile(jnp.arange(T, dtype=jnp.int32), (B, 1))
    voice_pos = jax.random.randint(kv, (B, T), 0, 3)
    beat_pos = jax.random.randint(kb, (B, T), 0, 4)
    measure_pos = jax.random.randint(km, (B, T), 0, 2)

    out = forward(params, x, note_pos, voice_pos, beat_pos, measure_pos)
    out = jax.block_until_ready(out)
    assert out.shape == (B, 1) and out.dtype == jnp.float32
    print("KERNEL_OK")
</pallas_src>

<mosaic_0001>
module attributes {stable_mosaic.version = 11 : i64} {
  func.func @kernel(%arg0: memref<16x16xf32, #tpu.memory_space<vmem>>, %arg1: memref<4x16xf32, #tpu.memory_space<vmem>>, %arg2: memref<16x16xf32, #tpu.memory_space<vmem>>, %arg3: memref<4x4xf32, #tpu.memory_space<vmem>>, %arg4: memref<16x256xf32, #tpu.memory_space<vmem>>, %arg5: memref<1x256xf32, #tpu.memory_space<vmem>>, %arg6: memref<64x128xf32, #tpu.memory_space<vmem>>, %arg7: memref<64x192xf32, #tpu.memory_space<vmem>>, %arg8: memref<1x192xf32, #tpu.memory_space<vmem>>, %arg9: memref<64x64xf32, #tpu.memory_space<vmem>>, %arg10: memref<1x64xf32, #tpu.memory_space<vmem>>, %arg11: memref<64x256xf32, #tpu.memory_space<vmem>>, %arg12: memref<1x256xf32, #tpu.memory_space<vmem>>, %arg13: memref<64x128xf32, #tpu.memory_space<vmem>>, %arg14: memref<64x192xf32, #tpu.memory_space<vmem>>, %arg15: memref<1x192xf32, #tpu.memory_space<vmem>>, %arg16: memref<64x64xf32, #tpu.memory_space<vmem>>, %arg17: memref<1x64xf32, #tpu.memory_space<vmem>>, %arg18: memref<64x1xf32, #tpu.memory_space<vmem>>, %arg19: memref<1x1xf32, #tpu.memory_space<vmem>>, %arg20: memref<2x1xf32, #tpu.memory_space<vmem>>) attributes {dimension_semantics = [], scalar_prefetch = 0 : i64, scratch_operands = 0 : i64, tpu.core_type = #tpu.core_type<tc>} {
    %c0 = arith.constant 0 : index
    %c0_0 = arith.constant 0 : index
    %0 = vector.load %arg0[%c0, %c0_0] : memref<16x16xf32, #tpu.memory_space<vmem>>, vector<16x16xf32>
    %c0_1 = arith.constant 0 : index
    %c0_2 = arith.constant 0 : index
    %1 = vector.load %arg4[%c0_1, %c0_2] : memref<16x256xf32, #tpu.memory_space<vmem>>, vector<16x256xf32>
    %c0_3 = arith.constant 0 : index
    %c0_4 = arith.constant 0 : index
    %2 = vector.load %arg5[%c0_3, %c0_4] : memref<1x256xf32, #tpu.memory_space<vmem>>, vector<1x256xf32>
    %c0_5 = arith.constant 0 : index
    %c0_6 = arith.constant 0 : index
    %3 = vector.load %arg6[%c0_5, %c0_6] : memref<64x128xf32, #tpu.memory_space<vmem>>, vector<64x128xf32>
    %cst = arith.constant dense<0.000000e+00> : vector<16x256xf32>
    %4 = tpu.matmul %0, %1, %cst {dimension_numbers = #tpu.dot_dimension_numbers<[1], [0], [0], [1], [0, 0, 1, 1], [], []>} : vector<16x16xf32>, vector<16x256xf32>, vector<16x256xf32> -> vector<16x256xf32>
    %5 = vector.broadcast %2 : vector<1x256xf32> to vector<16x256xf32>
    %6 = arith.addf %4, %5 : vector<16x256xf32>
    %7 = tpu.iota {dimensions = array<i32: 0>} : vector<4x1xi32>
    %c2_i32 = arith.constant 2 : i32
    %8 = vector.broadcast %c2_i32 : i32 to vector<4x1xi32>
    %9 = arith.cmpi slt, %7, %8 : vector<4x1xi32>
    %10 = arith.extui %9 : vector<4x1xi1> to vector<4x1xi32>
    %11 = arith.sitofp %10 : vector<4x1xi32> to vector<4x1xf32>
    %cst_7 = arith.constant 1.000000e+00 : f32
    %12 = vector.broadcast %cst_7 : f32 to vector<4x1xf32>
    %13 = arith.subf %12, %11 : vector<4x1xf32>
    %cst_8 = arith.constant 0.000000e+00 : f32
    %14 = vector.broadcast %cst_8 : f32 to vector<4x32xf32>
    %15 = vector.extract_strided_slice %6 {offsets = [0, 0], sizes = [2, 128], strides = [1, 1]} : vector<16x256xf32> to vector<2x128xf32>
    %16 = vector.extract_strided_slice %6 {offsets = [14, 128], sizes = [2, 128], strides = [1, 1]} : vector<16x256xf32> to vector<2x128xf32>
    %17 = tpu.concatenate %15, %16 in 0 : vector<2x128xf32>, vector<2x128xf32> -> vector<4x128xf32>
    %18 = vector.extract_strided_slice %17 {offsets = [0, 0], sizes = [4, 32], strides = [1, 1]} : vector<4x128xf32> to vector<4x32xf32>
    %19 = arith.negf %18 : vector<4x32xf32>
    %20 = math.exp %19 : vector<4x32xf32>
    %cst_9 = arith.constant 1.000000e+00 : f32
    %21 = vector.broadcast %cst_9 : f32 to vector<4x32xf32>
    %22 = arith.addf %21, %20 : vector<4x32xf32>
    %23 = arith.divf %21, %22 : vector<4x32xf32>
    %24 = vector.extract_strided_slice %17 {offsets = [0, 32], sizes = [4, 32], strides = [1, 1]} : vector<4x128xf32> to vector<4x32xf32>
    %25 = arith.negf %24 : vector<4x32xf32>
    %26 = math.exp %25 : vector<4x32xf32>
    %cst_10 = arith.constant 1.000000e+00 : f32
    %27 = vector.broadcast %cst_10 : f32 to vector<4x32xf32>
    %28 = arith.addf %27, %26 : vector<4x32xf32>
    %29 = arith.divf %27, %28 : vector<4x32xf32>
    %30 = vector.extract_strided_slice %17 {offsets = [0, 64], sizes = [4, 32], strides = [1, 1]} : vector<4x128xf32> to vector<4x32xf32>
    %31 = math.tanh %30 : vector<4x32xf32>
    %32 = vector.extract_strided_slice %17 {offsets = [0, 96], sizes = [4, 32], strides = [1, 1]} : vector<4x128xf32> to vector<4x32xf32>
    %33 = arith.negf %32 : vector<4x32xf32>
    %34 = math.exp %33 : vector<4x32xf32>
    %cst_11 = arith.constant 1.000000e+00 : f32
    %35 = vector.broadcast %cst_11 : f32 to vector<4x32xf32>
    %36 = arith.addf %35, %34 : vector<4x32xf32>
    %37 = arith.divf %35, %36 : vector<4x32xf32>
    %38 = arith.mulf %29, %14 : vector<4x32xf32>
    %39 = arith.mulf %23, %31 : vector<4x32xf32>
    %40 = arith.addf %38, %39 : vector<4x32xf32>
    %41 = math.tanh %40 : vector<4x32xf32>
    %42 = arith.mulf %37, %41 : vector<4x32xf32>
    %43 = vector.broadcast %11 : vector<4x1xf32> to vector<4x32xf32>
    %44 = arith.mulf %42, %43 : vector<4x32xf32>
    %45 = vector.broadcast %13 : vector<4x1xf32> to vector<4x32xf32>
    %46 = arith.mulf %42, %45 : vector<4x32xf32>
    %47 = tpu.concatenate %44, %46 in 1 : vector<4x32xf32>, vector<4x32xf32> -> vector<4x64xf32>
    %48 = vector.extract_strided_slice %42 {offsets = [0, 0], sizes = [2, 32], strides = [1, 1]} : vector<4x32xf32> to vector<2x32xf32>
    %49 = vector.extract_strided_slice %42 {offsets = [2, 0], sizes = [2, 32], strides = [1, 1]} : vector<4x32xf32> to vector<2x32xf32>
    %50 = vector.extract_strided_slice %6 {offsets = [2, 0], sizes = [2, 128], strides = [1, 1]} : vector<16x256xf32> to vector<2x128xf32>
    %51 = vector.extract_strided_slice %6 {offsets = [12, 128], sizes = [2, 128], strides = [1, 1]} : vector<16x256xf32> to vector<2x128xf32>
    %52 = tpu.concatenate %50, %51 in 0 : vector<2x128xf32>, vector<2x128xf32> -> vector<4x128xf32>
    %cst_12 = arith.constant dense<0.000000e+00> : vector<4x128xf32>
    %53 = tpu.matmul %47, %3, %cst_12 {dimension_numbers = #tpu.dot_dimension_numbers<[1], [0], [0], [1], [0, 0, 1, 1], [], []>} : vector<4x64xf32>, vector<64x128xf32>, vector<4x128xf32> -> vector<4x128xf32>
    %54 = arith.addf %53, %52 : vector<4x128xf32>
    %55 = vector.extract_strided_slice %54 {offsets = [0, 0], sizes = [4, 32], strides = [1, 1]} : vector<4x128xf32> to vector<4x32xf32>
    %56 = arith.negf %55 : vector<4x32xf32>
    %57 = math.exp %56 : vector<4x32xf32>
    %cst_13 = arith.constant 1.000000e+00 : f32
    %58 = vector.broadcast %cst_13 : f32 to vector<4x32xf32>
    %59 = arith.addf %58, %57 : vector<4x32xf32>
    %60 = arith.divf %58, %59 : vector<4x32xf32>
    %61 = vector.extract_strided_slice %54 {offsets = [0, 32], sizes = [4, 32], strides = [1, 1]} : vector<4x128xf32> to vector<4x32xf32>
    %62 = arith.negf %61 : vector<4x32xf32>
    %63 = math.exp %62 : vector<4x32xf32>
    %cst_14 = arith.constant 1.000000e+00 : f32
    %64 = vector.broadcast %cst_14 : f32 to vector<4x32xf32>
    %65 = arith.addf %64, %63 : vector<4x32xf32>
    %66 = arith.divf %64, %65 : vector<4x32xf32>
    %67 = vector.extract_strided_slice %54 {offsets = [0, 64], sizes = [4, 32], strides = [1, 1]} : vector<4x128xf32> to vector<4x32xf32>
    %68 = math.tanh %67 : vector<4x32xf32>
    %69 = vector.extract_strided_slice %54 {offsets = [0, 96], sizes = [4, 32], strides = [1, 1]} : vector<4x128xf32> to vector<4x32xf32>
    %70 = arith.negf %69 : vector<4x32xf32>
    %71 = math.exp %70 : vector<4x32xf32>
    %cst_15 = arith.constant 1.000000e+00 : f32
    %72 = vector.broadcast %cst_15 : f32 to vector<4x32xf32>
    %73 = arith.addf %72, %71 : vector<4x32xf32>
    %74 = arith.divf %72, %73 : vector<4x32xf32>
    %75 = arith.mulf %66, %40 : vector<4x32xf32>
    %76 = arith.mulf %60, %68 : vector<4x32xf32>
    %77 = arith.addf %75, %76 : vector<4x32xf32>
    %78 = math.tanh %77 : vector<4x32xf32>
    %79 = arith.mulf %74, %78 : vector<4x32xf32>
    %80 = vector.broadcast %11 : vector<4x1xf32> to vector<4x32xf32>
    %81 = arith.mulf %79, %80 : vector<4x32xf32>
    %82 = vector.broadcast %13 : vector<4x1xf32> to vector<4x32xf32>
    %83 = arith.mulf %79, %82 : vector<4x32xf32>
    %84 = tpu.concatenate %81, %83 in 1 : vector<4x32xf32>, vector<4x32xf32> -> vector<4x64xf32>
    %85 = vector.extract_strided_slice %79 {offsets = [0, 0], sizes = [2, 32], strides = [1, 1]} : vector<4x32xf32> to vector<2x32xf32>
    %86 = vector.extract_strided_slice %79 {offsets = [2, 0], sizes = [2, 32], strides = [1, 1]} : vector<4x32xf32> to vector<2x32xf32>
    %87 = vector.extract_strided_slice %6 {offsets = [4, 0], sizes = [2, 128], strides = [1, 1]} : vector<16x256xf32> to vector<2x128xf32>
    %88 = vector.extract_strided_slice %6 {offsets = [10, 128], sizes = [2, 128], strides = [1, 1]} : vector<16x256xf32> to vector<2x128xf32>
    %89 = tpu.concatenate %87, %88 in 0 : vector<2x128xf32>, vector<2x128xf32> -> vector<4x128xf32>
    %cst_16 = arith.constant dense<0.000000e+00> : vector<4x128xf32>
    %90 = tpu.matmul %84, %3, %cst_16 {dimension_numbers = #tpu.dot_dimension_numbers<[1], [0], [0], [1], [0, 0, 1, 1], [], []>} : vector<4x64xf32>, vector<64x128xf32>, vector<4x128xf32> -> vector<4x128xf32>
    %91 = arith.addf %90, %89 : vector<4x128xf32>
    %92 = vector.extract_strided_slice %91 {offsets = [0, 0], sizes = [4, 32], strides = [1, 1]} : vector<4x128xf32> to vector<4x32xf32>
    %93 = arith.negf %92 : vector<4x32xf32>
    %94 = math.exp %93 : vector<4x32xf32>
    %cst_17 = arith.constant 1.000000e+00 : f32
    %95 = vector.broadcast %cst_17 : f32 to vector<4x32xf32>
    %96 = arith.addf %95, %94 : vector<4x32xf32>
    %97 = arith.divf %95, %96 : vector<4x32xf32>
    %98 = vector.extract_strided_slice %91 {offsets = [0, 32], sizes = [4, 32], strides = [1, 1]} : vector<4x128xf32> to vector<4x32xf32>
    %99 = arith.negf %98 : vector<4x32xf32>
    %100 = math.exp %99 : vector<4x32xf32>
    %cst_18 = arith.constant 1.000000e+00 : f32
    %101 = vector.broadcast %cst_18 : f32 to vector<4x32xf32>
    %102 = arith.addf %101, %100 : vector<4x32xf32>
    %103 = arith.divf %101, %102 : vector<4x32xf32>
    %104 = vector.extract_strided_slice %91 {offsets = [0, 64], sizes = [4, 32], strides = [1, 1]} : vector<4x128xf32> to vector<4x32xf32>
    %105 = math.tanh %104 : vector<4x32xf32>
    %106 = vector.extract_strided_slice %91 {offsets = [0, 96], sizes = [4, 32], strides = [1, 1]} : vector<4x128xf32> to vector<4x32xf32>
    %107 = arith.negf %106 : vector<4x32xf32>
    %108 = math.exp %107 : vector<4x32xf32>
    %cst_19 = arith.constant 1.000000e+00 : f32
    %109 = vector.broadcast %cst_19 : f32 to vector<4x32xf32>
    %110 = arith.addf %109, %108 : vector<4x32xf32>
    %111 = arith.divf %109, %110 : vector<4x32xf32>
    %112 = arith.mulf %103, %77 : vector<4x32xf32>
    %113 = arith.mulf %97, %105 : vector<4x32xf32>
    %114 = arith.addf %112, %113 : vector<4x32xf32>
    %115 = math.tanh %114 : vector<4x32xf32>
    %116 = arith.mulf %111, %115 : vector<4x32xf32>
    %117 = vector.broadcast %11 : vector<4x1xf32> to vector<4x32xf32>
    %118 = arith.mulf %116, %117 : vector<4x32xf32>
    %119 = vector.broadcast %13 : vector<4x1xf32> to vector<4x32xf32>
    %120 = arith.mulf %116, %119 : vector<4x32xf32>
    %121 = tpu.concatenate %118, %120 in 1 : vector<4x32xf32>, vector<4x32xf32> -> vector<4x64xf32>
    %122 = vector.extract_strided_slice %116 {offsets = [0, 0], sizes = [2, 32], strides = [1, 1]} : vector<4x32xf32> to vector<2x32xf32>
    %123 = vector.extract_strided_slice %116 {offsets = [2, 0], sizes = [2, 32], strides = [1, 1]} : vector<4x32xf32> to vector<2x32xf32>
    %124 = vector.extract_strided_slice %6 {offsets = [6, 0], sizes = [2, 128], strides = [1, 1]} : vector<16x256xf32> to vector<2x128xf32>
    %125 = vector.extract_strided_slice %6 {offsets = [8, 128], sizes = [2, 128], strides = [1, 1]} : vector<16x256xf32> to vector<2x128xf32>
    %126 = tpu.concatenate %124, %125 in 0 : vector<2x128xf32>, vector<2x128xf32> -> vector<4x128xf32>
    %cst_20 = arith.constant dense<0.000000e+00> : vector<4x128xf32>
    %127 = tpu.matmul %121, %3, %cst_20 {dimension_numbers = #tpu.dot_dimension_numbers<[1], [0], [0], [1], [0, 0, 1, 1], [], []>} : vector<4x64xf32>, vector<64x128xf32>, vector<4x128xf32> -> vector<4x128xf32>
    %128 = arith.addf %127, %126 : vector<4x128xf32>
    %129 = vector.extract_strided_slice %128 {offsets = [0, 0], sizes = [4, 32], strides = [1, 1]} : vector<4x128xf32> to vector<4x32xf32>
    %130 = arith.negf %129 : vector<4x32xf32>
    %131 = math.exp %130 : vector<4x32xf32>
    %cst_21 = arith.constant 1.000000e+00 : f32
    %132 = vector.broadcast %cst_21 : f32 to vector<4x32xf32>
    %133 = arith.addf %132, %131 : vector<4x32xf32>
    %134 = arith.divf %132, %133 : vector<4x32xf32>
    %135 = vector.extract_strided_slice %128 {offsets = [0, 32], sizes = [4, 32], strides = [1, 1]} : vector<4x128xf32> to vector<4x32xf32>
    %136 = arith.negf %135 : vector<4x32xf32>
    %137 = math.exp %136 : vector<4x32xf32>
    %cst_22 = arith.constant 1.000000e+00 : f32
    %138 = vector.broadcast %cst_22 : f32 to vector<4x32xf32>
    %139 = arith.addf %138, %137 : vector<4x32xf32>
    %140 = arith.divf %138, %139 : vector<4x32xf32>
    %141 = vector.extract_strided_slice %128 {offsets = [0, 64], sizes = [4, 32], strides = [1, 1]} : vector<4x128xf32> to vector<4x32xf32>
    %142 = math.tanh %141 : vector<4x32xf32>
    %143 = vector.extract_strided_slice %128 {offsets = [0, 96], sizes = [4, 32], strides = [1, 1]} : vector<4x128xf32> to vector<4x32xf32>
    %144 = arith.negf %143 : vector<4x32xf32>
    %145 = math.exp %144 : vector<4x32xf32>
    %cst_23 = arith.constant 1.000000e+00 : f32
    %146 = vector.broadcast %cst_23 : f32 to vector<4x32xf32>
    %147 = arith.addf %146, %145 : vector<4x32xf32>
    %148 = arith.divf %146, %147 : vector<4x32xf32>
    %149 = arith.mulf %140, %114 : vector<4x32xf32>
    %150 = arith.mulf %134, %142 : vector<4x32xf32>
    %151 = arith.addf %149, %150 : vector<4x32xf32>
    %152 = math.tanh %151 : vector<4x32xf32>
    %153 = arith.mulf %148, %152 : vector<4x32xf32>
    %154 = vector.broadcast %11 : vector<4x1xf32> to vector<4x32xf32>
    %155 = arith.mulf %153, %154 : vector<4x32xf32>
    %156 = vector.broadcast %13 : vector<4x1xf32> to vector<4x32xf32>
    %157 = arith.mulf %153, %156 : vector<4x32xf32>
    %158 = tpu.concatenate %155, %157 in 1 : vector<4x32xf32>, vector<4x32xf32> -> vector<4x64xf32>
    %159 = vector.extract_strided_slice %153 {offsets = [0, 0], sizes = [2, 32], strides = [1, 1]} : vector<4x32xf32> to vector<2x32xf32>
    %160 = vector.extract_strided_slice %153 {offsets = [2, 0], sizes = [2, 32], strides = [1, 1]} : vector<4x32xf32> to vector<2x32xf32>
    %161 = vector.extract_strided_slice %6 {offsets = [8, 0], sizes = [2, 128], strides = [1, 1]} : vector<16x256xf32> to vector<2x128xf32>
    %162 = vector.extract_strided_slice %6 {offsets = [6, 128], sizes = [2, 128], strides = [1, 1]} : vector<16x256xf32> to vector<2x128xf32>
    %163 = tpu.concatenate %161, %162 in 0 : vector<2x128xf32>, vector<2x128xf32> -> vector<4x128xf32>
    %cst_24 = arith.constant dense<0.000000e+00> : vector<4x128xf32>
    %164 = tpu.matmul %158, %3, %cst_24 {dimension_numbers = #tpu.dot_dimension_numbers<[1], [0], [0], [1], [0, 0, 1, 1], [], []>} : vector<4x64xf32>, vector<64x128xf32>, vector<4x128xf32> -> vector<4x128xf32>
    %165 = arith.addf %164, %163 : vector<4x128xf32>
    %166 = vector.extract_strided_slice %165 {offsets = [0, 0], sizes = [4, 32], strides = [1, 1]} : vector<4x128xf32> to vector<4x32xf32>
    %167 = arith.negf %166 : vector<4x32xf32>
    %168 = math.exp %167 : vector<4x32xf32>
    %cst_25 = arith.constant 1.000000e+00 : f32
    %169 = vector.broadcast %cst_25 : f32 to vector<4x32xf32>
    %170 = arith.addf %169, %168 : vector<4x32xf32>
    %171 = arith.divf %169, %170 : vector<4x32xf32>
    %172 = vector.extract_strided_slice %165 {offsets = [0, 32], sizes = [4, 32], strides = [1, 1]} : vector<4x128xf32> to vector<4x32xf32>
    %173 = arith.negf %172 : vector<4x32xf32>
    %174 = math.exp %173 : vector<4x32xf32>
    %cst_26 = arith.constant 1.000000e+00 : f32
    %175 = vector.broadcast %cst_26 : f32 to vector<4x32xf32>
    %176 = arith.addf %175, %174 : vector<4x32xf32>
    %177 = arith.divf %175, %176 : vector<4x32xf32>
    %178 = vector.extract_strided_slice %165 {offsets = [0, 64], sizes = [4, 32], strides = [1, 1]} : vector<4x128xf32> to vector<4x32xf32>
    %179 = math.tanh %178 : vector<4x32xf32>
    %180 = vector.extract_strided_slice %165 {offsets = [0, 96], sizes = [4, 32], strides = [1, 1]} : vector<4x128xf32> to vector<4x32xf32>
    %181 = arith.negf %180 : vector<4x32xf32>
    %182 = math.exp %181 : vector<4x32xf32>
    %cst_27 = arith.constant 1.000000e+00 : f32
    %183 = vector.broadcast %cst_27 : f32 to vector<4x32xf32>
    %184 = arith.addf %183, %182 : vector<4x32xf32>
    %185 = arith.divf %183, %184 : vector<4x32xf32>
    %186 = arith.mulf %177, %151 : vector<4x32xf32>
    %187 = arith.mulf %171, %179 : vector<4x32xf32>
    %188 = arith.addf %186, %187 : vector<4x32xf32>
    %189 = math.tanh %188 : vector<4x32xf32>
    %190 = arith.mulf %185, %189 : vector<4x32xf32>
    %191 = vector.broadcast %11 : vector<4x1xf32> to vector<4x32xf32>
    %192 = arith.mulf %190, %191 : vector<4x32xf32>
    %193 = vector.broadcast %13 : vector<4x1xf32> to vector<4x32xf32>
    %194 = arith.mulf %190, %193 : vector<4x32xf32>
    %195 = tpu.concatenate %192, %194 in 1 : vector<4x32xf32>, vector<4x32xf32> -> vector<4x64xf32>
    %196 = vector.extract_strided_slice %190 {offsets = [0, 0], sizes = [2, 32], strides = [1, 1]} : vector<4x32xf32> to vector<2x32xf32>
    %197 = vector.extract_strided_slice %190 {offsets = [2, 0], sizes = [2, 32], strides = [1, 1]} : vector<4x32xf32> to vector<2x32xf32>
    %198 = vector.extract_strided_slice %6 {offsets = [10, 0], sizes = [2, 128], strides = [1, 1]} : vector<16x256xf32> to vector<2x128xf32>
    %199 = vector.extract_strided_slice %6 {offsets = [4, 128], sizes = [2, 128], strides = [1, 1]} : vector<16x256xf32> to vector<2x128xf32>
    %200 = tpu.concatenate %198, %199 in 0 : vector<2x128xf32>, vector<2x128xf32> -> vector<4x128xf32>
    %cst_28 = arith.constant dense<0.000000e+00> : vector<4x128xf32>
    %201 = tpu.matmul %195, %3, %cst_28 {dimension_numbers = #tpu.dot_dimension_numbers<[1], [0], [0], [1], [0, 0, 1, 1], [], []>} : vector<4x64xf32>, vector<64x128xf32>, vector<4x128xf32> -> vector<4x128xf32>
    %202 = arith.addf %201, %200 : vector<4x128xf32>
    %203 = vector.extract_strided_slice %202 {offsets = [0, 0], sizes = [4, 32], strides = [1, 1]} : vector<4x128xf32> to vector<4x32xf32>
    %204 = arith.negf %203 : vector<4x32xf32>
    %205 = math.exp %204 : vector<4x32xf32>
    %cst_29 = arith.constant 1.000000e+00 : f32
    %206 = vector.broadcast %cst_29 : f32 to vector<4x32xf32>
    %207 = arith.addf %206, %205 : vector<4x32xf32>
    %208 = arith.divf %206, %207 : vector<4x32xf32>
    %209 = vector.extract_strided_slice %202 {offsets = [0, 32], sizes = [4, 32], strides = [1, 1]} : vector<4x128xf32> to vector<4x32xf32>
    %210 = arith.negf %209 : vector<4x32xf32>
    %211 = math.exp %210 : vector<4x32xf32>
    %cst_30 = arith.constant 1.000000e+00 : f32
    %212 = vector.broadcast %cst_30 : f32 to vector<4x32xf32>
    %213 = arith.addf %212, %211 : vector<4x32xf32>
    %214 = arith.divf %212, %213 : vector<4x32xf32>
    %215 = vector.extract_strided_slice %202 {offsets = [0, 64], sizes = [4, 32], strides = [1, 1]} : vector<4x128xf32> to vector<4x32xf32>
    %216 = math.tanh %215 : vector<4x32xf32>
    %217 = vector.extract_strided_slice %202 {offsets = [0, 96], sizes = [4, 32], strides = [1, 1]} : vector<4x128xf32> to vector<4x32xf32>
    %218 = arith.negf %217 : vector<4x32xf32>
    %219 = math.exp %218 : vector<4x32xf32>
    %cst_31 = arith.constant 1.000000e+00 : f32
    %220 = vector.broadcast %cst_31 : f32 to vector<4x32xf32>
    %221 = arith.addf %220, %219 : vector<4x32xf32>
    %222 = arith.divf %220, %221 : vector<4x32xf32>
    %223 = arith.mulf %214, %188 : vector<4x32xf32>
    %224 = arith.mulf %208, %216 : vector<4x32xf32>
    %225 = arith.addf %223, %224 : vector<4x32xf32>
    %226 = math.tanh %225 : vector<4x32xf32>
    %227 = arith.mulf %222, %226 : vector<4x32xf32>
    %228 = vector.broadcast %11 : vector<4x1xf32> to vector<4x32xf32>
    %229 = arith.mulf %227, %228 : vector<4x32xf32>
    %230 = vector.broadcast %13 : vector<4x1xf32> to vector<4x32xf32>
    %231 = arith.mulf %227, %230 : vector<4x32xf32>
    %232 = tpu.concatenate %229, %231 in 1 : vector<4x32xf32>, vector<4x32xf32> -> vector<4x64xf32>
    %233 = vector.extract_strided_slice %227 {offsets = [0, 0], sizes = [2, 32], strides = [1, 1]} : vector<4x32xf32> to vector<2x32xf32>
    %234 = vector.extract_strided_slice %227 {offsets = [2, 0], sizes = [2, 32], strides = [1, 1]} : vector<4x32xf32> to vector<2x32xf32>
    %235 = vector.extract_strided_slice %6 {offsets = [12, 0], sizes = [2, 128], strides = [1, 1]} : vector<16x256xf32> to vector<2x128xf32>
    %236 = vector.extract_strided_slice %6 {offsets = [2, 128], sizes = [2, 128], strides = [1, 1]} : vector<16x256xf32> to vector<2x128xf32>
    %237 = tpu.concatenate %235, %236 in 0 : vector<2x128xf32>, vector<2x128xf32> -> vector<4x128xf32>
    %cst_32 = arith.constant dense<0.000000e+00> : vector<4x128xf32>
    %238 = tpu.matmul %232, %3, %cst_32 {dimension_numbers = #tpu.dot_dimension_numbers<[1], [0], [0], [1], [0, 0, 1, 1], [], []>} : vector<4x64xf32>, vector<64x128xf32>, vector<4x128xf32> -> vector<4x128xf32>
    %239 = arith.addf %238, %237 : vector<4x128xf32>
    %240 = vector.extract_strided_slice %239 {offsets = [0, 0], sizes = [4, 32], strides = [1, 1]} : vector<4x128xf32> to vector<4x32xf32>
    %241 = arith.negf %240 : vector<4x32xf32>
    %242 = math.exp %241 : vector<4x32xf32>
    %cst_33 = arith.constant 1.000000e+00 : f32
    %243 = vector.broadcast %cst_33 : f32 to vector<4x32xf32>
    %244 = arith.addf %243, %242 : vector<4x32xf32>
    %245 = arith.divf %243, %244 : vector<4x32xf32>
    %246 = vector.extract_strided_slice %239 {offsets = [0, 32], sizes = [4, 32], strides = [1, 1]} : vector<4x128xf32> to vector<4x32xf32>
    %247 = arith.negf %246 : vector<4x32xf32>
    %248 = math.exp %247 : vector<4x32xf32>
    %cst_34 = arith.constant 1.000000e+00 : f32
    %249 = vector.broadcast %cst_34 : f32 to vector<4x32xf32>
    %250 = arith.addf %249, %248 : vector<4x32xf32>
    %251 = arith.divf %249, %250 : vector<4x32xf32>
    %252 = vector.extract_strided_slice %239 {offsets = [0, 64], sizes = [4, 32], strides = [1, 1]} : vector<4x128xf32> to vector<4x32xf32>
    %253 = math.tanh %252 : vector<4x32xf32>
    %254 = vector.extract_strided_slice %239 {offsets = [0, 96], sizes = [4, 32], strides = [1, 1]} : vector<4x128xf32> to vector<4x32xf32>
    %255 = arith.negf %254 : vector<4x32xf32>
    %256 = math.exp %255 : vector<4x32xf32>
    %cst_35 = arith.constant 1.000000e+00 : f32
    %257 = vector.broadcast %cst_35 : f32 to vector<4x32xf32>
    %258 = arith.addf %257, %256 : vector<4x32xf32>
    %259 = arith.divf %257, %258 : vector<4x32xf32>
    %260 = arith.mulf %251, %225 : vector<4x32xf32>
    %261 = arith.mulf %245, %253 : vector<4x32xf32>
    %262 = arith.addf %260, %261 : vector<4x32xf32>
    %263 = math.tanh %262 : vector<4x32xf32>
    %264 = arith.mulf %259, %263 : vector<4x32xf32>
    %265 = vector.broadcast %11 : vector<4x1xf32> to vector<4x32xf32>
    %266 = arith.mulf %264, %265 : vector<4x32xf32>
    %267 = vector.broadcast %13 : vector<4x1xf32> to vector<4x32xf32>
    %268 = arith.mulf %264, %267 : vector<4x32xf32>
    %269 = tpu.concatenate %266, %268 in 1 : vector<4x32xf32>, vector<4x32xf32> -> vector<4x64xf32>
    %270 = vector.extract_strided_slice %264 {offsets = [0, 0], sizes = [2, 32], strides = [1, 1]} : vector<4x32xf32> to vector<2x32xf32>
    %271 = vector.extract_strided_slice %264 {offsets = [2, 0], sizes = [2, 32], strides = [1, 1]} : vector<4x32xf32> to vector<2x32xf32>
    %272 = vector.extract_strided_slice %6 {offsets = [14, 0], sizes = [2, 128], strides = [1, 1]} : vector<16x256xf32> to vector<2x128xf32>
    %273 = vector.extract_strided_slice %6 {offsets = [0, 128], sizes = [2, 128], strides = [1, 1]} : vector<16x256xf32> to vector<2x128xf32>
    %274 = tpu.concatenate %272, %273 in 0 : vector<2x128xf32>, vector<2x128xf32> -> vector<4x128xf32>
    %cst_36 = arith.constant dense<0.000000e+00> : vector<4x128xf32>
    %275 = tpu.matmul %269, %3, %cst_36 {dimension_numbers = #tpu.dot_dimension_numbers<[1], [0], [0], [1], [0, 0, 1, 1], [], []>} : vector<4x64xf32>, vector<64x128xf32>, vector<4x128xf32> -> vector<4x128xf32>
    %276 = arith.addf %275, %274 : vector<4x128xf32>
    %277 = vector.extract_strided_slice %276 {offsets = [0, 0], sizes = [4, 32], strides = [1, 1]} : vector<4x128xf32> to vector<4x32xf32>
    %278 = arith.negf %277 : vector<4x32xf32>
    %279 = math.exp %278 : vector<4x32xf32>
    %cst_37 = arith.constant 1.000000e+00 : f32
    %280 = vector.broadcast %cst_37 : f32 to vector<4x32xf32>
    %281 = arith.addf %280, %279 : vector<4x32xf32>
    %282 = arith.divf %280, %281 : vector<4x32xf32>
    %283 = vector.extract_strided_slice %276 {offsets = [0, 32], sizes = [4, 32], strides = [1, 1]} : vector<4x128xf32> to vector<4x32xf32>
    %284 = arith.negf %283 : vector<4x32xf32>
    %285 = math.exp %284 : vector<4x32xf32>
    %cst_38 = arith.constant 1.000000e+00 : f32
    %286 = vector.broadcast %cst_38 : f32 to vector<4x32xf32>
    %287 = arith.addf %286, %285 : vector<4x32xf32>
    %288 = arith.divf %286, %287 : vector<4x32xf32>
    %289 = vector.extract_strided_slice %276 {offsets = [0, 64], sizes = [4, 32], strides = [1, 1]} : vector<4x128xf32> to vector<4x32xf32>
    %290 = math.tanh %289 : vector<4x32xf32>
    %291 = vector.extract_strided_slice %276 {offsets = [0, 96], sizes = [4, 32], strides = [1, 1]} : vector<4x128xf32> to vector<4x32xf32>
    %292 = arith.negf %291 : vector<4x32xf32>
    %293 = math.exp %292 : vector<4x32xf32>
    %cst_39 = arith.constant 1.000000e+00 : f32
    %294 = vector.broadcast %cst_39 : f32 to vector<4x32xf32>
    %295 = arith.addf %294, %293 : vector<4x32xf32>
    %296 = arith.divf %294, %295 : vector<4x32xf32>
    %297 = arith.mulf %288, %262 : vector<4x32xf32>
    %298 = arith.mulf %282, %290 : vector<4x32xf32>
    %299 = arith.addf %297, %298 : vector<4x32xf32>
    %300 = math.tanh %299 : vector<4x32xf32>
    %301 = arith.mulf %296, %300 : vector<4x32xf32>
    %302 = vector.extract_strided_slice %301 {offsets = [0, 0], sizes = [2, 32], strides = [1, 1]} : vector<4x32xf32> to vector<2x32xf32>
    %303 = vector.extract_strided_slice %301 {offsets = [2, 0], sizes = [2, 32], strides = [1, 1]} : vector<4x32xf32> to vector<2x32xf32>
    %304 = tpu.concatenate %48, %303 in 1 : vector<2x32xf32>, vector<2x32xf32> -> vector<2x64xf32>
    %305 = tpu.concatenate %85, %271 in 1 : vector<2x32xf32>, vector<2x32xf32> -> vector<2x64xf32>
    %306 = tpu.concatenate %122, %234 in 1 : vector<2x32xf32>, vector<2x32xf32> -> vector<2x64xf32>
    %307 = tpu.concatenate %159, %197 in 1 : vector<2x32xf32>, vector<2x32xf32> -> vector<2x64xf32>
    %308 = tpu.concatenate %196, %160 in 1 : vector<2x32xf32>, vector<2x32xf32> -> vector<2x64xf32>
    %309 = tpu.concatenate %233, %123 in 1 : vector<2x32xf32>, vector<2x32xf32> -> vector<2x64xf32>
    %310 = tpu.concatenate %270, %86 in 1 : vector<2x32xf32>, vector<2x32xf32> -> vector<2x64xf32>
    %311 = tpu.concatenate %302, %49 in 1 : vector<2x32xf32>, vector<2x32xf32> -> vector<2x64xf32>
    %312 = tpu.concatenate %304, %305, %306, %307, %308, %309, %310, %311 in 0 : vector<2x64xf32>, vector<2x64xf32>, vector<2x64xf32>, vector<2x64xf32>, vector<2x64xf32>, vector<2x64xf32>, vector<2x64xf32>, vector<2x64xf32> -> vector<16x64xf32>
    %c0_40 = arith.constant 0 : index
    %c0_41 = arith.constant 0 : index
    %313 = vector.load %arg2[%c0_40, %c0_41] : memref<16x16xf32, #tpu.memory_space<vmem>>, vector<16x16xf32>
    %c0_42 = arith.constant 0 : index
    %c0_43 = arith.constant 0 : index
    %314 = vector.load %arg7[%c0_42, %c0_43] : memref<64x192xf32, #tpu.memory_space<vmem>>, vector<64x192xf32>
    %c0_44 = arith.constant 0 : index
    %c0_45 = arith.constant 0 : index
    %315 = vector.load %arg8[%c0_44, %c0_45] : memref<1x192xf32, #tpu.memory_space<vmem>>, vector<1x192xf32>
    %c0_46 = arith.constant 0 : index
    %c0_47 = arith.constant 0 : index
    %316 = vector.load %arg9[%c0_46, %c0_47] : memref<64x64xf32, #tpu.memory_space<vmem>>, vector<64x64xf32>
    %c0_48 = arith.constant 0 : index
    %c0_49 = arith.constant 0 : index
    %317 = vector.load %arg10[%c0_48, %c0_49] : memref<1x64xf32, #tpu.memory_space<vmem>>, vector<1x64xf32>
    %cst_50 = arith.constant dense<0.000000e+00> : vector<16x192xf32>
    %318 = tpu.matmul %312, %314, %cst_50 {dimension_numbers = #tpu.dot_dimension_numbers<[1], [0], [0], [1], [0, 0, 1, 1], [], []>} : vector<16x64xf32>, vector<64x192xf32>, vector<16x192xf32> -> vector<16x192xf32>
    %319 = vector.broadcast %315 : vector<1x192xf32> to vector<16x192xf32>
    %320 = arith.addf %318, %319 : vector<16x192xf32>
    %321 = vector.extract_strided_slice %320 {offsets = [0, 0], sizes = [16, 64], strides = [1, 1]} : vector<16x192xf32> to vector<16x64xf32>
    %322 = vector.extract_strided_slice %320 {offsets = [0, 64], sizes = [16, 64], strides = [1, 1]} : vector<16x192xf32> to vector<16x64xf32>
    %323 = vector.extract_strided_slice %320 {offsets = [0, 128], sizes = [16, 64], strides = [1, 1]} : vector<16x192xf32> to vector<16x64xf32>
    %324 = vector.extract_strided_slice %321 {offsets = [0, 0], sizes = [16, 16], strides = [1, 1]} : vector<16x64xf32> to vector<16x16xf32>
    %325 = vector.extract_strided_slice %322 {offsets = [0, 0], sizes = [16, 16], strides = [1, 1]} : vector<16x64xf32> to vector<16x16xf32>
    %cst_51 = arith.constant dense<0.000000e+00> : vector<16x16xf32>
    %326 = tpu.matmul %324, %325, %cst_51 {dimension_numbers = #tpu.dot_dimension_numbers<[1], [1], [0], [0], [0, 0, 1, 0], [], []>} : vector<16x16xf32>, vector<16x16xf32>, vector<16x16xf32> -> vector<16x16xf32>
    %327 = arith.addf %326, %313 : vector<16x16xf32>
    %cst_52 = arith.constant dense<0xFF800000> : vector<16xf32>
    %328 = vector.multi_reduction <maximumf>, %327, %cst_52 [1] : vector<16x16xf32> to vector<16xf32>
    %329 = vector.shape_cast %328 : vector<16xf32> to vector<16x1xf32>
    %330 = vector.broadcast %329 : vector<16x1xf32> to vector<16x16xf32>
    %331 = arith.subf %327, %330 : vector<16x16xf32>
    %332 = math.exp %331 : vector<16x16xf32>
    %cst_53 = arith.constant dense<0.000000e+00> : vector<16xf32>
    %333 = vector.multi_reduction <add>, %332, %cst_53 [1] : vector<16x16xf32> to vector<16xf32>
    %334 = vector.shape_cast %333 : vector<16xf32> to vector<16x1xf32>
    %335 = vector.broadcast %334 : vector<16x1xf32> to vector<16x16xf32>
    %336 = arith.divf %332, %335 : vector<16x16xf32>
    %337 = vector.extract_strided_slice %323 {offsets = [0, 0], sizes = [16, 16], strides = [1, 1]} : vector<16x64xf32> to vector<16x16xf32>
    %cst_54 = arith.constant dense<0.000000e+00> : vector<16x16xf32>
    %338 = tpu.matmul %336, %337, %cst_54 {dimension_numbers = #tpu.dot_dimension_numbers<[1], [0], [0], [1], [0, 0, 1, 1], [], []>} : vector<16x16xf32>, vector<16x16xf32>, vector<16x16xf32> -> vector<16x16xf32>
    %339 = vector.extract_strided_slice %321 {offsets = [0, 16], sizes = [16, 16], strides = [1, 1]} : vector<16x64xf32> to vector<16x16xf32>
    %340 = vector.extract_strided_slice %322 {offsets = [0, 16], sizes = [16, 16], strides = [1, 1]} : vector<16x64xf32> to vector<16x16xf32>
    %cst_55 = arith.constant dense<0.000000e+00> : vector<16x16xf32>
    %341 = tpu.matmul %339, %340, %cst_55 {dimension_numbers = #tpu.dot_dimension_numbers<[1], [1], [0], [0], [0, 0, 1, 0], [], []>} : vector<16x16xf32>, vector<16x16xf32>, vector<16x16xf32> -> vector<16x16xf32>
    %342 = arith.addf %341, %313 : vector<16x16xf32>
    %cst_56 = arith.constant dense<0xFF800000> : vector<16xf32>
    %343 = vector.multi_reduction <maximumf>, %342, %cst_56 [1] : vector<16x16xf32> to vector<16xf32>
    %344 = vector.shape_cast %343 : vector<16xf32> to vector<16x1xf32>
    %345 = vector.broadcast %344 : vector<16x1xf32> to vector<16x16xf32>
    %346 = arith.subf %342, %345 : vector<16x16xf32>
    %347 = math.exp %346 : vector<16x16xf32>
    %cst_57 = arith.constant dense<0.000000e+00> : vector<16xf32>
    %348 = vector.multi_reduction <add>, %347, %cst_57 [1] : vector<16x16xf32> to vector<16xf32>
    %349 = vector.shape_cast %348 : vector<16xf32> to vector<16x1xf32>
    %350 = vector.broadcast %349 : vector<16x1xf32> to vector<16x16xf32>
    %351 = arith.divf %347, %350 : vector<16x16xf32>
    %352 = vector.extract_strided_slice %323 {offsets = [0, 16], sizes = [16, 16], strides = [1, 1]} : vector<16x64xf32> to vector<16x16xf32>
    %cst_58 = arith.constant dense<0.000000e+00> : vector<16x16xf32>
    %353 = tpu.matmul %351, %352, %cst_58 {dimension_numbers = #tpu.dot_dimension_numbers<[1], [0], [0], [1], [0, 0, 1, 1], [], []>} : vector<16x16xf32>, vector<16x16xf32>, vector<16x16xf32> -> vector<16x16xf32>
    %354 = vector.extract_strided_slice %321 {offsets = [0, 32], sizes = [16, 16], strides = [1, 1]} : vector<16x64xf32> to vector<16x16xf32>
    %355 = vector.extract_strided_slice %322 {offsets = [0, 32], sizes = [16, 16], strides = [1, 1]} : vector<16x64xf32> to vector<16x16xf32>
    %cst_59 = arith.constant dense<0.000000e+00> : vector<16x16xf32>
    %356 = tpu.matmul %354, %355, %cst_59 {dimension_numbers = #tpu.dot_dimension_numbers<[1], [1], [0], [0], [0, 0, 1, 0], [], []>} : vector<16x16xf32>, vector<16x16xf32>, vector<16x16xf32> -> vector<16x16xf32>
    %357 = arith.addf %356, %313 : vector<16x16xf32>
    %cst_60 = arith.constant dense<0xFF800000> : vector<16xf32>
    %358 = vector.multi_reduction <maximumf>, %357, %cst_60 [1] : vector<16x16xf32> to vector<16xf32>
    %359 = vector.shape_cast %358 : vector<16xf32> to vector<16x1xf32>
    %360 = vector.broadcast %359 : vector<16x1xf32> to vector<16x16xf32>
    %361 = arith.subf %357, %360 : vector<16x16xf32>
    %362 = math.exp %361 : vector<16x16xf32>
    %cst_61 = arith.constant dense<0.000000e+00> : vector<16xf32>
    %363 = vector.multi_reduction <add>, %362, %cst_61 [1] : vector<16x16xf32> to vector<16xf32>
    %364 = vector.shape_cast %363 : vector<16xf32> to vector<16x1xf32>
    %365 = vector.broadcast %364 : vector<16x1xf32> to vector<16x16xf32>
    %366 = arith.divf %362, %365 : vector<16x16xf32>
    %367 = vector.extract_strided_slice %323 {offsets = [0, 32], sizes = [16, 16], strides = [1, 1]} : vector<16x64xf32> to vector<16x16xf32>
    %cst_62 = arith.constant dense<0.000000e+00> : vector<16x16xf32>
    %368 = tpu.matmul %366, %367, %cst_62 {dimension_numbers = #tpu.dot_dimension_numbers<[1], [0], [0], [1], [0, 0, 1, 1], [], []>} : vector<16x16xf32>, vector<16x16xf32>, vector<16x16xf32> -> vector<16x16xf32>
    %369 = vector.extract_strided_slice %321 {offsets = [0, 48], sizes = [16, 16], strides = [1, 1]} : vector<16x64xf32> to vector<16x16xf32>
    %370 = vector.extract_strided_slice %322 {offsets = [0, 48], sizes = [16, 16], strides = [1, 1]} : vector<16x64xf32> to vector<16x16xf32>
    %cst_63 = arith.constant dense<0.000000e+00> : vector<16x16xf32>
    %371 = tpu.matmul %369, %370, %cst_63 {dimension_numbers = #tpu.dot_dimension_numbers<[1], [1], [0], [0], [0, 0, 1, 0], [], []>} : vector<16x16xf32>, vector<16x16xf32>, vector<16x16xf32> -> vector<16x16xf32>
    %372 = arith.addf %371, %313 : vector<16x16xf32>
    %cst_64 = arith.constant dense<0xFF800000> : vector<16xf32>
    %373 = vector.multi_reduction <maximumf>, %372, %cst_64 [1] : vector<16x16xf32> to vector<16xf32>
    %374 = vector.shape_cast %373 : vector<16xf32> to vector<16x1xf32>
    %375 = vector.broadcast %374 : vector<16x1xf32> to vector<16x16xf32>
    %376 = arith.subf %372, %375 : vector<16x16xf32>
    %377 = math.exp %376 : vector<16x16xf32>
    %cst_65 = arith.constant dense<0.000000e+00> : vector<16xf32>
    %378 = vector.multi_reduction <add>, %377, %cst_65 [1] : vector<16x16xf32> to vector<16xf32>
    %379 = vector.shape_cast %378 : vector<16xf32> to vector<16x1xf32>
    %380 = vector.broadcast %379 : vector<16x1xf32> to vector<16x16xf32>
    %381 = arith.divf %377, %380 : vector<16x16xf32>
    %382 = vector.extract_strided_slice %323 {offsets = [0, 48], sizes = [16, 16], strides = [1, 1]} : vector<16x64xf32> to vector<16x16xf32>
    %cst_66 = arith.constant dense<0.000000e+00> : vector<16x16xf32>
    %383 = tpu.matmul %381, %382, %cst_66 {dimension_numbers = #tpu.dot_dimension_numbers<[1], [0], [0], [1], [0, 0, 1, 1], [], []>} : vector<16x16xf32>, vector<16x16xf32>, vector<16x16xf32> -> vector<16x16xf32>
    %384 = tpu.concatenate %338, %353, %368, %383 in 1 : vector<16x16xf32>, vector<16x16xf32>, vector<16x16xf32>, vector<16x16xf32> -> vector<16x64xf32>
    %cst_67 = arith.constant dense<0.000000e+00> : vector<16x64xf32>
    %385 = tpu.matmul %384, %316, %cst_67 {dimension_numbers = #tpu.dot_dimension_numbers<[1], [0], [0], [1], [0, 0, 1, 1], [], []>} : vector<16x64xf32>, vector<64x64xf32>, vector<16x64xf32> -> vector<16x64xf32>
    %386 = vector.broadcast %317 : vector<1x64xf32> to vector<16x64xf32>
    %387 = arith.addf %385, %386 : vector<16x64xf32>
    %c0_68 = arith.constant 0 : index
    %c0_69 = arith.constant 0 : index
    %388 = vector.load %arg1[%c0_68, %c0_69] : memref<4x16xf32, #tpu.memory_space<vmem>>, vector<4x16xf32>
    %cst_70 = arith.constant dense<0.000000e+00> : vector<4x64xf32>
    %389 = tpu.matmul %388, %387, %cst_70 {dimension_numbers = #tpu.dot_dimension_numbers<[1], [0], [0], [1], [0, 0, 1, 1], [], []>} : vector<4x16xf32>, vector<16x64xf32>, vector<4x64xf32> -> vector<4x64xf32>
    %c0_71 = arith.constant 0 : index
    %c0_72 = arith.constant 0 : index
    %390 = vector.load %arg11[%c0_71, %c0_72] : memref<64x256xf32, #tpu.memory_space<vmem>>, vector<64x256xf32>
    %c0_73 = arith.constant 0 : index
    %c0_74 = arith.constant 0 : index
    %391 = vector.load %arg12[%c0_73, %c0_74] : memref<1x256xf32, #tpu.memory_space<vmem>>, vector<1x256xf32>
    %c0_75 = arith.constant 0 : index
    %c0_76 = arith.constant 0 : index
    %392 = vector.load %arg13[%c0_75, %c0_76] : memref<64x128xf32, #tpu.memory_space<vmem>>, vector<64x128xf32>
    %cst_77 = arith.constant dense<0.000000e+00> : vector<4x256xf32>
    %393 = tpu.matmul %389, %390, %cst_77 {dimension_numbers = #tpu.dot_dimension_numbers<[1], [0], [0], [1], [0, 0, 1, 1], [], []>} : vector<4x64xf32>, vector<64x256xf32>, vector<4x256xf32> -> vector<4x256xf32>
    %394 = vector.broadcast %391 : vector<1x256xf32> to vector<4x256xf32>
    %395 = arith.addf %393, %394 : vector<4x256xf32>
    %396 = tpu.iota {dimensions = array<i32: 0>} : vector<4x1xi32>
    %c2_i32_78 = arith.constant 2 : i32
    %397 = vector.broadcast %c2_i32_78 : i32 to vector<4x1xi32>
    %398 = arith.cmpi slt, %396, %397 : vector<4x1xi32>
    %399 = arith.extui %398 : vector<4x1xi1> to vector<4x1xi32>
    %400 = arith.sitofp %399 : vector<4x1xi32> to vector<4x1xf32>
    %cst_79 = arith.constant 1.000000e+00 : f32
    %401 = vector.broadcast %cst_79 : f32 to vector<4x1xf32>
    %402 = arith.subf %401, %400 : vector<4x1xf32>
    %cst_80 = arith.constant 0.000000e+00 : f32
    %403 = vector.broadcast %cst_80 : f32 to vector<4x32xf32>
    %404 = vector.extract_strided_slice %395 {offsets = [0, 0], sizes = [2, 128], strides = [1, 1]} : vector<4x256xf32> to vector<2x128xf32>
    %405 = vector.extract_strided_slice %395 {offsets = [2, 128], sizes = [2, 128], strides = [1, 1]} : vector<4x256xf32> to vector<2x128xf32>
    %406 = tpu.concatenate %404, %405 in 0 : vector<2x128xf32>, vector<2x128xf32> -> vector<4x128xf32>
    %407 = vector.extract_strided_slice %406 {offsets = [0, 0], sizes = [4, 32], strides = [1, 1]} : vector<4x128xf32> to vector<4x32xf32>
    %408 = arith.negf %407 : vector<4x32xf32>
    %409 = math.exp %408 : vector<4x32xf32>
    %cst_81 = arith.constant 1.000000e+00 : f32
    %410 = vector.broadcast %cst_81 : f32 to vector<4x32xf32>
    %411 = arith.addf %410, %409 : vector<4x32xf32>
    %412 = arith.divf %410, %411 : vector<4x32xf32>
    %413 = vector.extract_strided_slice %406 {offsets = [0, 32], sizes = [4, 32], strides = [1, 1]} : vector<4x128xf32> to vector<4x32xf32>
    %414 = arith.negf %413 : vector<4x32xf32>
    %415 = math.exp %414 : vector<4x32xf32>
    %cst_82 = arith.constant 1.000000e+00 : f32
    %416 = vector.broadcast %cst_82 : f32 to vector<4x32xf32>
    %417 = arith.addf %416, %415 : vector<4x32xf32>
    %418 = arith.divf %416, %417 : vector<4x32xf32>
    %419 = vector.extract_strided_slice %406 {offsets = [0, 64], sizes = [4, 32], strides = [1, 1]} : vector<4x128xf32> to vector<4x32xf32>
    %420 = math.tanh %419 : vector<4x32xf32>
    %421 = vector.extract_strided_slice %406 {offsets = [0, 96], sizes = [4, 32], strides = [1, 1]} : vector<4x128xf32> to vector<4x32xf32>
    %422 = arith.negf %421 : vector<4x32xf32>
    %423 = math.exp %422 : vector<4x32xf32>
    %cst_83 = arith.constant 1.000000e+00 : f32
    %424 = vector.broadcast %cst_83 : f32 to vector<4x32xf32>
    %425 = arith.addf %424, %423 : vector<4x32xf32>
    %426 = arith.divf %424, %425 : vector<4x32xf32>
    %427 = arith.mulf %418, %403 : vector<4x32xf32>
    %428 = arith.mulf %412, %420 : vector<4x32xf32>
    %429 = arith.addf %427, %428 : vector<4x32xf32>
    %430 = math.tanh %429 : vector<4x32xf32>
    %431 = arith.mulf %426, %430 : vector<4x32xf32>
    %432 = vector.broadcast %400 : vector<4x1xf32> to vector<4x32xf32>
    %433 = arith.mulf %431, %432 : vector<4x32xf32>
    %434 = vector.broadcast %402 : vector<4x1xf32> to vector<4x32xf32>
    %435 = arith.mulf %431, %434 : vector<4x32xf32>
    %436 = tpu.concatenate %433, %435 in 1 : vector<4x32xf32>, vector<4x32xf32> -> vector<4x64xf32>
    %437 = vector.extract_strided_slice %431 {offsets = [0, 0], sizes = [2, 32], strides = [1, 1]} : vector<4x32xf32> to vector<2x32xf32>
    %438 = vector.extract_strided_slice %431 {offsets = [2, 0], sizes = [2, 32], strides = [1, 1]} : vector<4x32xf32> to vector<2x32xf32>
    %439 = vector.extract_strided_slice %395 {offsets = [2, 0], sizes = [2, 128], strides = [1, 1]} : vector<4x256xf32> to vector<2x128xf32>
    %440 = vector.extract_strided_slice %395 {offsets = [0, 128], sizes = [2, 128], strides = [1, 1]} : vector<4x256xf32> to vector<2x128xf32>
    %441 = tpu.concatenate %439, %440 in 0 : vector<2x128xf32>, vector<2x128xf32> -> vector<4x128xf32>
    %cst_84 = arith.constant dense<0.000000e+00> : vector<4x128xf32>
    %442 = tpu.matmul %436, %392, %cst_84 {dimension_numbers = #tpu.dot_dimension_numbers<[1], [0], [0], [1], [0, 0, 1, 1], [], []>} : vector<4x64xf32>, vector<64x128xf32>, vector<4x128xf32> -> vector<4x128xf32>
    %443 = arith.addf %442, %441 : vector<4x128xf32>
    %444 = vector.extract_strided_slice %443 {offsets = [0, 0], sizes = [4, 32], strides = [1, 1]} : vector<4x128xf32> to vector<4x32xf32>
    %445 = arith.negf %444 : vector<4x32xf32>
    %446 = math.exp %445 : vector<4x32xf32>
    %cst_85 = arith.constant 1.000000e+00 : f32
    %447 = vector.broadcast %cst_85 : f32 to vector<4x32xf32>
    %448 = arith.addf %447, %446 : vector<4x32xf32>
    %449 = arith.divf %447, %448 : vector<4x32xf32>
    %450 = vector.extract_strided_slice %443 {offsets = [0, 32], sizes = [4, 32], strides = [1, 1]} : vector<4x128xf32> to vector<4x32xf32>
    %451 = arith.negf %450 : vector<4x32xf32>
    %452 = math.exp %451 : vector<4x32xf32>
    %cst_86 = arith.constant 1.000000e+00 : f32
    %453 = vector.broadcast %cst_86 : f32 to vector<4x32xf32>
    %454 = arith.addf %453, %452 : vector<4x32xf32>
    %455 = arith.divf %453, %454 : vector<4x32xf32>
    %456 = vector.extract_strided_slice %443 {offsets = [0, 64], sizes = [4, 32], strides = [1, 1]} : vector<4x128xf32> to vector<4x32xf32>
    %457 = math.tanh %456 : vector<4x32xf32>
    %458 = vector.extract_strided_slice %443 {offsets = [0, 96], sizes = [4, 32], strides = [1, 1]} : vector<4x128xf32> to vector<4x32xf32>
    %459 = arith.negf %458 : vector<4x32xf32>
    %460 = math.exp %459 : vector<4x32xf32>
    %cst_87 = arith.constant 1.000000e+00 : f32
    %461 = vector.broadcast %cst_87 : f32 to vector<4x32xf32>
    %462 = arith.addf %461, %460 : vector<4x32xf32>
    %463 = arith.divf %461, %462 : vector<4x32xf32>
    %464 = arith.mulf %455, %429 : vector<4x32xf32>
    %465 = arith.mulf %449, %457 : vector<4x32xf32>
    %466 = arith.addf %464, %465 : vector<4x32xf32>
    %467 = math.tanh %466 : vector<4x32xf32>
    %468 = arith.mulf %463, %467 : vector<4x32xf32>
    %469 = vector.extract_strided_slice %468 {offsets = [0, 0], sizes = [2, 32], strides = [1, 1]} : vector<4x32xf32> to vector<2x32xf32>
    %470 = vector.extract_strided_slice %468 {offsets = [2, 0], sizes = [2, 32], strides = [1, 1]} : vector<4x32xf32> to vector<2x32xf32>
    %471 = tpu.concatenate %437, %470 in 1 : vector<2x32xf32>, vector<2x32xf32> -> vector<2x64xf32>
    %472 = tpu.concatenate %469, %438 in 1 : vector<2x32xf32>, vector<2x32xf32> -> vector<2x64xf32>
    %473 = tpu.concatenate %471, %472 in 0 : vector<2x64xf32>, vector<2x64xf32> -> vector<4x64xf32>
    %c0_88 = arith.constant 0 : index
    %c0_89 = arith.constant 0 : index
    %474 = vector.load %arg3[%c0_88, %c0_89] : memref<4x4xf32, #tpu.memory_space<vmem>>, vector<4x4xf32>
    %c0_90 = arith.constant 0 : index
    %c0_91 = arith.constant 0 : index
    %475 = vector.load %arg14[%c0_90, %c0_91] : memref<64x192xf32, #tpu.memory_space<vmem>>, vector<64x192xf32>
    %c0_92 = arith.constant 0 : index
    %c0_93 = arith.constant 0 : index
    %476 = vector.load %arg15[%c0_92, %c0_93] : memref<1x192xf32, #tpu.memory_space<vmem>>, vector<1x192xf32>
    %c0_94 = arith.constant 0 : index
    %c0_95 = arith.constant 0 : index
    %477 = vector.load %arg16[%c0_94, %c0_95] : memref<64x64xf32, #tpu.memory_space<vmem>>, vector<64x64xf32>
    %c0_96 = arith.constant 0 : index
    %c0_97 = arith.constant 0 : index
    %478 = vector.load %arg17[%c0_96, %c0_97] : memref<1x64xf32, #tpu.memory_space<vmem>>, vector<1x64xf32>
    %cst_98 = arith.constant dense<0.000000e+00> : vector<4x192xf32>
    %479 = tpu.matmul %473, %475, %cst_98 {dimension_numbers = #tpu.dot_dimension_numbers<[1], [0], [0], [1], [0, 0, 1, 1], [], []>} : vector<4x64xf32>, vector<64x192xf32>, vector<4x192xf32> -> vector<4x192xf32>
    %480 = vector.broadcast %476 : vector<1x192xf32> to vector<4x192xf32>
    %481 = arith.addf %479, %480 : vector<4x192xf32>
    %482 = vector.extract_strided_slice %481 {offsets = [0, 0], sizes = [4, 64], strides = [1, 1]} : vector<4x192xf32> to vector<4x64xf32>
    %483 = vector.extract_strided_slice %481 {offsets = [0, 64], sizes = [4, 64], strides = [1, 1]} : vector<4x192xf32> to vector<4x64xf32>
    %484 = vector.extract_strided_slice %481 {offsets = [0, 128], sizes = [4, 64], strides = [1, 1]} : vector<4x192xf32> to vector<4x64xf32>
    %485 = vector.extract_strided_slice %482 {offsets = [0, 0], sizes = [4, 16], strides = [1, 1]} : vector<4x64xf32> to vector<4x16xf32>
    %486 = vector.extract_strided_slice %483 {offsets = [0, 0], sizes = [4, 16], strides = [1, 1]} : vector<4x64xf32> to vector<4x16xf32>
    %cst_99 = arith.constant dense<0.000000e+00> : vector<4x4xf32>
    %487 = tpu.matmul %485, %486, %cst_99 {dimension_numbers = #tpu.dot_dimension_numbers<[1], [1], [0], [0], [0, 0, 1, 0], [], []>} : vector<4x16xf32>, vector<4x16xf32>, vector<4x4xf32> -> vector<4x4xf32>
    %488 = arith.addf %487, %474 : vector<4x4xf32>
    %cst_100 = arith.constant dense<0xFF800000> : vector<4xf32>
    %489 = vector.multi_reduction <maximumf>, %488, %cst_100 [1] : vector<4x4xf32> to vector<4xf32>
    %490 = vector.shape_cast %489 : vector<4xf32> to vector<4x1xf32>
    %491 = vector.broadcast %490 : vector<4x1xf32> to vector<4x4xf32>
    %492 = arith.subf %488, %491 : vector<4x4xf32>
    %493 = math.exp %492 : vector<4x4xf32>
    %cst_101 = arith.constant dense<0.000000e+00> : vector<4xf32>
    %494 = vector.multi_reduction <add>, %493, %cst_101 [1] : vector<4x4xf32> to vector<4xf32>
    %495 = vector.shape_cast %494 : vector<4xf32> to vector<4x1xf32>
    %496 = vector.broadcast %495 : vector<4x1xf32> to vector<4x4xf32>
    %497 = arith.divf %493, %496 : vector<4x4xf32>
    %498 = vector.extract_strided_slice %484 {offsets = [0, 0], sizes = [4, 16], strides = [1, 1]} : vector<4x64xf32> to vector<4x16xf32>
    %cst_102 = arith.constant dense<0.000000e+00> : vector<4x16xf32>
    %499 = tpu.matmul %497, %498, %cst_102 {dimension_numbers = #tpu.dot_dimension_numbers<[1], [0], [0], [1], [0, 0, 1, 1], [], []>} : vector<4x4xf32>, vector<4x16xf32>, vector<4x16xf32> -> vector<4x16xf32>
    %500 = vector.extract_strided_slice %482 {offsets = [0, 16], sizes = [4, 16], strides = [1, 1]} : vector<4x64xf32> to vector<4x16xf32>
    %501 = vector.extract_strided_slice %483 {offsets = [0, 16], sizes = [4, 16], strides = [1, 1]} : vector<4x64xf32> to vector<4x16xf32>
    %cst_103 = arith.constant dense<0.000000e+00> : vector<4x4xf32>
    %502 = tpu.matmul %500, %501, %cst_103 {dimension_numbers = #tpu.dot_dimension_numbers<[1], [1], [0], [0], [0, 0, 1, 0], [], []>} : vector<4x16xf32>, vector<4x16xf32>, vector<4x4xf32> -> vector<4x4xf32>
    %503 = arith.addf %502, %474 : vector<4x4xf32>
    %cst_104 = arith.constant dense<0xFF800000> : vector<4xf32>
    %504 = vector.multi_reduction <maximumf>, %503, %cst_104 [1] : vector<4x4xf32> to vector<4xf32>
    %505 = vector.shape_cast %504 : vector<4xf32> to vector<4x1xf32>
    %506 = vector.broadcast %505 : vector<4x1xf32> to vector<4x4xf32>
    %507 = arith.subf %503, %506 : vector<4x4xf32>
    %508 = math.exp %507 : vector<4x4xf32>
    %cst_105 = arith.constant dense<0.000000e+00> : vector<4xf32>
    %509 = vector.multi_reduction <add>, %508, %cst_105 [1] : vector<4x4xf32> to vector<4xf32>
    %510 = vector.shape_cast %509 : vector<4xf32> to vector<4x1xf32>
    %511 = vector.broadcast %510 : vector<4x1xf32> to vector<4x4xf32>
    %512 = arith.divf %508, %511 : vector<4x4xf32>
    %513 = vector.extract_strided_slice %484 {offsets = [0, 16], sizes = [4, 16], strides = [1, 1]} : vector<4x64xf32> to vector<4x16xf32>
    %cst_106 = arith.constant dense<0.000000e+00> : vector<4x16xf32>
    %514 = tpu.matmul %512, %513, %cst_106 {dimension_numbers = #tpu.dot_dimension_numbers<[1], [0], [0], [1], [0, 0, 1, 1], [], []>} : vector<4x4xf32>, vector<4x16xf32>, vector<4x16xf32> -> vector<4x16xf32>
    %515 = vector.extract_strided_slice %482 {offsets = [0, 32], sizes = [4, 16], strides = [1, 1]} : vector<4x64xf32> to vector<4x16xf32>
    %516 = vector.extract_strided_slice %483 {offsets = [0, 32], sizes = [4, 16], strides = [1, 1]} : vector<4x64xf32> to vector<4x16xf32>
    %cst_107 = arith.constant dense<0.000000e+00> : vector<4x4xf32>
    %517 = tpu.matmul %515, %516, %cst_107 {dimension_numbers = #tpu.dot_dimension_numbers<[1], [1], [0], [0], [0, 0, 1, 0], [], []>} : vector<4x16xf32>, vector<4x16xf32>, vector<4x4xf32> -> vector<4x4xf32>
    %518 = arith.addf %517, %474 : vector<4x4xf32>
    %cst_108 = arith.constant dense<0xFF800000> : vector<4xf32>
    %519 = vector.multi_reduction <maximumf>, %518, %cst_108 [1] : vector<4x4xf32> to vector<4xf32>
    %520 = vector.shape_cast %519 : vector<4xf32> to vector<4x1xf32>
    %521 = vector.broadcast %520 : vector<4x1xf32> to vector<4x4xf32>
    %522 = arith.subf %518, %521 : vector<4x4xf32>
    %523 = math.exp %522 : vector<4x4xf32>
    %cst_109 = arith.constant dense<0.000000e+00> : vector<4xf32>
    %524 = vector.multi_reduction <add>, %523, %cst_109 [1] : vector<4x4xf32> to vector<4xf32>
    %525 = vector.shape_cast %524 : vector<4xf32> to vector<4x1xf32>
    %526 = vector.broadcast %525 : vector<4x1xf32> to vector<4x4xf32>
    %527 = arith.divf %523, %526 : vector<4x4xf32>
    %528 = vector.extract_strided_slice %484 {offsets = [0, 32], sizes = [4, 16], strides = [1, 1]} : vector<4x64xf32> to vector<4x16xf32>
    %cst_110 = arith.constant dense<0.000000e+00> : vector<4x16xf32>
    %529 = tpu.matmul %527, %528, %cst_110 {dimension_numbers = #tpu.dot_dimension_numbers<[1], [0], [0], [1], [0, 0, 1, 1], [], []>} : vector<4x4xf32>, vector<4x16xf32>, vector<4x16xf32> -> vector<4x16xf32>
    %530 = vector.extract_strided_slice %482 {offsets = [0, 48], sizes = [4, 16], strides = [1, 1]} : vector<4x64xf32> to vector<4x16xf32>
    %531 = vector.extract_strided_slice %483 {offsets = [0, 48], sizes = [4, 16], strides = [1, 1]} : vector<4x64xf32> to vector<4x16xf32>
    %cst_111 = arith.constant dense<0.000000e+00> : vector<4x4xf32>
    %532 = tpu.matmul %530, %531, %cst_111 {dimension_numbers = #tpu.dot_dimension_numbers<[1], [1], [0], [0], [0, 0, 1, 0], [], []>} : vector<4x16xf32>, vector<4x16xf32>, vector<4x4xf32> -> vector<4x4xf32>
    %533 = arith.addf %532, %474 : vector<4x4xf32>
    %cst_112 = arith.constant dense<0xFF800000> : vector<4xf32>
    %534 = vector.multi_reduction <maximumf>, %533, %cst_112 [1] : vector<4x4xf32> to vector<4xf32>
    %535 = vector.shape_cast %534 : vector<4xf32> to vector<4x1xf32>
    %536 = vector.broadcast %535 : vector<4x1xf32> to vector<4x4xf32>
    %537 = arith.subf %533, %536 : vector<4x4xf32>
    %538 = math.exp %537 : vector<4x4xf32>
    %cst_113 = arith.constant dense<0.000000e+00> : vector<4xf32>
    %539 = vector.multi_reduction <add>, %538, %cst_113 [1] : vector<4x4xf32> to vector<4xf32>
    %540 = vector.shape_cast %539 : vector<4xf32> to vector<4x1xf32>
    %541 = vector.broadcast %540 : vector<4x1xf32> to vector<4x4xf32>
    %542 = arith.divf %538, %541 : vector<4x4xf32>
    %543 = vector.extract_strided_slice %484 {offsets = [0, 48], sizes = [4, 16], strides = [1, 1]} : vector<4x64xf32> to vector<4x16xf32>
    %cst_114 = arith.constant dense<0.000000e+00> : vector<4x16xf32>
    %544 = tpu.matmul %542, %543, %cst_114 {dimension_numbers = #tpu.dot_dimension_numbers<[1], [0], [0], [1], [0, 0, 1, 1], [], []>} : vector<4x4xf32>, vector<4x16xf32>, vector<4x16xf32> -> vector<4x16xf32>
    %545 = tpu.concatenate %499, %514, %529, %544 in 1 : vector<4x16xf32>, vector<4x16xf32>, vector<4x16xf32>, vector<4x16xf32> -> vector<4x64xf32>
    %cst_115 = arith.constant dense<0.000000e+00> : vector<4x64xf32>
    %546 = tpu.matmul %545, %477, %cst_115 {dimension_numbers = #tpu.dot_dimension_numbers<[1], [0], [0], [1], [0, 0, 1, 1], [], []>} : vector<4x64xf32>, vector<64x64xf32>, vector<4x64xf32> -> vector<4x64xf32>
    %547 = vector.broadcast %478 : vector<1x64xf32> to vector<4x64xf32>
    %548 = arith.addf %546, %547 : vector<4x64xf32>
    %549 = vector.extract_strided_slice %548 {offsets = [2, 0], sizes = [2, 64], strides = [1, 1]} : vector<4x64xf32> to vector<2x64xf32>
    %c0_116 = arith.constant 0 : index
    %c0_117 = arith.constant 0 : index
    %550 = vector.load %arg18[%c0_116, %c0_117] : memref<64x1xf32, #tpu.memory_space<vmem>>, vector<64x1xf32>
    %cst_118 = arith.constant dense<0.000000e+00> : vector<2x1xf32>
    %551 = tpu.matmul %549, %550, %cst_118 {dimension_numbers = #tpu.dot_dimension_numbers<[1], [0], [0], [1], [0, 0, 1, 1], [], []>} : vector<2x64xf32>, vector<64x1xf32>, vector<2x1xf32> -> vector<2x1xf32>
    %c0_119 = arith.constant 0 : index
    %c0_120 = arith.constant 0 : index
    %552 = vector.load %arg19[%c0_119, %c0_120] : memref<1x1xf32, #tpu.memory_space<vmem>>, vector<1x1xf32>
    %553 = vector.broadcast %552 : vector<1x1xf32> to vector<2x1xf32>
    %554 = arith.addf %551, %553 : vector<2x1xf32>
    %c0_121 = arith.constant 0 : index
    %c0_122 = arith.constant 0 : index
    %555 = vector.load %arg20[%c0_121, %c0_122] : memref<2x1xf32, #tpu.memory_space<vmem>>, vector<2x1xf32>
    tpu.vector_store %arg20[%c0_121, %c0_122], %554 {strides = array<i32>} : memref<2x1xf32, #tpu.memory_space<vmem>>, vector<2x1xf32>,
    return
  }
}

</mosaic_0001>

<bundles_post_ra>
// kernel: fused_forward.1
= control target key start
LH: loop header
LB: loop body
LE: loop exit
PB: predicated region body
PF: predicated region fallthrough
CT: control target
= control target key end

     0   :  { %vm87_vm0 = vcmask 130048   ;;  %vm149_vm1 = vcmask 1041408   ;;  %s2387_s24 = smov 32   ;;  %v140_v57 = vlaneseq  ;;  %v2388_v59 = vmov 0.0   ;;  %s2389_s25 = smov 112   ;;  %s3247_s4 = inlined_call_operand.vmem [shape: f32[16,256], index: 4, kind: input, shape index: {}]   ;;  %s3248_s0 = inlined_call_operand.vmem [shape: f32[16,16], index: 0, kind: input, shape index: {}]   ;;  %s3249_s5 = inlined_call_operand.vmem [shape: f32[1,256], index: 5, kind: input, shape index: {}]   ;;  %s3250_s6 = inlined_call_operand.vmem [shape: f32[64,128], index: 6, kind: input, shape index: {}]   ;;  %s3251_s7 = inlined_call_operand.vmem [shape: f32[64,192], index: 7, kind: input, shape index: {}]   ;;  %s3252_s8 = inlined_call_operand.vmem [shape: f32[1,192], index: 8, kind: input, shape index: {}]   ;;  %s3253_s2 = inlined_call_operand.vmem [shape: f32[16,16], index: 2, kind: input, shape index: {}]   ;;  %s3254_s10 = inlined_call_operand.vmem [shape: f32[1,64], index: 10, kind: input, shape index: {}]   ;;  %s3255_s9 = inlined_call_operand.vmem [shape: f32[64,64], index: 9, kind: input, shape index: {}]   ;;  %s3256_s11 = inlined_call_operand.vmem [shape: f32[64,256], index: 11, kind: input, shape index: {}]   ;;  %s3257_s1 = inlined_call_operand.vmem [shape: f32[4,16], index: 1, kind: input, shape index: {}]   ;;  %s3258_s12 = inlined_call_operand.vmem [shape: f32[1,256], index: 12, kind: input, shape index: {}]   ;;  %s3259_s13 = inlined_call_operand.vmem [shape: f32[64,128], index: 13, kind: input, shape index: {}]   ;;  %s3260_s14 = inlined_call_operand.vmem [shape: f32[64,192], index: 14, kind: input, shape index: {}]   ;;  %s3261_s15 = inlined_call_operand.vmem [shape: f32[1,192], index: 15, kind: input, shape index: {}]   ;;  %s3262_s3 = inlined_call_operand.vmem [shape: f32[4,4], index: 3, kind: input, shape index: {}]   ;;  %s3263_s16 = inlined_call_operand.vmem [shape: f32[64,64], index: 16, kind: input, shape index: {}]   ;;  %s3264_s17 = inlined_call_operand.vmem [shape: f32[1,64], index: 17, kind: input, shape index: {}]   ;;  %s3265_s18 = inlined_call_operand.vmem [shape: f32[64,1], index: 18, kind: input, shape index: {}]   ;;  %s3266_s19 = inlined_call_operand.<no memory space> [shape: f32[1,1], index: 19, kind: input, shape index: {}]   ;;  %s3267_s20 = inlined_call_operand.vmem [shape: f32[2,1], index: 20, kind: output, shape index: {}]  }
   0x1   :  { %3272 = sst [smem:[#allocation3_spill]] %s3247_s4  ;;  %vm198_vm7 = vcmask 261120   ;;  %vm206_vm8 = vcmask 523264   ;;  %s2393_s30 = smov 96  }
   0x2   :  { %3273 = sst [smem:[#allocation4_spill]] %s3248_s0  ;;  %v141_v58 = vshrl.u32 %v140_v57, 7 }
   0x3   :  { %3274 = sst [smem:[#allocation5_spill]] %s3249_s5 }
   0x4   :  { %3275 = sst [smem:[#allocation6_spill]] %s3250_s6  ;;  %vm142_vm6 = vcmp.lt.s32.totalorder %v141_v58, 2 }
   0x5   :  { %3276 = sst [smem:[#allocation7_spill]] %s3251_s7  ;;  %v2552_v60 = vsel %vm142_vm6, 1.0, %v2388_v59 }
   0x6   :  { %s3277_s23 = sld [smem:[#allocation3_spill]]  ;;  %v2555_v61 = vsub.f32 1.0, %v2552_v60 }
   0x7   :  { %s3278_s29 = sld [smem:[#allocation4_spill]] }
   0x8   :  { %s3279_s22 = sld [smem:[#allocation5_spill]] }
   0x9   :  { %s3280_s6 = sld [smem:[#allocation6_spill]] }
   0xa   :  { %s3281_s7 = sld [smem:[#allocation7_spill]] }
   0xc   :  { %v71_v0 = vld [vmem:[%s3277_s23 + $0x10] sm:$0xff]  ;;  %v72_v1 = vld [vmem:[%s3277_s23 + $0x18] sm:$0xff]  ;;  %v69_v2 = vld [vmem:[%s3277_s23] sm:$0xff] }
   0xd   :  { %108 = vmatpush.msra.mxu2 %v71_v0  ;;  %131 = vmatpush.msra.mxu3 %v72_v1  ;;  %v70_v3 = vld [vmem:[%s3277_s23 + $0x8] sm:$0xff]  ;;  %v67_v4 = vld [vmem:[%s3278_s29] sm:$0xff]  ;;  %s2386_s23 = smov 64  }
   0xe   :  { %v68_v5 = vld [vmem:[%s3278_s29 + $0x8] sm:$0xff]  ;;  %v73_v6 = vld [vmem:[%s3279_s22] sm:$0x3]  ;;  %s2391_s29 = smov 48  }
   0xf   :  { %109 = vmatpush.msra.mxu2 %v69_v2  ;;  %132 = vmatpush.msra.mxu3 %v70_v3  ;;  %v84_v7 = vperm.slane %v73_v6, 1  ;;  %v83_v8 = vperm.slane %v73_v6, 0  ;;  %v81_v2 = vld [vmem:[%s3280_s6 + $0x38] sm:$0xff]  ;;  %v80_v3 = vld [vmem:[%s3280_s6 + $0x30] sm:$0xff] }
  0x10   :  { %2156 = vmatmul.msk.f32.vlgmr.msra.gmra.mxu2 %vm87_vm0, %v67_v4  ;;  %2158 = vmatmul.msk.f32.vlgmr.msra.gmra.mxu3 %vm87_vm0, %v67_v4  ;;  %v79_v4 = vld [vmem:[%s3280_s6 + $0x28] sm:$0xff]  ;;  %v77_v6 = vld [vmem:[%s3280_s6 + $0x18] sm:$0xff] }
  0x11   :  { %218 = vmatpush.msrb.mxu2 %v81_v2  ;;  %292 = vmatpush.msrb.mxu3 %v81_v2 }
  0x12   :  { %368 = vmatpush.msra.mxu0 %v81_v2  ;;  %443 = vmatpush.msra.mxu1 %v81_v2 }
  0x13   :  { %219 = vmatpush.msrb.mxu2 %v80_v3  ;;  %293 = vmatpush.msrb.mxu3 %v80_v3 }
  0x14   :  { %369 = vmatpush.msra.mxu0 %v80_v3  ;;  %444 = vmatpush.msra.mxu1 %v80_v3 }
  0x15   :  { %220 = vmatpush.msrb.mxu2 %v79_v4  ;;  %294 = vmatpush.msrb.mxu3 %v79_v4 }
  0x16   :  { %370 = vmatpush.msra.mxu0 %v79_v4  ;;  %445 = vmatpush.msra.mxu1 %v79_v4 }
  0x18   :  { %2157 = vmatmul.msk.f32.gmra.mxu2 %vm87_vm0, %v68_v5  ;;  %2159 = vmatmul.msk.f32.gmra.mxu3 %vm87_vm0, %v68_v5  ;;  %v78_v5 = vld [vmem:[%s3280_s6 + $0x20] sm:$0xff] }
  0x19   :  { %221 = vmatpush.msrb.mxu2 %v78_v5  ;;  %295 = vmatpush.msrb.mxu3 %v78_v5 }
  0x1a   :  { %371 = vmatpush.msra.mxu0 %v78_v5  ;;  %446 = vmatpush.msra.mxu1 %v78_v5 }
  0x1b   :  { %222 = vmatpush.msrb.mxu2 %v77_v6  ;;  %296 = vmatpush.msrb.mxu3 %v77_v6 }
  0x1c   :  { %372 = vmatpush.msra.mxu0 %v77_v6  ;;  %447 = vmatpush.msra.mxu1 %v77_v6 }
  0x93   :  { %v111_v9 = vpop.f32.mrf.mxu2  ;;  %v134_v10 = vpop.f32.mrf.mxu3 }
  0x94   :  { %v135_v11 = vadd.f32 %v134_v10, %v84_v7  ;;  %v112_v12 = vadd.f32 %v111_v9, %v83_v8  ;;  %v74_v9 = vld [vmem:[%s3280_s6] sm:$0xff] }
  0x96   :  { %v278_v13 = vrot.slane %v112_v12, 4  ;;  %v201_v18 = vrot.slane %v112_v12, 2  ;;  %v352_v19 = vrot.slane %v112_v12, 6  ;;  %v429_v20 = vrot.slane %v135_v11, 4 }
  0x97   :  { %v506_v21 = vrot.slane %v135_v11, 2  ;;  %v656_v33 = vrot.slane %v135_v11, 6 }
  0x9b   :  { %v114_v14 = vpop.f32.mrf.mxu2  ;;  %v137_v15 = vpop.f32.mrf.mxu3 }
  0x9c   :  { %v115_v16 = vadd.f32 %v114_v14, %v83_v8  ;;  %v138_v17 = vadd.f32 %v137_v15, %v84_v7  ;;  %v76_v7 = vld [vmem:[%s3280_s6 + $0x10] sm:$0xff]  ;;  %v75_v8 = vld [vmem:[%s3280_s6 + $0x8] sm:$0xff] }
  0x9d   :  { %223 = vmatpush.msrb.mxu2 %v76_v7  ;;  %297 = vmatpush.msrb.mxu3 %v76_v7 }
  0x9e   :  { %v147_v22 = vrot.slane %v138_v17, 4  ;;  %v203_v23 = vrot.slane %v138_v17, 2  ;;  %v2525_v24 = vsel %vm149_vm1, %v278_v13, %v138_v17  ;;  %v354_v25 = vrot.slane %v138_v17, 6  ;;  %373 = vmatpush.msra.mxu0 %v76_v7  ;;  %448 = vmatpush.msra.mxu1 %v76_v7 }
  0x9f   :  { %v2528_v26 = vsel %vm149_vm1, %v115_v16, %v429_v20  ;;  %v504_v27 = vrot.slane %v115_v16, 2  ;;  %v580_v28 = vrot.slane %v115_v16, 4  ;;  %v654_v29 = vrot.slane %v115_v16, 6  ;;  %224 = vmatpush.msrb.mxu2 %v75_v8  ;;  %298 = vmatpush.msrb.mxu3 %v75_v8 }
  0xa0   :  { %v150_v30 = vsel %vm149_vm1, %v112_v12, %v147_v22  ;;  %v2532_v31 = vsel %vm149_vm1, %v201_v18, %v203_v23  ;;  %v2535_v32 = vsel %vm149_vm1, %v352_v19, %v354_v25  ;;  %374 = vmatpush.msra.mxu0 %v75_v8  ;;  %449 = vmatpush.msra.mxu1 %v75_v8 }
  0xa1   :  { %2258 = vtanh.f32 %v150_v30  ;;  %v2538_v34 = vsel %vm149_vm1, %v504_v27, %v506_v21  ;;  %v2541_v35 = vsel %vm149_vm1, %v580_v28, %v135_v11  ;;  %v2544_v36 = vsel %vm149_vm1, %v654_v29, %v656_v33  ;;  %225 = vmatpush.msrb.mxu2 %v74_v9  ;;  %299 = vmatpush.msrb.mxu3 %v74_v9 }
  0xa2   :  { %v2161_v38 = vmul.f32 -1.442695, %v150_v30  ;;  %375 = vmatpush.msra.mxu0 %v74_v9  ;;  %450 = vmatpush.msra.mxu1 %v74_v9 }
  0xa3   :  { %520 = vmatpush.msra.mxu2 %v81_v2  ;;  %594 = vmatpush.msra.mxu3 %v81_v2 }
  0xa4   :  { %2260 = vpow2.f32 %v2161_v38  ;;  %670 = vmatpush.msrb.mxu0 %v81_v2 }
  0xa5   :  { %521 = vmatpush.msra.mxu2 %v80_v3  ;;  %595 = vmatpush.msra.mxu3 %v80_v3 }
  0xa6   :  { %671 = vmatpush.msrb.mxu0 %v80_v3 }
  0xa7   :  { %v2259_v37 = vpop.eup %2258  ;;  %522 = vmatpush.msra.mxu2 %v79_v4  ;;  %596 = vmatpush.msra.mxu3 %v79_v4 }
  0xa8   :  { %173 = vrot.lane.b32.xlu0 %v2259_v37, %s2386_s23  ;;  %672 = vmatpush.msrb.mxu0 %v79_v4 }
  0xa9   :  { %523 = vmatpush.msra.mxu2 %v78_v5  ;;  %597 = vmatpush.msra.mxu3 %v78_v5 }
  0xaa   :  { %v2261_v39 = vpop.eup %2260  ;;  %673 = vmatpush.msrb.mxu0 %v78_v5 }
  0xab   :  { %v154_v40 = vadd.f32 1.0, %v2261_v39  ;;  %524 = vmatpush.msra.mxu2 %v77_v6  ;;  %598 = vmatpush.msra.mxu3 %v77_v6 }
  0xac   :  { %674 = vmatpush.msrb.mxu0 %v77_v6 }
  0xad   :  { %2262 = vrcp.f32 %v154_v40  ;;  %v166_v46 = vand.u32 2147483648, %v154_v40  ;;  %vm160_vm3 = vweird.f32 %v154_v40  ;;  %v164_v47 = vand.u32 2147483647, %v154_v40  ;;  %525 = vmatpush.msra.mxu2 %v76_v7  ;;  %599 = vmatpush.msra.mxu3 %v76_v7 }
  0xae   :  { %675 = vmatpush.msrb.mxu0 %v76_v7 }
  0xaf   :  { %v167_v49 = vor.u32 1.1754944e-38, %v166_v46  ;;  %vm165_vm5 = vcmp.eq.f32.partialorder %v164_v47, 8.507059e+37  ;;  %526 = vmatpush.msra.mxu2 %v75_v8  ;;  %600 = vmatpush.msra.mxu3 %v75_v8 }
  0xb0   :  { %676 = vmatpush.msrb.mxu0 %v75_v8 }
  0xb1   :  { %527 = vmatpush.msra.mxu2 %v74_v9  ;;  %601 = vmatpush.msra.mxu3 %v74_v9 }
  0xb2   :  { %677 = vmatpush.msrb.mxu0 %v74_v9 }
  0xb3   :  { %v2263_v41 = vpop.eup %2262 }
  0xb4   :  { %v156_v42 = vmul.f32 %v2263_v41, %v154_v40  ;;  %vm161_vm2 = vweird.f32 %v2263_v41 }
  0xb5   :  { %vm162_vm4 = vmor %vm160_vm3, %vm161_vm2 }
  0xb6   :  { %v157_v43 = vsub.f32 1.0, %v156_v42 }
  0xb8   :  { %v158_v44 = vmul.f32 %v2263_v41, %v157_v43 }
  0xba   :  { %v159_v45 = vadd.f32 %v2263_v41, %v158_v44 }
  0xbc   :  { %v163_v48 = vsel %vm162_vm4, %v2263_v41, %v159_v45 }
  0xbd   :  { %v168_v51 = vsel %vm165_vm5, %v167_v49, %v163_v48 }
  0xbe   :  { %v171_v53 = vmul.f32 0.0, %v168_v51 }
 0x11a   :  { %v174_v50 = vpop.permute.xlu0 %173 }
 0x11b   :  { %v176_v52 = vmul.f32 %v174_v50, %v168_v51 }
 0x11d   :  { %178 = vrot.lane.b32.xlu0 %v176_v52, %s2387_s24 }
 0x18f   :  { %v179_v54 = vpop.permute.xlu0 %178 }
 0x190   :  { %v2548_v55 = vadd.f32 %v179_v54, %v171_v53 }
 0x192   :  { %2264 = vtanh.f32 %v2548_v55 }
 0x198   :  { %v2265_v56 = vpop.eup %2264 }
 0x199   :  { %184 = vrot.lane.b32.xlu1 %v2265_v56, %s2386_s23 }
 0x20b   :  { %v185_v62 = vpop.permute.xlu1 %184 }
 0x20c   :  { %v2557_v63 = vmul.f32 %v185_v62, %v168_v51 }
 0x20e   :  { %v189_v0 = vmul.f32 %v2557_v63, %v2555_v61  ;;  %v188_v1 = vmul.f32 %v2552_v60, %v2557_v63 }
 0x210   :  { %195 = vrot.lane.b32.xlu2 %v189_v0, %s2386_s23  ;;  %191 = vrot.lane.b32.xlu1 %v188_v1, %s2387_s24 }
 0x26a   :  { %v196_v10 = vpop.permute.xlu2 %195 }
 0x282   :  { %v192_v11 = vpop.permute.xlu1 %191 }
 0x283   :  { %v199_v12 = vsel %vm198_vm7, %v192_v11, %v196_v10 }
 0x284   :  { %2162 = vmatmul.msk.f32.vlgmr.msrb.gmra.mxu2 %vm206_vm8, %v199_v12 }
 0x307   :  { %v227_v13 = vpop.f32.mrf.mxu2 }
 0x308   :  { %v228_v14 = vadd.f32 %v227_v13, %v2532_v31 }
 0x30a   :  { %2266 = vtanh.f32 %v228_v14  ;;  %v2163_v16 = vmul.f32 -1.442695, %v228_v14 }
 0x30c   :  { %2268 = vpow2.f32 %v2163_v16 }
 0x310   :  { %v2267_v15 = vpop.eup %2266 }
 0x311   :  { %252 = vrot.lane.b32.xlu2 %v2267_v15, %s2386_s23 }
 0x312   :  { %v2269_v17 = vpop.eup %2268 }
 0x313   :  { %v233_v18 = vadd.f32 1.0, %v2269_v17 }
 0x315   :  { %2270 = vrcp.f32 %v233_v18  ;;  %v245_v25 = vand.u32 2147483648, %v233_v18  ;;  %vm239_vm10 = vweird.f32 %v233_v18  ;;  %v243_v27 = vand.u32 2147483647, %v233_v18 }
 0x317   :  { %v246_v29 = vor.u32 1.1754944e-38, %v245_v25  ;;  %vm244_vm12 = vcmp.eq.f32.partialorder %v243_v27, 8.507059e+37 }
 0x31b   :  { %v2271_v19 = vpop.eup %2270 }
 0x31c   :  { %v235_v20 = vmul.f32 %v2271_v19, %v233_v18  ;;  %vm240_vm9 = vweird.f32 %v2271_v19 }
 0x31d   :  { %vm241_vm11 = vmor %vm239_vm10, %vm240_vm9 }
 0x31e   :  { %v236_v21 = vsub.f32 1.0, %v235_v20 }
 0x320   :  { %v237_v22 = vmul.f32 %v2271_v19, %v236_v21 }
 0x322   :  { %v238_v23 = vadd.f32 %v2271_v19, %v237_v22 }
 0x324   :  { %v242_v28 = vsel %vm241_vm11, %v2271_v19, %v238_v23 }
 0x325   :  { %v247_v31 = vsel %vm244_vm12, %v246_v29, %v242_v28 }
 0x326   :  { %v250_v37 = vmul.f32 %v247_v31, %v2548_v55 }
 0x36b   :  { %v253_v30 = vpop.permute.xlu2 %252 }
 0x36c   :  { %v255_v33 = vmul.f32 %v253_v30, %v247_v31 }
 0x36e   :  { %257 = vrot.lane.b32.xlu0 %v255_v33, %s2387_s24 }
 0x3e0   :  { %v258_v38 = vpop.permute.xlu0 %257 }
 0x3e1   :  { %v260_v39 = vadd.f32 %v258_v38, %v250_v37 }
 0x3e3   :  { %2272 = vtanh.f32 %v260_v39 }
 0x3e9   :  { %v2273_v40 = vpop.eup %2272 }
 0x3ea   :  { %263 = vrot.lane.b32.xlu1 %v2273_v40, %s2386_s23 }
 0x45c   :  { %v264_v41 = vpop.permute.xlu1 %263 }
 0x45d   :  { %v2596_v42 = vmul.f32 %v264_v41, %v247_v31 }
 0x45f   :  { %v268_v43 = vmul.f32 %v2596_v42, %v2555_v61  ;;  %v267_v44 = vmul.f32 %v2552_v60, %v2596_v42 }
 0x461   :  { %274 = vrot.lane.b32.xlu0 %v268_v43, %s2386_s23  ;;  %270 = vrot.lane.b32.xlu2 %v267_v44, %s2387_s24 }
 0x4bb   :  { %v271_v45 = vpop.permute.xlu2 %270 }
 0x4d3   :  { %v275_v46 = vpop.permute.xlu0 %274 }
 0x4d4   :  { %v277_v47 = vsel %vm198_vm7, %v271_v45, %v275_v46 }
 0x4d5   :  { %2164 = vmatmul.msk.f32.vlgmr.msrb.gmra.mxu3 %vm206_vm8, %v277_v47 }
 0x558   :  { %v301_v48 = vpop.f32.mrf.mxu3 }
 0x559   :  { %v302_v49 = vadd.f32 %v301_v48, %v2525_v24 }
 0x55b   :  { %2274 = vtanh.f32 %v302_v49  ;;  %v2165_v51 = vmul.f32 -1.442695, %v302_v49 }
 0x55d   :  { %2276 = vpow2.f32 %v2165_v51 }
 0x561   :  { %v2275_v50 = vpop.eup %2274 }
 0x562   :  { %326 = vrot.lane.b32.xlu1 %v2275_v50, %s2386_s23 }
 0x563   :  { %v2277_v52 = vpop.eup %2276 }
 0x564   :  { %v307_v53 = vadd.f32 1.0, %v2277_v52 }
 0x566   :  { %2278 = vrcp.f32 %v307_v53  ;;  %v319_v59 = vand.u32 2147483648, %v307_v53  ;;  %vm313_vm14 = vweird.f32 %v307_v53  ;;  %v317_v62 = vand.u32 2147483647, %v307_v53 }
 0x568   :  { %v320_v0 = vor.u32 1.1754944e-38, %v319_v59  ;;  %vm318_vm2 = vcmp.eq.f32.partialorder %v317_v62, 8.507059e+37 }
 0x56c   :  { %v2279_v54 = vpop.eup %2278 }
 0x56d   :  { %v309_v55 = vmul.f32 %v2279_v54, %v307_v53  ;;  %vm314_vm13 = vweird.f32 %v2279_v54 }
 0x56e   :  { %vm315_vm15 = vmor %vm313_vm14, %vm314_vm13 }
 0x56f   :  { %v310_v56 = vsub.f32 1.0, %v309_v55 }
 0x571   :  { %v311_v57 = vmul.f32 %v2279_v54, %v310_v56 }
 0x573   :  { %v312_v58 = vadd.f32 %v2279_v54, %v311_v57 }
 0x575   :  { %v316_v24 = vsel %vm315_vm15, %v2279_v54, %v312_v58 }
 0x576   :  { %v321_v2 = vsel %vm318_vm2, %v320_v0, %v316_v24 }
 0x577   :  { %v324_v4 = vmul.f32 %v321_v2, %v260_v39 }
 0x5d4   :  { %v327_v1 = vpop.permute.xlu1 %326 }
 0x5d5   :  { %v329_v3 = vmul.f32 %v327_v1, %v321_v2 }
 0x5d7   :  { %331 = vrot.lane.b32.xlu2 %v329_v3, %s2387_s24 }
 0x631   :  { %v332_v5 = vpop.permute.xlu2 %331 }
 0x632   :  { %v334_v6 = vadd.f32 %v332_v5, %v324_v4 }
 0x634   :  { %2280 = vtanh.f32 %v334_v6 }
 0x63a   :  { %v2281_v7 = vpop.eup %2280 }
 0x63b   :  { %337 = vrot.lane.b32.xlu0 %v2281_v7, %s2386_s23 }
 0x6ad   :  { %v338_v8 = vpop.permute.xlu0 %337 }
 0x6ae   :  { %v2610_v9 = vmul.f32 %v338_v8, %v321_v2 }
 0x6b0   :  { %v342_v10 = vmul.f32 %v2610_v9, %v2555_v61  ;;  %v341_v11 = vmul.f32 %v2552_v60, %v2610_v9 }
 0x6b2   :  { %348 = vrot.lane.b32.xlu2 %v342_v10, %s2386_s23  ;;  %344 = vrot.lane.b32.xlu1 %v341_v11, %s2387_s24 }
 0x70c   :  { %v349_v12 = vpop.permute.xlu2 %348 }
 0x724   :  { %v345_v13 = vpop.permute.xlu1 %344 }
 0x725   :  { %v351_v14 = vsel %vm198_vm7, %v345_v13, %v349_v12 }
 0x726   :  { %2166 = vmatmul.msk.f32.vlgmr.msra.gmra.mxu0 %vm206_vm8, %v351_v14 }
 0x7a3   :  { %v377_v15 = vpop.f32.mrf.mxu0 }
 0x7a4   :  { %v378_v16 = vadd.f32 %v377_v15, %v2535_v32 }
 0x7a6   :  { %2282 = vtanh.f32 %v378_v16  ;;  %v2167_v18 = vmul.f32 -1.442695, %v378_v16 }
 0x7a8   :  { %2284 = vpow2.f32 %v2167_v18 }
 0x7ac   :  { %v2283_v17 = vpop.eup %2282 }
 0x7ad   :  { %402 = vrot.lane.b32.xlu0 %v2283_v17, %s2386_s23 }
 0x7ae   :  { %v2285_v19 = vpop.eup %2284 }
 0x7af   :  { %v383_v20 = vadd.f32 1.0, %v2285_v19 }
 0x7b1   :  { %2286 = vrcp.f32 %v383_v20  ;;  %v395_v28 = vand.u32 2147483648, %v383_v20  ;;  %vm389_vm4 = vweird.f32 %v383_v20  ;;  %v393_v29 = vand.u32 2147483647, %v383_v20 }
 0x7b3   :  { %v396_v30 = vor.u32 1.1754944e-38, %v395_v28  ;;  %vm394_vm6 = vcmp.eq.f32.partialorder %v393_v29, 8.507059e+37 }
 0x7b7   :  { %v2287_v21 = vpop.eup %2286 }
 0x7b8   :  { %v385_v22 = vmul.f32 %v2287_v21, %v383_v20  ;;  %vm390_vm3 = vweird.f32 %v2287_v21 }
 0x7b9   :  { %vm391_vm5 = vmor %vm389_vm4, %vm390_vm3 }
 0x7ba   :  { %v386_v23 = vsub.f32 1.0, %v385_v22 }
 0x7bc   :  { %v387_v25 = vmul.f32 %v2287_v21, %v386_v23 }
 0x7be   :  { %v388_v27 = vadd.f32 %v2287_v21, %v387_v25 }
 0x7c0   :  { %v392_v32 = vsel %vm391_vm5, %v2287_v21, %v388_v27 }
 0x7c1   :  { %v397_v33 = vsel %vm394_vm6, %v396_v30, %v392_v32 }
 0x7c2   :  { %v400_v38 = vmul.f32 %v397_v33, %v334_v6 }
 0x81f   :  { %v403_v31 = vpop.permute.xlu0 %402 }
 0x820   :  { %v405_v37 = vmul.f32 %v403_v31, %v397_v33 }
 0x822   :  { %407 = vrot.lane.b32.xlu1 %v405_v37, %s2387_s24 }
 0x894   :  { %v408_v39 = vpop.permute.xlu1 %407 }
 0x895   :  { %v410_v40 = vadd.f32 %v408_v39, %v400_v38 }
 0x897   :  { %2288 = vtanh.f32 %v410_v40 }
 0x89d   :  { %v2289_v41 = vpop.eup %2288 }
 0x89e   :  { %413 = vrot.lane.b32.xlu2 %v2289_v41, %s2386_s23 }
 0x8f8   :  { %v414_v43 = vpop.permute.xlu2 %413 }
 0x8f9   :  { %v2624_v44 = vmul.f32 %v414_v43, %v397_v33 }
 0x8fb   :  { %v418_v45 = vmul.f32 %v2624_v44, %v2555_v61  ;;  %v417_v46 = vmul.f32 %v2552_v60, %v2624_v44 }
 0x8fd   :  { %424 = vrot.lane.b32.xlu1 %v418_v45, %s2386_s23  ;;  %420 = vrot.lane.b32.xlu0 %v417_v46, %s2387_s24 }
 0x96f   :  { %v425_v47 = vpop.permute.xlu1 %424  ;;  %v421_v48 = vpop.permute.xlu0 %420 }
 0x970   :  { %v427_v49 = vsel %vm198_vm7, %v421_v48, %v425_v47 }
 0x971   :  { %2168 = vmatmul.msk.f32.vlgmr.msra.gmra.mxu1 %vm206_vm8, %v427_v49 }
 0x9ee   :  { %v452_v50 = vpop.f32.mrf.mxu1 }
 0x9ef   :  { %v453_v51 = vadd.f32 %v452_v50, %v2528_v26 }
 0x9f1   :  { %2290 = vtanh.f32 %v453_v51  ;;  %v2169_v53 = vmul.f32 -1.442695, %v453_v51 }
 0x9f3   :  { %2292 = vpow2.f32 %v2169_v53 }
 0x9f7   :  { %v2291_v52 = vpop.eup %2290 }
 0x9f8   :  { %477 = vrot.lane.b32.xlu2 %v2291_v52, %s2386_s23 }
 0x9f9   :  { %v2293_v54 = vpop.eup %2292 }
 0x9fa   :  { %v458_v55 = vadd.f32 1.0, %v2293_v54 }
 0x9fc   :  { %2294 = vrcp.f32 %v458_v55  ;;  %v470_v24 = vand.u32 2147483648, %v458_v55  ;;  %vm464_vm10 = vweird.f32 %v458_v55  ;;  %v468_v0 = vand.u32 2147483647, %v458_v55 }
 0x9fe   :  { %v471_v1 = vor.u32 1.1754944e-38, %v470_v24  ;;  %vm469_vm12 = vcmp.eq.f32.partialorder %v468_v0, 8.507059e+37 }
 0xa02   :  { %v2295_v56 = vpop.eup %2294 }
 0xa03   :  { %v460_v57 = vmul.f32 %v2295_v56, %v458_v55  ;;  %vm465_vm9 = vweird.f32 %v2295_v56 }
 0xa04   :  { %vm466_vm11 = vmor %vm464_vm10, %vm465_vm9 }
 0xa05   :  { %v461_v58 = vsub.f32 1.0, %v460_v57 }
 0xa07   :  { %v462_v59 = vmul.f32 %v2295_v56, %v461_v58 }
 0xa09   :  { %v463_v62 = vadd.f32 %v2295_v56, %v462_v59 }
 0xa0b   :  { %v467_v26 = vsel %vm466_vm11, %v2295_v56, %v463_v62 }
 0xa0c   :  { %v472_v3 = vsel %vm469_vm12, %v471_v1, %v467_v26 }
 0xa0d   :  { %v475_v5 = vmul.f32 %v472_v3, %v410_v40 }
 0xa52   :  { %v478_v2 = vpop.permute.xlu2 %477 }
 0xa53   :  { %v480_v4 = vmul.f32 %v478_v2, %v472_v3 }
 0xa55   :  { %482 = vrot.lane.b32.xlu0 %v480_v4, %s2387_s24 }
 0xac7   :  { %v483_v6 = vpop.permute.xlu0 %482 }
 0xac8   :  { %v485_v7 = vadd.f32 %v483_v6, %v475_v5 }
 0xaca   :  { %2296 = vtanh.f32 %v485_v7 }
 0xad0   :  { %v2297_v8 = vpop.eup %2296 }
 0xad1   :  { %488 = vrot.lane.b32.xlu1 %v2297_v8, %s2386_s23 }
 0xb43   :  { %v489_v10 = vpop.permute.xlu1 %488 }
 0xb44   :  { %v2638_v11 = vmul.f32 %v489_v10, %v472_v3 }
 0xb46   :  { %v493_v12 = vmul.f32 %v2638_v11, %v2555_v61  ;;  %v492_v13 = vmul.f32 %v2552_v60, %v2638_v11 }
 0xb48   :  { %499 = vrot.lane.b32.xlu0 %v493_v12, %s2386_s23  ;;  %495 = vrot.lane.b32.xlu2 %v492_v13, %s2387_s24 }
 0xba2   :  { %v496_v14 = vpop.permute.xlu2 %495 }
 0xbba   :  { %v500_v15 = vpop.permute.xlu0 %499 }
 0xbbb   :  { %v502_v16 = vsel %vm198_vm7, %v496_v14, %v500_v15 }
 0xbbc   :  { %2170 = vmatmul.msk.f32.vlgmr.msra.gmra.mxu2 %vm206_vm8, %v502_v16 }
 0xc3f   :  { %v529_v17 = vpop.f32.mrf.mxu2 }
 0xc40   :  { %v530_v18 = vadd.f32 %v529_v17, %v2538_v34 }
 0xc42   :  { %2298 = vtanh.f32 %v530_v18  ;;  %v2171_v20 = vmul.f32 -1.442695, %v530_v18 }
 0xc44   :  { %2300 = vpow2.f32 %v2171_v20 }
 0xc48   :  { %v2299_v19 = vpop.eup %2298 }
 0xc49   :  { %554 = vrot.lane.b32.xlu1 %v2299_v19, %s2386_s23 }
 0xc4a   :  { %v2301_v21 = vpop.eup %2300 }
 0xc4b   :  { %v535_v22 = vadd.f32 1.0, %v2301_v21 }
 0xc4d   :  { %2302 = vrcp.f32 %v535_v22  ;;  %v547_v32 = vand.u32 2147483648, %v535_v22  ;;  %vm541_vm14 = vweird.f32 %v535_v22  ;;  %v545_v30 = vand.u32 2147483647, %v535_v22 }
 0xc4f   :  { %v548_v31 = vor.u32 1.1754944e-38, %v547_v32  ;;  %vm546_vm2 = vcmp.eq.f32.partialorder %v545_v30, 8.507059e+37 }
 0xc53   :  { %v2303_v23 = vpop.eup %2302 }
 0xc54   :  { %v537_v25 = vmul.f32 %v2303_v23, %v535_v22  ;;  %vm542_vm13 = vweird.f32 %v2303_v23 }
 0xc55   :  { %vm543_vm15 = vmor %vm541_vm14, %vm542_vm13  ;;  %vm812_vm13 = vcmask 1045504   ;;  %vm810_vm14 = vcmask 1043456  }
 0xc56   :  { %v538_v27 = vsub.f32 1.0, %v537_v25  ;;  %v786_v25 = vrot.slane %v2557_v63, 2 }
 0xc58   :  { %v539_v28 = vmul.f32 %v2303_v23, %v538_v27 }
 0xc5a   :  { %v540_v29 = vadd.f32 %v2303_v23, %v539_v28 }
 0xc5c   :  { %v544_v34 = vsel %vm543_vm15, %v2303_v23, %v540_v29  ;;  %v770_v23 = vrot.slane %v2610_v9, 2 }
 0xc5d   :  { %v549_v37 = vsel %vm546_vm2, %v548_v31, %v544_v34 }
 0xc5e   :  { %v552_v39 = vmul.f32 %v549_v37, %v485_v7 }
 0xcbb   :  { %v555_v33 = vpop.permute.xlu1 %554 }
 0xcbc   :  { %v557_v38 = vmul.f32 %v555_v33, %v549_v37 }
 0xcbe   :  { %559 = vrot.lane.b32.xlu2 %v557_v38, %s2387_s24 }
 0xd18   :  { %v560_v40 = vpop.permute.xlu2 %559 }
 0xd19   :  { %v562_v41 = vadd.f32 %v560_v40, %v552_v39 }
 0xd1b   :  { %2304 = vtanh.f32 %v562_v41 }
 0xd21   :  { %v2305_v43 = vpop.eup %2304 }
 0xd22   :  { %565 = vrot.lane.b32.xlu0 %v2305_v43, %s2386_s23 }
 0xd94   :  { %v566_v45 = vpop.permute.xlu0 %565 }
 0xd95   :  { %v2652_v46 = vmul.f32 %v566_v45, %v549_v37 }
 0xd97   :  { %v570_v47 = vmul.f32 %v2652_v46, %v2555_v61  ;;  %v569_v48 = vmul.f32 %v2552_v60, %v2652_v46  ;;  %v744_v22 = vrot.slane %v2652_v46, 2 }
 0xd99   :  { %576 = vrot.lane.b32.xlu2 %v570_v47, %s2386_s23  ;;  %572 = vrot.lane.b32.xlu1 %v569_v48, %s2387_s24  ;;  %v754_v47 = vrot.slane %v2638_v11, 2  ;;  %v762_v48 = vrot.slane %v2624_v44, 2 }
 0xdf3   :  { %v577_v49 = vpop.permute.xlu2 %576 }
 0xe0b   :  { %v573_v50 = vpop.permute.xlu1 %572 }
 0xe0c   :  { %v579_v51 = vsel %vm198_vm7, %v573_v50, %v577_v49 }
 0xe0d   :  { %2172 = vmatmul.msk.f32.vlgmr.msra.gmra.mxu3 %vm206_vm8, %v579_v51 }
 0xe90   :  { %v603_v52 = vpop.f32.mrf.mxu3 }
 0xe91   :  { %v604_v53 = vadd.f32 %v603_v52, %v2541_v35 }
 0xe93   :  { %2306 = vtanh.f32 %v604_v53  ;;  %v2173_v55 = vmul.f32 -1.442695, %v604_v53  ;;  %v831_v53 = vld [vmem:[%s3281_s7 + $0x60] sm:$0xff] }
 0xe95   :  { %2308 = vpow2.f32 %v2173_v55  ;;  %v828_v55 = vld [vmem:[%s3281_s7 + $0x48] sm:$0xff] }
 0xe99   :  { %v2307_v54 = vpop.eup %2306 }
 0xe9a   :  { %628 = vrot.lane.b32.xlu0 %v2307_v54, %s2386_s23  ;;  %v827_v54 = vld [vmem:[%s3281_s7 + $0x40] sm:$0xff] }
 0xe9b   :  { %v2309_v56 = vpop.eup %2308 }
 0xe9c   :  { %v609_v57 = vadd.f32 1.0, %v2309_v56 }
 0xe9e   :  { %2310 = vrcp.f32 %v609_v57  ;;  %v621_v26 = vand.u32 2147483648, %v609_v57  ;;  %vm615_vm4 = vweird.f32 %v609_v57  ;;  %v619_v1 = vand.u32 2147483647, %v609_v57 }
 0xea0   :  { %v622_v2 = vor.u32 1.1754944e-38, %v621_v26  ;;  %vm620_vm6 = vcmp.eq.f32.partialorder %v619_v1, 8.507059e+37 }
 0xea4   :  { %v2311_v58 = vpop.eup %2310 }
 0xea5   :  { %v611_v59 = vmul.f32 %v2311_v58, %v609_v57  ;;  %vm616_vm3 = vweird.f32 %v2311_v58  ;;  %v825_v57 = vld [vmem:[%s3281_s7 + $0x30] sm:$0xff] }
 0xea6   :  { %vm617_vm5 = vmor %vm615_vm4, %vm616_vm3 }
 0xea7   :  { %v612_v62 = vsub.f32 1.0, %v611_v59 }
 0xea9   :  { %v613_v24 = vmul.f32 %v2311_v58, %v612_v62  ;;  %v823_v62 = vld [vmem:[%s3281_s7 + $0x20] sm:$0xff] }
 0xeab   :  { %v614_v0 = vadd.f32 %v2311_v58, %v613_v24 }
 0xead   :  { %v618_v35 = vsel %vm617_vm5, %v2311_v58, %v614_v0  ;;  %v826_v58 = vld [vmem:[%s3281_s7 + $0x38] sm:$0xff]  ;;  %v824_v0 = vld [vmem:[%s3281_s7 + $0x28] sm:$0xff] }
 0xeae   :  { %v623_v4 = vsel %vm620_vm6, %v622_v2, %v618_v35  ;;  %v821_v2 = vld [vmem:[%s3281_s7 + $0x10] sm:$0xff] }
 0xeaf   :  { %v626_v6 = vmul.f32 %v623_v4, %v562_v41 }
 0xf0c   :  { %v629_v3 = vpop.permute.xlu0 %628 }
 0xf0d   :  { %v631_v5 = vmul.f32 %v629_v3, %v623_v4  ;;  %v822_v3 = vld [vmem:[%s3281_s7 + $0x18] sm:$0xff] }
 0xf0f   :  { %633 = vrot.lane.b32.xlu1 %v631_v5, %s2387_s24  ;;  %v820_v5 = vld [vmem:[%s3281_s7 + $0x8] sm:$0xff] }
 0xf81   :  { %v634_v7 = vpop.permute.xlu1 %633 }
 0xf82   :  { %v636_v8 = vadd.f32 %v634_v7, %v626_v6 }
 0xf84   :  { %2312 = vtanh.f32 %v636_v8 }
 0xf8a   :  { %v2313_v10 = vpop.eup %2312 }
 0xf8b   :  { %639 = vrot.lane.b32.xlu2 %v2313_v10, %s2386_s23 }
 0xfe5   :  { %v640_v12 = vpop.permute.xlu2 %639 }
 0xfe6   :  { %v642_v13 = vmul.f32 %v640_v12, %v623_v4  ;;  %v819_v4 = vld [vmem:[%s3281_s7] sm:$0xff] }
 0xfe8   :  { %v644_v14 = vmul.f32 %v642_v13, %v2555_v61  ;;  %v643_v15 = vmul.f32 %v2552_v60, %v642_v13  ;;  %v734_v45 = vrot.slane %v642_v13, 2 }
 0xfea   :  { %650 = vrot.lane.b32.xlu1 %v644_v14, %s2386_s23  ;;  %646 = vrot.lane.b32.xlu0 %v643_v15, %s2387_s24 }
0x105c   :  { %v651_v16 = vpop.permute.xlu1 %650  ;;  %v647_v17 = vpop.permute.xlu0 %646 }
0x105d   :  { %v653_v18 = vsel %vm198_vm7, %v647_v17, %v651_v16 }
0x105e   :  { %2174 = vmatmul.msk.f32.vlgmr.msrb.gmra.mxu0 %vm206_vm8, %v653_v18 }
0x10db   :  { %v679_v19 = vpop.f32.mrf.mxu0 }
0x10dc   :  { %v680_v20 = vadd.f32 %v679_v19, %v2544_v36 }
0x10de   :  { %2314 = vtanh.f32 %v680_v20  ;;  %v2175_v36 = vmul.f32 -1.442695, %v680_v20 }
0x10e0   :  { %2316 = vpow2.f32 %v2175_v36 }
0x10e4   :  { %v2315_v21 = vpop.eup %2314 }
0x10e5   :  { %704 = vrot.lane.b32.xlu2 %v2315_v21, %s2386_s23 }
0x10e6   :  { %v2317_v27 = vpop.eup %2316 }
0x10e7   :  { %v685_v28 = vadd.f32 1.0, %v2317_v27 }
0x10e9   :  { %2318 = vrcp.f32 %v685_v28  ;;  %v697_v33 = vand.u32 2147483648, %v685_v28  ;;  %vm691_vm10 = vweird.f32 %v685_v28  ;;  %v695_v37 = vand.u32 2147483647, %v685_v28 }
0x10eb   :  { %v698_v39 = vor.u32 1.1754944e-38, %v697_v33  ;;  %vm696_vm12 = vcmp.eq.f32.partialorder %v695_v37, 8.507059e+37 }
0x10ed   :  { %730 = vrot.lane.b32.xlu2 %v2596_v42, %s2387_s24 }
0x10ef   :  { %v2319_v29 = vpop.eup %2318 }
0x10f0   :  { %v687_v32 = vmul.f32 %v2319_v29, %v685_v28  ;;  %vm692_vm9 = vweird.f32 %v2319_v29 }
0x10f1   :  { %vm693_vm11 = vmor %vm691_vm10, %vm692_vm9 }
0x10f2   :  { %v688_v30 = vsub.f32 1.0, %v687_v32 }
0x10f4   :  { %v689_v34 = vmul.f32 %v2319_v29, %v688_v30 }
0x10f5   :  { %745 = vrot.lane.b32.xlu2 %v744_v22, %s2386_s23 }
0x10f6   :  { %v690_v31 = vadd.f32 %v2319_v29, %v689_v34 }
0x10f8   :  { %v694_v38 = vsel %vm693_vm11, %v2319_v29, %v690_v31 }
0x10f9   :  { %v699_v41 = vsel %vm696_vm12, %v698_v39, %v694_v38 }
0x10fa   :  { %v702_v49 = vmul.f32 %v699_v41, %v636_v8 }
0x10fd   :  { %750 = vrot.lane.b32.xlu2 %v2624_v44, %s2387_s24  ;;  %v833_v44 = vld [vmem:[%s3281_s7 + $0x70] sm:$0xff] }
0x10fe   :  { %864 = vmatpush.msrb.mxu1 %v833_v44 }
0x1100   :  { %865 = vmatpush.msrb.mxu1 %v831_v53 }
0x1105   :  { %771 = vrot.lane.b32.xlu2 %v770_v23, %s2386_s23 }
0x110d   :  { %759 = vrot.lane.b32.xlu2 %v2638_v11, %s2387_s24  ;;  %v834_v11 = vld [vmem:[%s3281_s7 + $0x78] sm:$0xff] }
0x110e   :  { %887 = vmatpush.msrb.mxu2 %v834_v11 }
0x1115   :  { %787 = vrot.lane.b32.xlu2 %v786_v25, %s2386_s23 }
0x113f   :  { %v705_v40 = vpop.permute.xlu2 %704 }
0x1140   :  { %v707_v43 = vmul.f32 %v705_v40, %v699_v41 }
0x1142   :  { %709 = vrot.lane.b32.xlu0 %v707_v43, %s2387_s24 }
0x1147   :  { %v731_v26 = vpop.permute.xlu2 %730 }
0x114a   :  { %735 = vrot.lane.b32.xlu0 %v734_v45, %s2386_s23 }
0x114f   :  { %v746_v35 = vpop.permute.xlu2 %745 }
0x1152   :  { %720 = vrot.lane.b32.xlu0 %v2557_v63, %s2387_s24  ;;  %v778_v63 = vrot.slane %v2596_v42, 2  ;;  %v832_v42 = vld [vmem:[%s3281_s7 + $0x68] sm:$0xff] }
0x1153   :  { %888 = vmatpush.msrb.mxu2 %v832_v42 }
0x1157   :  { %v751_v8 = vpop.permute.xlu2 %750 }
0x115a   :  { %755 = vrot.lane.b32.xlu0 %v754_v47, %s2386_s23  ;;  %v835_v47 = vld [vmem:[%s3252_s8] sm:$0x3]  ;;  %s2390_s8 = smov 16  }
0x115b   :  { %v847_v44 = vperm.slane %v835_v47, 1 }
0x1162   :  { %775 = vrot.lane.b32.xlu0 %v642_v13, %s2387_s24  ;;  %v772_v13 = vpop.permute.xlu2 %771 }
0x116a   :  { %763 = vrot.lane.b32.xlu0 %v762_v48, %s2386_s23  ;;  %v760_v17 = vpop.permute.xlu2 %759  ;;  %v846_v48 = vperm.slane %v835_v47, 0 }
0x1172   :  { %v788_v33 = vpop.permute.xlu2 %787 }
0x11b4   :  { %v710_v50 = vpop.permute.xlu0 %709 }
0x11b5   :  { %v712_v51 = vadd.f32 %v710_v50, %v702_v49 }
0x11b7   :  { %2320 = vtanh.f32 %v712_v51 }
0x11bc   :  { %v736_v1 = vpop.permute.xlu0 %735 }
0x11bd   :  { %v2321_v52 = vpop.eup %2320  ;;  %v738_v16 = vsel %vm198_vm7, %v731_v26, %v736_v1 }
0x11be   :  { %715 = vrot.lane.b32.xlu1 %v2321_v52, %s2386_s23  ;;  %v792_v20 = vrot.slane %v738_v16, 6 }
0x11c4   :  { %v721_v7 = vpop.permute.xlu0 %720 }
0x11c6   :  { %740 = vrot.lane.b32.xlu1 %v2610_v9, %s2387_s24  ;;  %v829_v9 = vld [vmem:[%s3281_s7 + $0x50] sm:$0xff] }
0x11c7   :  { %866 = vmatpush.msrb.mxu1 %v829_v9 }
0x11c9   :  { %867 = vmatpush.msrb.mxu1 %v827_v54 }
0x11cb   :  { %868 = vmatpush.msrb.mxu1 %v825_v57 }
0x11cc   :  { %v756_v12 = vpop.permute.xlu0 %755 }
0x11cd   :  { %869 = vmatpush.msrb.mxu1 %v823_v62  ;;  %v758_v19 = vsel %vm198_vm7, %v751_v8, %v756_v12 }
0x11ce   :  { %767 = vrot.lane.b32.xlu1 %v2652_v46, %s2387_s24  ;;  %v830_v46 = vld [vmem:[%s3281_s7 + $0x58] sm:$0xff]  ;;  %v798_v36 = vrot.slane %v758_v19, 2 }
0x11cf   :  { %889 = vmatpush.msrb.mxu2 %v830_v46  ;;  %870 = vmatpush.msrb.mxu1 %v821_v2 }
0x11d1   :  { %890 = vmatpush.msrb.mxu2 %v828_v55  ;;  %871 = vmatpush.msrb.mxu1 %v819_v4  ;;  %v2796_v55 = vld [vmem:[%s3253_s2] sm:$0xff] }
0x11d3   :  { %891 = vmatpush.msrb.mxu2 %v826_v58 }
0x11d4   :  { %v776_v15 = vpop.permute.xlu0 %775 }
0x11d5   :  { %892 = vmatpush.msrb.mxu2 %v824_v0 }
0x11d6   :  { %779 = vrot.lane.b32.xlu1 %v778_v63, %s2386_s23 }
0x11d7   :  { %893 = vmatpush.msrb.mxu2 %v822_v3 }
0x11d9   :  { %894 = vmatpush.msrb.mxu2 %v820_v5 }
0x11dc   :  { %v764_v30 = vpop.permute.xlu0 %763 }
0x11dd   :  { %v766_v38 = vsel %vm198_vm7, %v760_v17, %v764_v30 }
0x1230   :  { %v716_v56 = vpop.permute.xlu1 %715 }
0x1231   :  { %v718_v59 = vmul.f32 %v716_v56, %v699_v41 }
0x1233   :  { %v724_v24 = vrot.slane %v718_v59, 2 }
0x1235   :  { %725 = vrot.lane.b32.xlu1 %v724_v24, %s2386_s23 }
0x1238   :  { %v741_v6 = vpop.permute.xlu1 %740 }
0x1239   :  { %v748_v18 = vsel %vm198_vm7, %v741_v6, %v746_v35 }
0x123a   :  { %v795_v22 = vrot.slane %v748_v18, 4 }
0x123d   :  { %783 = vrot.lane.b32.xlu1 %v718_v59, %s2387_s24  ;;  %v2803_v59 = vld [vmem:[%s3253_s2 + $0x8] sm:$0xff]  ;;  %s2392_s2 = smov 80  }
0x1240   :  { %v768_v10 = vpop.permute.xlu1 %767 }
0x1241   :  { %v774_v27 = vsel %vm198_vm7, %v768_v10, %v772_v13 }
0x1242   :  { %v801_v34 = vrot.slane %v774_v27, 6 }
0x1244   :  { %v814_v41 = vsel %vm149_vm1, %v766_v38, %v801_v34 }
0x1248   :  { %v780_v14 = vpop.permute.xlu1 %779 }
0x1249   :  { %v782_v29 = vsel %vm198_vm7, %v776_v15, %v780_v14 }
0x124a   :  { %v804_v31 = vrot.slane %v782_v29, 4 }
0x124c   :  { %v815_v43 = vsel %vm810_vm14, %v814_v41, %v804_v31 }
0x12a7   :  { %v726_v21 = vpop.permute.xlu1 %725 }
0x12a8   :  { %v728_v23 = vsel %vm198_vm7, %v721_v7, %v726_v21 }
0x12a9   :  { %v809_v25 = vsel %vm149_vm1, %v728_v23, %v792_v20 }
0x12aa   :  { %v811_v28 = vsel %vm810_vm14, %v809_v25, %v795_v22 }
0x12ab   :  { %v813_v32 = vsel %vm812_vm13, %v811_v28, %v798_v36 }
0x12ac   :  { %2176 = vmatmul.msk.f32.vlgmr.msrb.gmra.mxu1 %vm206_vm8, %v813_v32  ;;  %2178 = vmatmul.msk.f32.vlgmr.msrb.gmra.mxu2 %vm206_vm8, %v813_v32 }
0x12af   :  { %v784_v37 = vpop.permute.xlu1 %783 }
0x12b0   :  { %v790_v39 = vsel %vm198_vm7, %v784_v37, %v788_v33 }
0x12b1   :  { %v807_v40 = vrot.slane %v790_v39, 2 }
0x12b3   :  { %v816_v45 = vsel %vm812_vm13, %v815_v43, %v807_v40 }
0x12b4   :  { %2177 = vmatmul.msk.f32.gmra.mxu1 %vm206_vm8, %v816_v45  ;;  %2179 = vmatmul.msk.f32.gmra.mxu2 %vm206_vm8, %v816_v45 }
0x1329   :  { %v873_v49 = vpop.f32.mrf.mxu1 }
0x132a   :  { %v2773_v50 = vadd.f32 %v873_v49, %v846_v48 }
0x132c   :  { %904 = vrot.lane.b32.xlu1 %v2773_v50, %s2386_s23 }
0x132f   :  { %v896_v51 = vpop.f32.mrf.mxu2 }
0x1330   :  { %v897_v53 = vadd.f32 %v896_v51, %v847_v44 }
0x1331   :  { %v876_v52 = vpop.f32.mrf.mxu1 }
0x1332   :  { %v2777_v63 = vadd.f32 %v876_v52, %v846_v48 }
0x1334   :  { %1016 = vrot.lane.b32.xlu1 %v2773_v50, %s2389_s25  ;;  %906 = vrot.lane.b32.xlu0 %v2777_v63, %s2386_s23 }
0x1337   :  { %v899_v11 = vpop.f32.mrf.mxu2 }
0x1338   :  { %v900_v42 = vadd.f32 %v899_v11, %v847_v44 }
0x133a   :  { %1007 = vmatpush.msra.mxu0 %v900_v42  ;;  %v2783_v9 = vpack.i.bf16 %v897_v53, %v900_v42 }
0x133c   :  { %1008 = vmatpush.msra.mxu0 %v897_v53  ;;  %1268 = vrot.lane.b32.xlu1 %v2777_v63, %s2390_s8 }
0x139e   :  { %v905_v54 = vpop.permute.xlu1 %904 }
0x13a6   :  { %v907_v46 = vpop.permute.xlu0 %906  ;;  %v1017_v10 = vpop.permute.xlu1 %1016 }
0x13a7   :  { %2180 = vmatpush.xpose.msk.msrb.mxu3 %vm87_vm0, %v907_v46 }
0x13ab   :  { %2181 = vmatpush.xpose.msk.msrb.mxu3 %vm87_vm0, %v905_v54 }
0x13ae   :  { %2182 = vmatmul.msk.f32.vlgmr.msrb.gmra.mxu3 %vm87_vm0, %v2773_v50  ;;  %v1269_v15 = vpop.permute.xlu1 %1268 }
0x13b6   :  { %2183 = vmatmul.msk.f32.gmra.mxu3 %vm87_vm0, %v2777_v63 }
0x1431   :  { %v933_v56 = vpop.f32.mrf.mxu3 }
0x1432   :  { %v934_v57 = vadd.f32 %v933_v56, %v2796_v55 }
0x1434   :  { %v939_v58 = vsel %vm87_vm0, %v934_v57, -inf }
0x1435   :  { %940 = vmax.xlane.f32.xlu2 %v939_v58 }
0x1439   :  { %v936_v62 = vpop.f32.mrf.mxu3 }
0x143a   :  { %v937_v24 = vadd.f32 %v936_v62, %v2803_v59 }
0x143c   :  { %v942_v0 = vsel %vm87_vm0, %v937_v24, -inf }
0x143d   :  { %943 = vmax.xlane.f32.xlu0 %v942_v0 }
0x144d   :  { %1022 = vrot.lane.b32.xlu2 %v2777_v63, %s2391_s29 }
0x1451   :  { %1020 = vrot.lane.b32.xlu0 %v2773_v50, %s2391_s29 }
0x1455   :  { %1146 = vrot.lane.b32.xlu2 %v2777_v63, %s2387_s24 }
0x1459   :  { %1018 = vrot.lane.b32.xlu0 %v2777_v63, %s2389_s25 }
0x145d   :  { %1266 = vrot.lane.b32.xlu2 %v2773_v50, %s2390_s8 }
0x1461   :  { %1144 = vrot.lane.b32.xlu0 %v2773_v50, %s2387_s24 }
0x1469   :  { %1262 = vrot.lane.b32.xlu0 %v2773_v50, %s2392_s2 }
0x14a8   :  { %v941_v26 = vpop.xlane.xlu2 %940 }
0x14a9   :  { %v945_v1 = vsub.f32 %v934_v57, %v941_v26 }
0x14ab   :  { %v947_v35 = vmul.f32 1.442695, %v945_v1 }
0x14ad   :  { %2322 = vpow2.f32 %v947_v35 }
0x14b0   :  { %v944_v2 = vpop.xlane.xlu0 %943  ;;  %v1023_v3 = vpop.permute.xlu2 %1022 }
0x14b1   :  { %v946_v4 = vsub.f32 %v937_v24, %v944_v2  ;;  %2186 = vmatpush.xpose.msk.msra.mxu1 %vm87_vm0, %v1023_v3 }
0x14b3   :  { %v2323_v5 = vpop.eup %2322  ;;  %v949_v6 = vmul.f32 1.442695, %v946_v4 }
0x14b4   :  { %v951_v7 = vsel %vm87_vm0, %v2323_v5, 0.0 }
0x14b5   :  { %2324 = vpow2.f32 %v949_v6  ;;  %952 = vadd.xlane.f32.xlu1 %v951_v7 }
0x14b8   :  { %v1147_v8 = vpop.permute.xlu2 %1146 }
0x14b9   :  { %2192 = vmatpush.xpose.msk.msrb.mxu0 %vm87_vm0, %v1147_v8 }
0x14bb   :  { %v2325_v12 = vpop.eup %2324 }
0x14bc   :  { %v954_v13 = vsel %vm87_vm0, %v2325_v12, 0.0 }
0x14bd   :  { %955 = vadd.xlane.f32.xlu2 %v954_v13 }
0x14c0   :  { %v1267_v16 = vpop.permute.xlu2 %1266 }
0x14c3   :  { %v1021_v14 = vpop.permute.xlu0 %1020 }
0x14c4   :  { %2187 = vmatpush.xpose.msk.msra.mxu1 %vm87_vm0, %v1021_v14 }
0x14c7   :  { %2188 = vmatmul.msk.f32.vlgmr.msra.gmra.mxu1 %vm87_vm0, %v1017_v10 }
0x14c8   :  { %2198 = vmatpush.xpose.msk.msrb.mxu1 %vm87_vm0, %v1269_v15 }
0x14cb   :  { %v1019_v17 = vpop.permute.xlu0 %1018 }
0x14cc   :  { %2199 = vmatpush.xpose.msk.msrb.mxu1 %vm87_vm0, %v1267_v16 }
0x14ce   :  { %1140 = vrot.lane.b32.xlu1 %v2773_v50, %s2393_s30 }
0x14cf   :  { %2189 = vmatmul.msk.f32.gmra.mxu1 %vm87_vm0, %v1019_v17 }
0x14d3   :  { %v1145_v18 = vpop.permute.xlu0 %1144 }
0x14d4   :  { %2193 = vmatpush.xpose.msk.msrb.mxu0 %vm87_vm0, %v1145_v18 }
0x14d5   :  { %1142 = vrot.lane.b32.xlu2 %v2777_v63, %s2393_s30 }
0x14d6   :  { %1264 = vrot.lane.b32.xlu1 %v2777_v63, %s2392_s2 }
0x14db   :  { %v1263_v19 = vpop.permute.xlu0 %1262 }
0x14dc   :  { %2200 = vmatmul.msk.f32.vlgmr.msrb.gmra.mxu1 %vm87_vm0, %v1263_v19 }
0x1528   :  { %v953_v20 = vpop.xlane.xlu1 %952 }
0x1529   :  { %2326 = vrcp.f32 %v953_v20  ;;  %v968_v25 = vand.u32 2147483648, %v953_v20  ;;  %v966_v28 = vand.u32 2147483647, %v953_v20  ;;  %vm962_vm2 = vweird.f32 %v953_v20 }
0x152b   :  { %v969_v30 = vor.u32 1.1754944e-38, %v968_v25  ;;  %vm967_vm4 = vcmp.eq.f32.partialorder %v966_v28, 8.507059e+37 }
0x152f   :  { %v2327_v21 = vpop.eup %2326 }
0x1530   :  { %v958_v22 = vmul.f32 %v2327_v21, %v953_v20  ;;  %v956_v23 = vpop.xlane.xlu2 %955  ;;  %vm963_vm15 = vweird.f32 %v2327_v21 }
0x1531   :  { %2328 = vrcp.f32 %v956_v23  ;;  %vm964_vm3 = vmor %vm962_vm2, %vm963_vm15  ;;  %v983_v39 = vand.u32 2147483648, %v956_v23  ;;  %v981_v41 = vand.u32 2147483647, %v956_v23  ;;  %vm977_vm6 = vweird.f32 %v956_v23 }
0x1532   :  { %v959_v36 = vsub.f32 1.0, %v958_v22 }
0x1533   :  { %v984_v45 = vor.u32 1.1754944e-38, %v983_v39  ;;  %vm982_vm10 = vcmp.eq.f32.partialorder %v981_v41, 8.507059e+37 }
0x1534   :  { %v960_v27 = vmul.f32 %v2327_v21, %v959_v36 }
0x1536   :  { %v961_v29 = vadd.f32 %v2327_v21, %v960_v27 }
0x1537   :  { %v2329_v32 = vpop.eup %2328 }
0x1538   :  { %v965_v34 = vsel %vm964_vm3, %v2327_v21, %v961_v29  ;;  %v973_v31 = vmul.f32 %v2329_v32, %v956_v23  ;;  %vm978_vm5 = vweird.f32 %v2329_v32  ;;  %v1143_v46 = vpop.permute.xlu2 %1142 }
0x1539   :  { %v970_v33 = vsel %vm967_vm4, %v969_v30, %v965_v34  ;;  %vm979_vm9 = vmor %vm977_vm6, %vm978_vm5 }
0x153a   :  { %v974_v37 = vsub.f32 1.0, %v973_v31  ;;  %v971_v38 = vmul.f32 %v2323_v5, %v970_v33 }
0x153c   :  { %v975_v40 = vmul.f32 %v2329_v32, %v974_v37  ;;  %2184 = vmatmul.msk.f32.vlgmr.msra.gmra.mxu0 %vm87_vm0, %v971_v38 }
0x153e   :  { %v976_v43 = vadd.f32 %v2329_v32, %v975_v40 }
0x1540   :  { %v1141_v47 = vpop.permute.xlu1 %1140  ;;  %v980_v48 = vsel %vm979_vm9, %v2329_v32, %v976_v43 }
0x1541   :  { %v985_v49 = vsel %vm982_vm10, %v984_v45, %v980_v48 }
0x1542   :  { %v986_v50 = vmul.f32 %v2325_v12, %v985_v49 }
0x1544   :  { %2185 = vmatmul.msk.f32.gmra.mxu0 %vm87_vm0, %v986_v50  ;;  %v1049_v51 = vpop.f32.mrf.mxu1 }
0x1545   :  { %v1050_v52 = vadd.f32 %v1049_v51, %v2796_v55 }
0x1547   :  { %v1055_v63 = vsel %vm87_vm0, %v1050_v52, -inf }
0x1548   :  { %1056 = vmax.xlane.f32.xlu0 %v1055_v63  ;;  %v1265_v44 = vpop.permute.xlu1 %1264 }
0x1549   :  { %2201 = vmatmul.msk.f32.gmra.mxu1 %vm87_vm0, %v1265_v44 }
0x154c   :  { %v1052_v11 = vpop.f32.mrf.mxu1  ;;  %2194 = vmatmul.msk.f32.vlgmr.msrb.gmra.mxu0 %vm87_vm0, %v1141_v47 }
0x154d   :  { %v1053_v53 = vadd.f32 %v1052_v11, %v2803_v59 }
0x154f   :  { %v1058_v42 = vsel %vm87_vm0, %v1053_v53, -inf }
0x1550   :  { %1059 = vmax.xlane.f32.xlu2 %v1058_v42 }
0x1554   :  { %2195 = vmatmul.msk.f32.gmra.mxu0 %vm87_vm0, %v1143_v46 }
0x1559   :  { %v1295_v54 = vpop.f32.mrf.mxu1 }
0x155a   :  { %v1296_v56 = vadd.f32 %v1295_v54, %v2796_v55 }
0x155c   :  { %v1301_v57 = vsel %vm87_vm0, %v1296_v56, -inf }
0x155d   :  { %1302 = vmax.xlane.f32.xlu0 %v1301_v57 }
0x15b9   :  { %v2849_v58 = vpop.f32.mrf.mxu0 }
0x15bb   :  { %v1057_v62 = vpop.xlane.xlu0 %1056 }
0x15bc   :  { %v1061_v24 = vsub.f32 %v1050_v52, %v1057_v62 }
0x15be   :  { %v1063_v0 = vmul.f32 1.442695, %v1061_v24 }
0x15c0   :  { %2330 = vpow2.f32 %v1063_v0 }
0x15c1   :  { %v2851_v26 = vpop.f32.mrf.mxu0 }
0x15c3   :  { %v1060_v2 = vpop.xlane.xlu2 %1059 }
0x15c4   :  { %v1062_v5 = vsub.f32 %v1053_v53, %v1060_v2 }
0x15c6   :  { %v2853_v1 = vpop.eup %2330  ;;  %v1298_v7 = vpop.f32.mrf.mxu1  ;;  %v1065_v8 = vmul.f32 1.442695, %v1062_v5 }
0x15c7   :  { %v1067_v35 = vsel %vm87_vm0, %v2853_v1, 0.0  ;;  %v1299_v10 = vadd.f32 %v1298_v7, %v2803_v59 }
0x15c8   :  { %1068 = vadd.xlane.f32.xlu0 %v1067_v35  ;;  %2332 = vpow2.f32 %v1065_v8 }
0x15c9   :  { %v1173_v3 = vpop.f32.mrf.mxu0  ;;  %v1304_v18 = vsel %vm87_vm0, %v1299_v10, -inf }
0x15ca   :  { %v1174_v4 = vadd.f32 %v1173_v3, %v2796_v55 }
0x15cc   :  { %v1179_v6 = vsel %vm87_vm0, %v1174_v4, -inf }
0x15cd   :  { %1180 = vmax.xlane.f32.xlu1 %v1179_v6 }
0x15ce   :  { %v2863_v55 = vpop.eup %2332 }
0x15cf   :  { %v1070_v21 = vsel %vm87_vm0, %v2863_v55, 0.0 }
0x15d0   :  { %v1303_v12 = vpop.xlane.xlu0 %1302 }
0x15d1   :  { %v1307_v13 = vsub.f32 %v1296_v56, %v1303_v12  ;;  %v1176_v14 = vpop.f32.mrf.mxu0 }
0x15d2   :  { %v1177_v15 = vadd.f32 %v1176_v14, %v2803_v59 }
0x15d3   :  { %v1309_v16 = vmul.f32 1.442695, %v1307_v13 }
0x15d4   :  { %v1182_v17 = vsel %vm87_vm0, %v1177_v15, -inf }
0x15d5   :  { %2334 = vpow2.f32 %v1309_v16  ;;  %1183 = vmax.xlane.f32.xlu2 %v1182_v17  ;;  %1305 = vmax.xlane.f32.xlu1 %v1304_v18 }
0x15db   :  { %v2865_v19 = vpop.eup %2334 }
0x15dc   :  { %v1313_v20 = vsel %vm87_vm0, %v2865_v19, 0.0 }
0x15dd   :  { %1314 = vadd.xlane.f32.xlu0 %v1313_v20  ;;  %1071 = vadd.xlane.f32.xlu2 %v1070_v21 }
0x15f5   :  { %2241 = vrot.lane.b32.xlu2 %v2783_v9, %s2389_s25 }
0x163b   :  { %v1069_v59 = vpop.xlane.xlu0 %1068 }
0x163c   :  { %2336 = vrcp.f32 %v1069_v59  ;;  %v1084_v45 = vand.u32 2147483648, %v1069_v59  ;;  %vm1078_vm12 = vweird.f32 %v1069_v59  ;;  %v1082_v48 = vand.u32 2147483647, %v1069_v59 }
0x163e   :  { %v1085_v52 = vor.u32 1.1754944e-38, %v1084_v45  ;;  %vm1083_vm15 = vcmp.eq.f32.partialorder %v1082_v48, 8.507059e+37 }
0x1640   :  { %v1181_v22 = vpop.xlane.xlu1 %1180 }
0x1641   :  { %v1185_v23 = vsub.f32 %v1174_v4, %v1181_v22 }
0x1642   :  { %v2337_v36 = vpop.eup %2336 }
0x1643   :  { %v1187_v25 = vmul.f32 1.442695, %v1185_v23  ;;  %v1074_v27 = vmul.f32 %v2337_v36, %v1069_v59  ;;  %vm1079_vm11 = vweird.f32 %v2337_v36 }
0x1644   :  { %vm1080_vm13 = vmor %vm1078_vm12, %vm1079_vm11 }
0x1645   :  { %2338 = vpow2.f32 %v1187_v25  ;;  %v1075_v34 = vsub.f32 1.0, %v1074_v27 }
0x1647   :  { %v1076_v39 = vmul.f32 %v2337_v36, %v1075_v34 }
0x1648   :  { %v1184_v28 = vpop.xlane.xlu2 %1183  ;;  %v1306_v29 = vpop.xlane.xlu1 %1305 }
0x1649   :  { %v1186_v32 = vsub.f32 %v1177_v15, %v1184_v28  ;;  %v1308_v30 = vsub.f32 %v1299_v10, %v1306_v29  ;;  %v1077_v41 = vadd.f32 %v2337_v36, %v1076_v39 }
0x164b   :  { %v2873_v31 = vpop.eup %2338  ;;  %v1189_v33 = vmul.f32 1.442695, %v1186_v32  ;;  %v1311_v37 = vmul.f32 1.442695, %v1308_v30  ;;  %v1081_v51 = vsel %vm1080_vm13, %v2337_v36, %v1077_v41 }
0x164c   :  { %v1191_v38 = vsel %vm87_vm0, %v2873_v31, 0.0  ;;  %v1086_v11 = vsel %vm1083_vm15, %v1085_v52, %v1081_v51 }
0x164d   :  { %2340 = vpow2.f32 %v1189_v33  ;;  %1192 = vadd.xlane.f32.xlu1 %v1191_v38  ;;  %v1087_v57 = vmul.f32 %v2853_v1, %v1086_v11 }
0x164e   :  { %2342 = vpow2.f32 %v1311_v37  ;;  %v1476_v37 = vld [vmem:[%s3256_s11 + $0x28] sm:$0xff] }
0x1650   :  { %v1072_v40 = vpop.xlane.xlu2 %1071  ;;  %v1315_v1 = vpop.xlane.xlu0 %1314 }
0x1651   :  { %2344 = vrcp.f32 %v1072_v40  ;;  %v1099_v56 = vand.u32 2147483648, %v1072_v40  ;;  %v1097_v24 = vand.u32 2147483647, %v1072_v40  ;;  %vm1093_vm3 = vweird.f32 %v1072_v40 }
0x1652   :  { %2346 = vrcp.f32 %v1315_v1  ;;  %vm1324_vm9 = vweird.f32 %v1315_v1  ;;  %v1330_v22 = vand.u32 2147483648, %v1315_v1  ;;  %v1328_v23 = vand.u32 2147483647, %v1315_v1 }
0x1653   :  { %v2877_v43 = vpop.eup %2340  ;;  %v1100_v35 = vor.u32 1.1754944e-38, %v1099_v56  ;;  %vm1098_vm5 = vcmp.eq.f32.partialorder %v1097_v24, 8.507059e+37 }
0x1654   :  { %v2879_v47 = vpop.eup %2342  ;;  %v1194_v49 = vsel %vm87_vm0, %v2877_v43, 0.0  ;;  %v1331_v29 = vor.u32 1.1754944e-38, %v1330_v22  ;;  %vm1329_vm12 = vcmp.eq.f32.partialorder %v1328_v23, 8.507059e+37 }
0x1655   :  { %1195 = vadd.xlane.f32.xlu1 %v1194_v49  ;;  %v1316_v50 = vsel %vm87_vm0, %v2879_v47, 0.0 }
0x1656   :  { %1317 = vadd.xlane.f32.xlu0 %v1316_v50 }
0x1657   :  { %v2345_v63 = vpop.eup %2344 }
0x1658   :  { %v2242_v44 = vpop.permute.xlu2 %2241  ;;  %v1089_v53 = vmul.f32 %v2345_v63, %v1072_v40  ;;  %vm1094_vm2 = vweird.f32 %v2345_v63  ;;  %v2347_v6 = vpop.eup %2346 }
0x1659   :  { %v2243_v42 = vunpack.i.l.bf16 %v2242_v44  ;;  %v2244_v54 = vunpack.i.h.bf16 %v2242_v44  ;;  %vm1095_vm4 = vmor %vm1093_vm3, %vm1094_vm2  ;;  %v1320_v7 = vmul.f32 %v2347_v6, %v1315_v1  ;;  %vm1325_vm6 = vweird.f32 %v2347_v6 }
0x165a   :  { %v1090_v46 = vsub.f32 1.0, %v1089_v53  ;;  %vm1326_vm10 = vmor %vm1324_vm9, %vm1325_vm6  ;;  %v1487_v53 = vld [vmem:[%s3258_s12] sm:$0x3] }
0x165b   :  { %1131 = vmatpush.msra.mxu3 %v2243_v42  ;;  %v1321_v13 = vsub.f32 1.0, %v1320_v7  ;;  %v843_v7 = vld [vmem:[%s3255_s9 + $0x38] sm:$0xff] }
0x165c   :  { %v1091_v62 = vmul.f32 %v2345_v63, %v1090_v46  ;;  %1432 = vmatpush.msra.mxu0 %v843_v7 }
0x165d   :  { %1132 = vmatpush.msra.mxu3 %v2244_v54  ;;  %v1322_v16 = vmul.f32 %v2347_v6, %v1321_v13  ;;  %v838_v13 = vld [vmem:[%s3255_s9 + $0x10] sm:$0xff] }
0x165e   :  { %2190 = vmatmul.msk.f32.vlgmr.msra.gmra.mxu3 %vm87_vm0, %v1087_v57  ;;  %v1092_v0 = vadd.f32 %v2345_v63, %v1091_v62 }
0x1660   :  { %v1096_v2 = vsel %vm1095_vm4, %v2345_v63, %v1092_v0 }
0x1661   :  { %v1101_v3 = vsel %vm1098_vm5, %v1100_v35, %v1096_v2 }
0x1662   :  { %v1102_v4 = vmul.f32 %v2863_v55, %v1101_v3  ;;  %v1323_v55 = vadd.f32 %v2347_v6, %v1322_v16 }
0x1664   :  { %v1327_v36 = vsel %vm1326_vm10, %v2347_v6, %v1323_v55 }
0x1665   :  { %v1332_v33 = vsel %vm1329_vm12, %v1331_v29, %v1327_v36  ;;  %v1482_v29 = vld [vmem:[%s3256_s11 + $0x58] sm:$0xff] }
0x1666   :  { %2191 = vmatmul.msk.f32.gmra.mxu3 %vm87_vm0, %v1102_v4  ;;  %v1333_v51 = vmul.f32 %v2865_v19, %v1332_v33  ;;  %v1478_v33 = vld [vmem:[%s3256_s11 + $0x38] sm:$0xff] }
0x166a   :  { %2251 = vrot.lane.b32.xlu0 %v2783_v9, %s2392_s2 }
0x166e   :  { %2246 = vrot.lane.b32.xlu1 %v2783_v9, %s2393_s30 }
0x16c0   :  { %v1193_v5 = vpop.xlane.xlu1 %1192 }
0x16c1   :  { %2348 = vrcp.f32 %v1193_v5  ;;  %v1208_v32 = vand.u32 2147483648, %v1193_v5  ;;  %vm1202_vm13 = vweird.f32 %v1193_v5  ;;  %v1206_v30 = vand.u32 2147483647, %v1193_v5 }
0x16c3   :  { %v1209_v45 = vor.u32 1.1754944e-38, %v1208_v32  ;;  %vm1207_vm3 = vcmp.eq.f32.partialorder %v1206_v30, 8.507059e+37  ;;  %v1481_v32 = vld [vmem:[%s3256_s11 + $0x50] sm:$0xff]  ;;  %v1480_v30 = vld [vmem:[%s3256_s11 + $0x48] sm:$0xff] }
0x16c7   :  { %v2349_v12 = vpop.eup %2348 }
0x16c8   :  { %v2896_v10 = vpop.xlane.xlu1 %1195  ;;  %v1198_v14 = vmul.f32 %v2349_v12, %v1193_v5  ;;  %vm1203_vm11 = vweird.f32 %v2349_v12 }
0x16c9   :  { %v2893_v8 = vpop.xlane.xlu0 %1317  ;;  %vm2904_vm15 = vmor %vm1202_vm13, %vm1203_vm11  ;;  %v1223_v54 = vand.u32 2147483648, %v2896_v10  ;;  %vm1217_vm9 = vweird.f32 %v2896_v10  ;;  %v1221_v62 = vand.u32 2147483647, %v2896_v10  ;;  %vm1412_vm13 = vcmask 392192  }
0x16ca   :  { %2350 = vrcp.f32 %v2893_v8  ;;  %v1199_v9 = vsub.f32 1.0, %v1198_v14  ;;  %v1345_v48 = vand.u32 2147483648, %v2893_v8  ;;  %vm1339_vm4 = vweird.f32 %v2893_v8  ;;  %v837_v14 = vld [vmem:[%s3255_s9 + $0x8] sm:$0xff] }
0x16cb   :  { %2352 = vrcp.f32 %v2896_v10  ;;  %v1343_v52 = vand.u32 2147483647, %v2893_v8  ;;  %v1224_v35 = vor.u32 1.1754944e-38, %v1223_v54  ;;  %vm1222_vm12 = vcmp.eq.f32.partialorder %v1221_v62, 8.507059e+37 }
0x16cc   :  { %v1200_v20 = vmul.f32 %v2349_v12, %v1199_v9  ;;  %v1346_v19 = vor.u32 1.1754944e-38, %v1345_v48 }
0x16cd   :  { %vm1344_vm10 = vcmp.eq.f32.partialorder %v1343_v52, 8.507059e+37  ;;  %v1473_v52 = vld [vmem:[%s3256_s11 + $0x10] sm:$0xff] }
0x16ce   :  { %v1201_v25 = vadd.f32 %v2349_v12, %v1200_v20 }
0x16d0   :  { %v2351_v15 = vpop.eup %2350  ;;  %v1205_v39 = vsel %vm2904_vm15, %v2349_v12, %v1201_v25  ;;  %v839_v12 = vld [vmem:[%s3255_s9 + $0x18] sm:$0xff] }
0x16d1   :  { %v1335_v17 = vmul.f32 %v2351_v15, %v2893_v8  ;;  %v2900_v18 = vpop.eup %2352  ;;  %vm1340_vm2 = vweird.f32 %v2351_v15  ;;  %v1210_v63 = vsel %vm1207_vm3, %v1209_v45, %v1205_v39  ;;  %v841_v8 = vld [vmem:[%s3255_s9 + $0x28] sm:$0xff] }
0x16d2   :  { %v1213_v59 = vmul.f32 %v2900_v18, %v2896_v10  ;;  %vm2915_vm5 = vmor %vm1339_vm4, %vm1340_vm2  ;;  %vm1218_vm6 = vweird.f32 %v2900_v18  ;;  %v1211_v57 = vmul.f32 %v2873_v31, %v1210_v63  ;;  %v840_v10 = vld [vmem:[%s3255_s9 + $0x20] sm:$0xff]  ;;  %v1472_v63 = vld [vmem:[%s3256_s11 + $0x8] sm:$0xff] }
0x16d3   :  { %v1336_v21 = vsub.f32 1.0, %v1335_v17  ;;  %vm1219_vm11 = vmor %vm1217_vm9, %vm1218_vm6 }
0x16d4   :  { %v1214_v28 = vsub.f32 1.0, %v1213_v59 }
0x16d5   :  { %v1337_v27 = vmul.f32 %v2351_v15, %v1336_v21 }
0x16d6   :  { %v1215_v40 = vmul.f32 %v2900_v18, %v1214_v28  ;;  %v1483_v28 = vld [vmem:[%s3256_s11 + $0x60] sm:$0xff] }
0x16d7   :  { %v1338_v41 = vadd.f32 %v2351_v15, %v1337_v27  ;;  %v1484_v27 = vld [vmem:[%s3256_s11 + $0x68] sm:$0xff] }
0x16d8   :  { %v1216_v46 = vadd.f32 %v2900_v18, %v1215_v40  ;;  %v2255_v40 = vld [vmem:[%s3254_s10] ss:$0 sm:$0xff] }
0x16d9   :  { %v1342_v42 = vsel %vm2915_vm5, %v2351_v15, %v1338_v41  ;;  %v836_v15 = vld [vmem:[%s3255_s9] sm:$0xff] }
0x16da   :  { %v1347_v24 = vsel %vm1344_vm10, %v1346_v19, %v1342_v42  ;;  %v1220_v0 = vsel %vm1219_vm11, %v2900_v18, %v1216_v46  ;;  %v1497_v42 = vperm.slane %v1487_v53, 0  ;;  %v1498_v19 = vperm.slane %v1487_v53, 1 }
0x16db   :  { %v1348_v2 = vmul.f32 %v2879_v47, %v1347_v24  ;;  %v1225_v4 = vsel %vm1222_vm12, %v1224_v35, %v1220_v0 }
0x16dc   :  { %v2252_v34 = vpop.permute.xlu0 %2251  ;;  %v1226_v31 = vmul.f32 %v2877_v43, %v1225_v4  ;;  %v842_v43 = vld [vmem:[%s3255_s9 + $0x30] sm:$0xff] }
0x16dd   :  { %v2253_v38 = vunpack.i.l.bf16 %v2252_v34  ;;  %v2254_v49 = vunpack.i.h.bf16 %v2252_v34  ;;  %1433 = vmatpush.msra.mxu0 %v842_v43  ;;  %v1479_v34 = vld [vmem:[%s3256_s11 + $0x40] sm:$0xff] }
0x16df   :  { %1375 = vmatpush.msrb.mxu3 %v2253_v38  ;;  %1434 = vmatpush.msra.mxu0 %v841_v8  ;;  %v1474_v38 = vld [vmem:[%s3256_s11 + $0x18] sm:$0xff] }
0x16e0   :  { %v2247_v50 = vpop.permute.xlu1 %2246 }
0x16e1   :  { %1376 = vmatpush.msrb.mxu3 %v2254_v49  ;;  %v2248_v44 = vunpack.i.l.bf16 %v2247_v50  ;;  %v1134_v11 = vpop.f32.mrf.mxu3  ;;  %v2249_v56 = vunpack.i.h.bf16 %v2247_v50  ;;  %1435 = vmatpush.msra.mxu0 %v840_v10  ;;  %v1447_v49 = vld [vmem:[%s3257_s1] sm:$0xf]  ;;  %v1477_v50 = vld [vmem:[%s3256_s11 + $0x30] sm:$0xff] }
0x16e2   :  { %2202 = vmatmul.msk.f32.vlgmr.msrb.gmra.mxu3 %vm87_vm0, %v1333_v51  ;;  %1386 = vrot.lane.b32.xlu2 %v1134_v11, %s2390_s8  ;;  %v1475_v51 = vld [vmem:[%s3256_s11 + $0x20] sm:$0xff] }
0x16e3   :  { %1253 = vmatpush.msra.mxu2 %v2248_v44  ;;  %1436 = vmatpush.msra.mxu0 %v839_v12  ;;  %v1471_v44 = vld [vmem:[%s3256_s11] sm:$0xff] }
0x16e5   :  { %1254 = vmatpush.msra.mxu2 %v2249_v56  ;;  %1437 = vmatpush.msra.mxu0 %v838_v13 }
0x16e6   :  { %2196 = vmatmul.msk.f32.vlgmr.msra.gmra.mxu2 %vm87_vm0, %v1211_v57 }
0x16e7   :  { %1438 = vmatpush.msra.mxu0 %v837_v14 }
0x16e9   :  { %v1137_v3 = vpop.f32.mrf.mxu3  ;;  %1439 = vmatpush.msra.mxu0 %v836_v15 }
0x16ea   :  { %2203 = vmatmul.msk.f32.gmra.mxu3 %vm87_vm0, %v1348_v2  ;;  %1388 = vrot.lane.b32.xlu1 %v1137_v3, %s2390_s8 }
0x16ee   :  { %2197 = vmatmul.msk.f32.gmra.mxu2 %vm87_vm0, %v1226_v31 }
0x173c   :  { %v1387_v16 = vpop.permute.xlu2 %1386 }
0x173d   :  { %v1408_v17 = vsel %vm87_vm0, %v2849_v58, %v1387_v16  ;;  %v1486_v58 = vld [vmem:[%s3256_s11 + $0x78] sm:$0xff] }
0x173e   :  { %1532 = vmatpush.msra.mxu3 %v1486_v58  ;;  %v1489_v58 = vld [vmem:[%s3259_s13 + $0x8] sm:$0xff] }
0x1740   :  { %1533 = vmatpush.msra.mxu3 %v1484_v27  ;;  %v1488_v27 = vld [vmem:[%s3259_s13] sm:$0xff] }
0x1742   :  { %1534 = vmatpush.msra.mxu3 %v1482_v29 }
0x1744   :  { %1535 = vmatpush.msra.mxu3 %v1480_v30 }
0x1746   :  { %1536 = vmatpush.msra.mxu3 %v1478_v33 }
0x1748   :  { %1537 = vmatpush.msra.mxu3 %v1476_v37 }
0x174a   :  { %1538 = vmatpush.msra.mxu3 %v1474_v38 }
0x174c   :  { %1539 = vmatpush.msra.mxu3 %v1472_v63 }
0x175c   :  { %v1389_v21 = vpop.permute.xlu1 %1388 }
0x175d   :  { %v1409_v22 = vsel %vm87_vm0, %v2851_v26, %v1389_v21  ;;  %v1485_v26 = vld [vmem:[%s3256_s11 + $0x70] sm:$0xff] }
0x175e   :  { %1512 = vmatpush.msra.mxu1 %v1485_v26 }
0x1760   :  { %1513 = vmatpush.msra.mxu1 %v1483_v28 }
0x1762   :  { %1514 = vmatpush.msra.mxu1 %v1481_v32 }
0x1764   :  { %1515 = vmatpush.msra.mxu1 %v1479_v34 }
0x1765   :  { %v1378_v1 = vpop.f32.mrf.mxu3 }
0x1766   :  { %1402 = vrot.lane.b32.xlu0 %v1378_v1, %s2391_s29  ;;  %1516 = vmatpush.msra.mxu1 %v1477_v50 }
0x1768   :  { %1517 = vmatpush.msra.mxu1 %v1475_v51 }
0x1769   :  { %v1256_v5 = vpop.f32.mrf.mxu2 }
0x176a   :  { %1394 = vrot.lane.b32.xlu2 %v1256_v5, %s2387_s24  ;;  %1518 = vmatpush.msra.mxu1 %v1473_v52 }
0x176c   :  { %1519 = vmatpush.msra.mxu1 %v1471_v44 }
0x176d   :  { %v1381_v6 = vpop.f32.mrf.mxu3 }
0x176e   :  { %1404 = vrot.lane.b32.xlu0 %v1381_v6, %s2391_s29 }
0x1771   :  { %v1259_v47 = vpop.f32.mrf.mxu2 }
0x1772   :  { %1396 = vrot.lane.b32.xlu2 %v1259_v47, %s2387_s24 }
0x17c4   :  { %v1395_v9 = vpop.permute.xlu2 %1394 }
0x17c5   :  { %v1410_v18 = vsel %vm198_vm7, %v1408_v17, %v1395_v9 }
0x17cc   :  { %v1397_v59 = vpop.permute.xlu2 %1396 }
0x17cd   :  { %v1411_v23 = vsel %vm198_vm7, %v1409_v22, %v1397_v59  ;;  %v1495_v22 = vld [vmem:[%s3259_s13 + $0x38] sm:$0xff] }
0x17ce   :  { %1611 = vmatpush.msrb.mxu0 %v1495_v22 }
0x17d8   :  { %v1403_v55 = vpop.permute.xlu0 %1402 }
0x17d9   :  { %v1413_v20 = vsel %vm1412_vm13, %v1410_v18, %v1403_v55 }
0x17da   :  { %2204 = vmatmul.msk.f32.vlgmr.msra.gmra.mxu0 %vm206_vm8, %v1413_v20 }
0x17e0   :  { %v1405_v36 = vpop.permute.xlu0 %1404 }
0x17e1   :  { %v1414_v25 = vsel %vm1412_vm13, %v1411_v23, %v1405_v36  ;;  %v1494_v23 = vld [vmem:[%s3259_s13 + $0x30] sm:$0xff]  ;;  %v1493_v36 = vld [vmem:[%s3259_s13 + $0x28] sm:$0xff] }
0x17e2   :  { %2205 = vmatmul.msk.f32.gmra.mxu0 %vm206_vm8, %v1414_v25  ;;  %v1490_v25 = vld [vmem:[%s3259_s13 + $0x10] sm:$0xff] }
0x17e3   :  { %1612 = vmatpush.msrb.mxu0 %v1494_v23 }
0x17e5   :  { %1613 = vmatpush.msrb.mxu0 %v1493_v36 }
0x1857   :  { %v1441_v39 = vpop.f32.mrf.mxu0 }
0x1858   :  { %v1442_v48 = vadd.f32 %v2255_v40, %v1441_v39 }
0x185f   :  { %v1444_v41 = vpop.f32.mrf.mxu0 }
0x1860   :  { %v1445_v45 = vadd.f32 %v2255_v40, %v1444_v41 }
0x1862   :  { %1465 = vmatpush.msrb.mxu2 %v1445_v45 }
0x1864   :  { %1466 = vmatpush.msrb.mxu2 %v1442_v48 }
0x1865   :  { %2206 = vmatmul.msk.f32.vlgmr.msrb.gmra.mxu2 %vm87_vm0, %v1447_v49 }
0x18e8   :  { %v1468_v11 = vpop.f32.mrf.mxu2 }
0x18e9   :  { %2208 = vmatmul.msk.f32.vlgmr.msra.gmra.mxu3 %vm206_vm8, %v1468_v11  ;;  %2207 = vmatmul.msk.f32.vlgmr.msra.gmra.mxu1 %vm206_vm8, %v1468_v11 }
0x1966   :  { %v1521_v46 = vpop.f32.mrf.mxu1 }
0x1967   :  { %v1522_v54 = vadd.f32 %v1521_v46, %v1497_v42 }
0x1969   :  { %v1594_v62 = vrot.slane %v1522_v54, 2 }
0x196c   :  { %v1541_v56 = vpop.f32.mrf.mxu3 }
0x196d   :  { %v1542_v57 = vadd.f32 %v1541_v56, %v1498_v19  ;;  %v1697_v56 = vld [vmem:[%s3260_s14 + $0x70] sm:$0xff] }
0x196e   :  { %1725 = vmatpush.msra.mxu2 %v1697_v56 }
0x196f   :  { %v1544_v24 = vsel %vm149_vm1, %v1522_v54, %v1542_v57  ;;  %v1597_v0 = vrot.slane %v1542_v57, 6  ;;  %v1698_v57 = vld [vmem:[%s3260_s14 + $0x78] sm:$0xff] }
0x1970   :  { %2354 = vtanh.f32 %v1544_v24  ;;  %v2209_v3 = vmul.f32 -1.442695, %v1544_v24  ;;  %1745 = vmatpush.msrb.mxu1 %v1698_v57  ;;  %v1696_v24 = vld [vmem:[%s3260_s14 + $0x68] sm:$0xff] }
0x1971   :  { %v1599_v35 = vsel %vm149_vm1, %v1594_v62, %v1597_v0  ;;  %v1695_v62 = vld [vmem:[%s3260_s14 + $0x60] sm:$0xff]  ;;  %v1693_v0 = vld [vmem:[%s3260_s14 + $0x50] sm:$0xff] }
0x1972   :  { %2356 = vpow2.f32 %v2209_v3  ;;  %1726 = vmatpush.msra.mxu2 %v1695_v62  ;;  %1746 = vmatpush.msrb.mxu1 %v1696_v24 }
0x1974   :  { %1727 = vmatpush.msra.mxu2 %v1693_v0 }
0x1976   :  { %v2355_v2 = vpop.eup %2354 }
0x1977   :  { %1567 = vrot.lane.b32.xlu1 %v2355_v2, %s2386_s23 }
0x1978   :  { %v2357_v4 = vpop.eup %2356 }
0x1979   :  { %v1548_v31 = vadd.f32 1.0, %v2357_v4 }
0x197b   :  { %2358 = vrcp.f32 %v1548_v31  ;;  %v1560_v43 = vand.u32 2147483648, %v1548_v31  ;;  %vm1554_vm2 = vweird.f32 %v1548_v31  ;;  %v1558_v8 = vand.u32 2147483647, %v1548_v31 }
0x197d   :  { %v1561_v12 = vor.u32 1.1754944e-38, %v1560_v43  ;;  %vm1559_vm4 = vcmp.eq.f32.partialorder %v1558_v8, 8.507059e+37  ;;  %v1685_v43 = vld [vmem:[%s3260_s14 + $0x10] sm:$0xff]  ;;  %v1686_v8 = vld [vmem:[%s3260_s14 + $0x18] sm:$0xff] }
0x1981   :  { %v2359_v1 = vpop.eup %2358 }
0x1982   :  { %v1550_v5 = vmul.f32 %v2359_v1, %v1548_v31  ;;  %vm1555_vm15 = vweird.f32 %v2359_v1  ;;  %v1691_v31 = vld [vmem:[%s3260_s14 + $0x40] sm:$0xff] }
0x1983   :  { %vm1556_vm3 = vmor %vm1554_vm2, %vm1555_vm15  ;;  %1728 = vmatpush.msra.mxu2 %v1691_v31 }
0x1984   :  { %v1551_v6 = vsub.f32 1.0, %v1550_v5  ;;  %v1689_v5 = vld [vmem:[%s3260_s14 + $0x30] sm:$0xff] }
0x1985   :  { %1729 = vmatpush.msra.mxu2 %v1689_v5 }
0x1986   :  { %v1552_v47 = vmul.f32 %v2359_v1, %v1551_v6  ;;  %v1690_v6 = vld [vmem:[%s3260_s14 + $0x38] sm:$0xff] }
0x1988   :  { %v1553_v7 = vadd.f32 %v2359_v1, %v1552_v47  ;;  %v1687_v47 = vld [vmem:[%s3260_s14 + $0x20] sm:$0xff] }
0x1989   :  { %1730 = vmatpush.msra.mxu2 %v1687_v47 }
0x198a   :  { %v1557_v10 = vsel %vm1556_vm3, %v2359_v1, %v1553_v7  ;;  %v1692_v1 = vld [vmem:[%s3260_s14 + $0x48] sm:$0xff]  ;;  %vm1809_vm3 = vcmask 31744  }
0x198b   :  { %v1562_v14 = vsel %vm1559_vm4, %v1561_v12, %v1557_v10  ;;  %v1688_v7 = vld [vmem:[%s3260_s14 + $0x28] sm:$0xff]  ;;  %1731 = vmatpush.msra.mxu2 %v1685_v43  ;;  %v1683_v10 = vld [vmem:[%s3260_s14] sm:$0xff] }
0x198c   :  { %v1565_v16 = vmul.f32 0.0, %v1562_v14  ;;  %v1684_v12 = vld [vmem:[%s3260_s14 + $0x8] sm:$0xff] }
0x198d   :  { %1732 = vmatpush.msra.mxu2 %v1683_v10 }
0x19e9   :  { %v1568_v13 = vpop.permute.xlu1 %1567 }
0x19ea   :  { %v1570_v15 = vmul.f32 %v1568_v13, %v1562_v14 }
0x19ec   :  { %1572 = vrot.lane.b32.xlu2 %v1570_v15, %s2387_s24 }
0x1a46   :  { %v1573_v9 = vpop.permute.xlu2 %1572 }
0x1a47   :  { %v1575_v17 = vadd.f32 %v1573_v9, %v1565_v16 }
0x1a49   :  { %2360 = vtanh.f32 %v1575_v17 }
0x1a4f   :  { %v2361_v18 = vpop.eup %2360 }
0x1a50   :  { %1578 = vrot.lane.b32.xlu0 %v2361_v18, %s2386_s23 }
0x1ac2   :  { %v1579_v55 = vpop.permute.xlu0 %1578 }
0x1ac3   :  { %v1581_v20 = vmul.f32 %v1579_v55, %v1562_v14 }
0x1ac5   :  { %v1583_v21 = vmul.f32 %v1581_v20, %v2555_v61  ;;  %v1582_v59 = vmul.f32 %v2552_v60, %v1581_v20  ;;  %v1492_v60 = vld [vmem:[%s3259_s13 + $0x20] sm:$0xff]  ;;  %v1491_v61 = vld [vmem:[%s3259_s13 + $0x18] sm:$0xff]  ;;  %v1673_v53 = vrot.slane %v1581_v20, 2 }
0x1ac6   :  { %1614 = vmatpush.msrb.mxu0 %v1492_v60 }
0x1ac7   :  { %1589 = vrot.lane.b32.xlu2 %v1583_v21, %s2386_s23  ;;  %1585 = vrot.lane.b32.xlu1 %v1582_v59, %s2387_s24 }
0x1ac8   :  { %1615 = vmatpush.msrb.mxu0 %v1491_v61 }
0x1aca   :  { %1616 = vmatpush.msrb.mxu0 %v1490_v25 }
0x1acc   :  { %1617 = vmatpush.msrb.mxu0 %v1489_v58 }
0x1ace   :  { %1618 = vmatpush.msrb.mxu0 %v1488_v27 }
0x1b21   :  { %v1590_v26 = vpop.permute.xlu2 %1589 }
0x1b39   :  { %v1586_v28 = vpop.permute.xlu1 %1585 }
0x1b3a   :  { %v1592_v29 = vsel %vm198_vm7, %v1586_v28, %v1590_v26 }
0x1b3b   :  { %2210 = vmatmul.msk.f32.vlgmr.msrb.gmra.mxu0 %vm206_vm8, %v1592_v29  ;;  %v1682_v29 = vld [vmem:[%s3262_s3] sm:$0xf] }
0x1bb8   :  { %v1620_v32 = vpop.f32.mrf.mxu0 }
0x1bb9   :  { %v1621_v30 = vadd.f32 %v1620_v32, %v1599_v35  ;;  %v1694_v35 = vld [vmem:[%s3260_s14 + $0x58] sm:$0xff] }
0x1bba   :  { %1747 = vmatpush.msrb.mxu1 %v1694_v35 }
0x1bbb   :  { %2362 = vtanh.f32 %v1621_v30  ;;  %v2211_v33 = vmul.f32 -1.442695, %v1621_v30 }
0x1bbc   :  { %1748 = vmatpush.msrb.mxu1 %v1692_v1 }
0x1bbd   :  { %2364 = vpow2.f32 %v2211_v33 }
0x1bbe   :  { %1749 = vmatpush.msrb.mxu1 %v1690_v6 }
0x1bc0   :  { %1750 = vmatpush.msrb.mxu1 %v1688_v7 }
0x1bc1   :  { %v2363_v34 = vpop.eup %2362 }
0x1bc2   :  { %1645 = vrot.lane.b32.xlu0 %v2363_v34, %s2386_s23  ;;  %1751 = vmatpush.msrb.mxu1 %v1686_v8 }
0x1bc3   :  { %v2365_v37 = vpop.eup %2364 }
0x1bc4   :  { %v1626_v38 = vadd.f32 1.0, %v2365_v37  ;;  %1752 = vmatpush.msrb.mxu1 %v1684_v12 }
0x1bc6   :  { %2366 = vrcp.f32 %v1626_v38  ;;  %v1638_v49 = vand.u32 2147483648, %v1626_v38  ;;  %vm1632_vm6 = vweird.f32 %v1626_v38  ;;  %v1636_v50 = vand.u32 2147483647, %v1626_v38 }
0x1bc8   :  { %v1639_v52 = vor.u32 1.1754944e-38, %v1638_v49  ;;  %vm1637_vm10 = vcmp.eq.f32.partialorder %v1636_v50, 8.507059e+37 }
0x1bcc   :  { %v2367_v39 = vpop.eup %2366 }
0x1bcd   :  { %v1628_v40 = vmul.f32 %v2367_v39, %v1626_v38  ;;  %vm1633_vm5 = vweird.f32 %v2367_v39 }
0x1bce   :  { %vm1634_vm9 = vmor %vm1632_vm6, %vm1633_vm5 }
0x1bcf   :  { %v1629_v41 = vsub.f32 1.0, %v1628_v40 }
0x1bd1   :  { %v1630_v45 = vmul.f32 %v2367_v39, %v1629_v41 }
0x1bd3   :  { %v1631_v48 = vadd.f32 %v2367_v39, %v1630_v45 }
0x1bd5   :  { %v1635_v51 = vsel %vm1634_vm9, %v2367_v39, %v1631_v48 }
0x1bd6   :  { %v1640_v44 = vsel %vm1637_vm10, %v1639_v52, %v1635_v51 }
0x1bd7   :  { %v1643_v42 = vmul.f32 %v1640_v44, %v1575_v17 }
0x1c34   :  { %v1646_v63 = vpop.permute.xlu0 %1645 }
0x1c35   :  { %v1648_v11 = vmul.f32 %v1646_v63, %v1640_v44 }
0x1c37   :  { %1650 = vrot.lane.b32.xlu1 %v1648_v11, %s2387_s24 }
0x1c3f   :  { %1674 = vrot.lane.b32.xlu1 %v1673_v53, %s2386_s23 }
0x1ca9   :  { %v1651_v46 = vpop.permute.xlu1 %1650 }
0x1caa   :  { %v1653_v19 = vadd.f32 %v1651_v46, %v1643_v42 }
0x1cac   :  { %2368 = vtanh.f32 %v1653_v19 }
0x1cb1   :  { %v1675_v14 = vpop.permute.xlu1 %1674 }
0x1cb2   :  { %v2369_v54 = vpop.eup %2368 }
0x1cb3   :  { %1656 = vrot.lane.b32.xlu2 %v2369_v54, %s2386_s23 }
0x1cbb   :  { %1661 = vrot.lane.b32.xlu2 %v1581_v20, %s2387_s24  ;;  %v1699_v20 = vld [vmem:[%s3261_s15] sm:$0x3] }
0x1cbc   :  { %v1711_v21 = vperm.slane %v1699_v20, 1  ;;  %v1710_v23 = vperm.slane %v1699_v20, 0 }
0x1d0d   :  { %v1657_v2 = vpop.permute.xlu2 %1656 }
0x1d0e   :  { %v1659_v3 = vmul.f32 %v1657_v2, %v1640_v44 }
0x1d10   :  { %1670 = vrot.lane.b32.xlu0 %v1659_v3, %s2387_s24  ;;  %v1665_v4 = vrot.slane %v1659_v3, 2 }
0x1d15   :  { %v1662_v16 = vpop.permute.xlu2 %1661 }
0x1d18   :  { %1666 = vrot.lane.b32.xlu0 %v1665_v4, %s2386_s23 }
0x1d82   :  { %v1671_v13 = vpop.permute.xlu0 %1670 }
0x1d83   :  { %v1677_v15 = vsel %vm198_vm7, %v1671_v13, %v1675_v14 }
0x1d84   :  { %v1679_v9 = vrot.slane %v1677_v15, 6 }
0x1d8a   :  { %v1667_v17 = vpop.permute.xlu0 %1666 }
0x1d8b   :  { %v1669_v18 = vsel %vm198_vm7, %v1662_v16, %v1667_v17 }
0x1d8c   :  { %v1681_v55 = vsel %vm149_vm1, %v1669_v18, %v1679_v9  ;;  %vm1784_vm1 = vcmask 27648  }
0x1d8d   :  { %2212 = vmatmul.msk.f32.vlgmr.msra.gmra.mxu2 %vm206_vm8, %v1681_v55  ;;  %2213 = vmatmul.msk.f32.vlgmr.msrb.gmra.mxu1 %vm206_vm8, %v1681_v55 }
0x1e0a   :  { %v1754_v59 = vpop.f32.mrf.mxu1 }
0x1e0b   :  { %v3132_v22 = vadd.f32 %v1754_v59, %v1711_v21 }
0x1e0d   :  { %2216 = vmatpush.msk.msra.mxu0 %vm810_vm14, %v3132_v22 }
0x1e10   :  { %v1734_v36 = vpop.f32.mrf.mxu2 }
0x1e11   :  { %v1735_v60 = vadd.f32 %v1734_v36, %v1710_v23 }
0x1e13   :  { %1758 = vrot.lane.b32.xlu1 %v1735_v60, %s2386_s23 }
0x1e1b   :  { %1838 = vrot.lane.b32.xlu1 %v1735_v60, %s2391_s29 }
0x1e23   :  { %1836 = vrot.lane.b32.xlu1 %v1735_v60, %s2389_s25 }
0x1e2b   :  { %1996 = vrot.lane.b32.xlu1 %v1735_v60, %s2390_s8 }
0x1e33   :  { %1994 = vrot.lane.b32.xlu1 %v1735_v60, %s2392_s2 }
0x1e3b   :  { %1917 = vrot.lane.b32.xlu1 %v1735_v60, %s2387_s24 }
0x1e85   :  { %v1759_v61 = vpop.permute.xlu1 %1758 }
0x1e86   :  { %2214 = vmatpush.xpose.msk.msrb.mxu3 %vm87_vm0, %v1759_v61 }
0x1e89   :  { %2215 = vmatmul.msk.f32.vlgmr.msrb.gmra.mxu3 %vm87_vm0, %v1735_v60 }
0x1e8d   :  { %v1839_v25 = vpop.permute.xlu1 %1838 }
0x1e8e   :  { %2218 = vmatpush.xpose.msk.msrb.mxu2 %vm87_vm0, %v1839_v25 }
0x1e95   :  { %v1837_v58 = vpop.permute.xlu1 %1836 }
0x1e96   :  { %2219 = vmatmul.msk.f32.vlgmr.msrb.gmra.mxu2 %vm87_vm0, %v1837_v58 }
0x1e9d   :  { %v1997_v27 = vpop.permute.xlu1 %1996 }
0x1e9e   :  { %2226 = vmatpush.xpose.msk.msra.mxu2 %vm87_vm0, %v1997_v27 }
0x1ea5   :  { %v1995_v26 = vpop.permute.xlu1 %1994 }
0x1ea6   :  { %2227 = vmatmul.msk.f32.vlgmr.msra.gmra.mxu2 %vm87_vm0, %v1995_v26 }
0x1ead   :  { %v1918_v28 = vpop.permute.xlu1 %1917 }
0x1eae   :  { %2222 = vmatpush.xpose.msk.msrb.mxu0 %vm87_vm0, %v1918_v28 }
0x1f0c   :  { %v1781_v32 = vpop.f32.mrf.mxu3 }
0x1f0d   :  { %v1782_v30 = vadd.f32 %v1781_v32, %v1682_v29 }
0x1f0f   :  { %v1785_v34 = vsel %vm1784_vm1, %v1782_v30, -inf }
0x1f10   :  { %1786 = vmax.xlane.f32.xlu2 %v1785_v34 }
0x1f19   :  { %v1861_v33 = vpop.f32.mrf.mxu2 }
0x1f1a   :  { %v1862_v50 = vadd.f32 %v1861_v33, %v1682_v29 }
0x1f1c   :  { %v1864_v51 = vsel %vm1784_vm1, %v1862_v50, -inf }
0x1f28   :  { %1915 = vrot.lane.b32.xlu2 %v1735_v60, %s2393_s30 }
0x1f29   :  { %v2019_v37 = vpop.f32.mrf.mxu2 }
0x1f2a   :  { %v2020_v38 = vadd.f32 %v2019_v37, %v1682_v29 }
0x1f2c   :  { %v2022_v39 = vsel %vm1784_vm1, %v2020_v38, -inf }
0x1f2d   :  { %2023 = vmax.xlane.f32.xlu1 %v2022_v39 }
0x1f46   :  { %2046 = vrot.lane.b32.xlu1 %v3132_v22, %s2392_s2 }
0x1f83   :  { %v1787_v40 = vpop.xlane.xlu2 %1786 }
0x1f84   :  { %v1788_v41 = vsub.f32 %v1782_v30, %v1787_v40 }
0x1f86   :  { %v1789_v45 = vmul.f32 1.442695, %v1788_v41 }
0x1f88   :  { %2370 = vpow2.f32 %v1789_v45 }
0x1f8b   :  { %v1916_v47 = vpop.permute.xlu2 %1915 }
0x1f8e   :  { %v2371_v48 = vpop.eup %2370 }
0x1f8f   :  { %v1791_v49 = vsel %vm1784_vm1, %v2371_v48, 0.0 }
0x1f90   :  { %1792 = vadd.xlane.f32.xlu0 %v1791_v49 }
0x1f98   :  { %1865 = vmax.xlane.f32.xlu0 %v1864_v51 }
0x1fa0   :  { %v2024_v52 = vpop.xlane.xlu1 %2023 }
0x1fa1   :  { %v2025_v63 = vsub.f32 %v2020_v38, %v2024_v52 }
0x1fa3   :  { %v2026_v44 = vmul.f32 1.442695, %v2025_v63 }
0x1fa5   :  { %2372 = vpow2.f32 %v2026_v44 }
0x1fab   :  { %v3159_v11 = vpop.eup %2372 }
0x1fac   :  { %v2028_v53 = vsel %vm1784_vm1, %v3159_v11, 0.0 }
0x1fad   :  { %2029 = vadd.xlane.f32.xlu2 %v2028_v53 }
0x1fb8   :  { %v2047_v37 = vpop.permute.xlu1 %2046 }
0x2003   :  { %v1793_v42 = vpop.xlane.xlu0 %1792 }
0x2004   :  { %2374 = vrcp.f32 %v1793_v42  ;;  %v1805_v62 = vand.u32 2147483648, %v1793_v42  ;;  %v1803_v35 = vand.u32 2147483647, %v1793_v42  ;;  %vm1799_vm12 = vweird.f32 %v1793_v42 }
0x2006   :  { %v1806_v3 = vor.u32 1.1754944e-38, %v1805_v62  ;;  %vm1804_vm2 = vcmp.eq.f32.partialorder %v1803_v35, 8.507059e+37  ;;  %v1705_v62 = vld [vmem:[%s3263_s16 + $0x28] sm:$0xff]  ;;  %v1702_v35 = vld [vmem:[%s3263_s16 + $0x10] sm:$0xff] }
0x200a   :  { %v2375_v46 = vpop.eup %2374 }
0x200b   :  { %v1795_v19 = vmul.f32 %v2375_v46, %v1793_v42  ;;  %v1866_v54 = vpop.xlane.xlu0 %1865  ;;  %vm1800_vm11 = vweird.f32 %v2375_v46 }
0x200c   :  { %v1867_v56 = vsub.f32 %v1862_v50, %v1866_v54  ;;  %vm1801_vm15 = vmor %vm1799_vm12, %vm1800_vm11 }
0x200d   :  { %v1796_v57 = vsub.f32 1.0, %v1795_v19 }
0x200e   :  { %v1868_v24 = vmul.f32 1.442695, %v1867_v56  ;;  %v1707_v56 = vld [vmem:[%s3263_s16 + $0x38] sm:$0xff] }
0x200f   :  { %v1797_v0 = vmul.f32 %v2375_v46, %v1796_v57  ;;  %v1706_v57 = vld [vmem:[%s3263_s16 + $0x30] sm:$0xff] }
0x2010   :  { %2376 = vpow2.f32 %v1868_v24  ;;  %v1704_v24 = vld [vmem:[%s3263_s16 + $0x20] sm:$0xff] }
0x2011   :  { %v1798_v2 = vadd.f32 %v2375_v46, %v1797_v0  ;;  %v1703_v0 = vld [vmem:[%s3263_s16 + $0x18] sm:$0xff] }
0x2013   :  { %v1802_v4 = vsel %vm1801_vm15, %v2375_v46, %v1798_v2  ;;  %v1701_v2 = vld [vmem:[%s3263_s16 + $0x8] sm:$0xff] }
0x2014   :  { %v1807_v31 = vsel %vm1804_vm2, %v1806_v3, %v1802_v4  ;;  %v1700_v4 = vld [vmem:[%s3263_s16] sm:$0xff] }
0x2015   :  { %v1808_v1 = vmul.f32 %v2371_v48, %v1807_v31  ;;  %v2121_v31 = vld [vmem:[%s3265_s18 + $0x38] sm:$0xff] }
0x2016   :  { %v2377_v5 = vpop.eup %2376 }
0x2017   :  { %2217 = vmatmul.msk.f32.vlgmr.msra.gmra.mxu0 %vm1809_vm3, %v1808_v1  ;;  %v1870_v6 = vsel %vm1784_vm1, %v2377_v5, 0.0  ;;  %v2120_v1 = vld [vmem:[%s3265_s18 + $0x30] sm:$0xff] }
0x2018   :  { %1871 = vadd.xlane.f32.xlu0 %v1870_v6  ;;  %2102 = vmatpush.msra.mxu0 %v1707_v56  ;;  %v2118_v6 = vld [vmem:[%s3265_s18 + $0x20] sm:$0xff] }
0x201a   :  { %2103 = vmatpush.msra.mxu0 %v1706_v57 }
0x201c   :  { %2104 = vmatpush.msra.mxu0 %v1705_v62 }
0x201e   :  { %2105 = vmatpush.msra.mxu0 %v1704_v24 }
0x201f   :  { %2223 = vmatmul.msk.f32.vlgmr.msrb.gmra.mxu0 %vm87_vm0, %v1916_v47  ;;  %v2117_v47 = vld [vmem:[%s3265_s18 + $0x18] sm:$0xff] }
0x2020   :  { %v2030_v13 = vpop.xlane.xlu2 %2029  ;;  %2106 = vmatpush.msra.mxu0 %v1703_v0 }
0x2021   :  { %v2042_v32 = vand.u32 2147483648, %v2030_v13  ;;  %vm2036_vm11 = vweird.f32 %v2030_v13  ;;  %v2040_v30 = vand.u32 2147483647, %v2030_v13 }
0x2022   :  { %2107 = vmatpush.msra.mxu0 %v1702_v35 }
0x2023   :  { %v2043_v39 = vor.u32 1.1754944e-38, %v2042_v32 }
0x2024   :  { %2108 = vmatpush.msra.mxu0 %v1701_v2 }
0x2026   :  { %2109 = vmatpush.msra.mxu0 %v1700_v4 }
0x208b   :  { %v1872_v12 = vpop.xlane.xlu0 %1871 }
0x208c   :  { %2378 = vrcp.f32 %v1872_v12  ;;  %v1884_v36 = vand.u32 2147483648, %v1872_v12  ;;  %vm1878_vm5 = vweird.f32 %v1872_v12  ;;  %v1882_v61 = vand.u32 2147483647, %v1872_v12 }
0x208d   :  { %2380 = vrcp.f32 %v2030_v13 }
0x208e   :  { %v1885_v26 = vor.u32 1.1754944e-38, %v1884_v36  ;;  %vm1883_vm9 = vcmp.eq.f32.partialorder %v1882_v61, 8.507059e+37 }
0x2092   :  { %v2379_v14 = vpop.eup %2378 }
0x2093   :  { %v1874_v15 = vmul.f32 %v2379_v14, %v1872_v12  ;;  %v2381_v18 = vpop.eup %2380  ;;  %vm1879_vm4 = vweird.f32 %v2379_v14 }
0x2094   :  { %v3166_v7 = vpop.f32.mrf.mxu0  ;;  %v2032_v20 = vmul.f32 %v2381_v18, %v2030_v13  ;;  %vm1880_vm6 = vmor %vm1878_vm5, %vm1879_vm4  ;;  %vm2037_vm10 = vweird.f32 %v2381_v18 }
0x2095   :  { %v1875_v9 = vsub.f32 1.0, %v1874_v15  ;;  %vm2038_vm12 = vmor %vm2036_vm11, %vm2037_vm10  ;;  %v2116_v15 = vld [vmem:[%s3265_s18 + $0x10] sm:$0xff] }
0x2096   :  { %v2033_v59 = vsub.f32 1.0, %v2032_v20 }
0x2097   :  { %v1876_v21 = vmul.f32 %v2379_v14, %v1875_v9  ;;  %v25_v9 = vstv %s3266_s19 }
0x2098   :  { %v2034_v58 = vmul.f32 %v2381_v18, %v2033_v59  ;;  %26 = vst [vmem:[#allocation2] sm:$0x1] %v25_v9 }
0x2099   :  { %v1877_v23 = vadd.f32 %v2379_v14, %v1876_v21 }
0x209b   :  { %v1881_v27 = vsel %vm1880_vm6, %v2379_v14, %v1877_v23 }
0x209c   :  { %v1940_v43 = vpop.f32.mrf.mxu0  ;;  %v1886_v28 = vsel %vm1883_vm9, %v1885_v26, %v1881_v27 }
0x209d   :  { %v1941_v8 = vadd.f32 %v1940_v43, %v1682_v29  ;;  %v2035_v29 = vadd.f32 %v2381_v18, %v2034_v58  ;;  %v1887_v33 = vmul.f32 %v2377_v5, %v1886_v28  ;;  %v2119_v5 = vld [vmem:[%s3265_s18 + $0x28] sm:$0xff] }
0x209f   :  { %v1943_v10 = vsel %vm1784_vm1, %v1941_v8, -inf  ;;  %v2039_v38 = vsel %vm2038_vm12, %v2381_v18, %v2035_v29  ;;  %v2257_v21 = vld [vmem:[#allocation2] ss:$0 sm:$0xff] }
0x20a0   :  { %1944 = vmax.xlane.f32.xlu0 %v1943_v10 }
0x20b4   :  { %1888 = vrot.lane.b32.xlu0 %v3132_v22, %s2389_s25 }
0x2113   :  { %v1945_v16 = vpop.xlane.xlu0 %1944 }
0x2114   :  { %v1946_v17 = vsub.f32 %v1941_v8, %v1945_v16  ;;  %v2115_v16 = vld [vmem:[%s3265_s18 + $0x8] sm:$0xff] }
0x2116   :  { %v1947_v55 = vmul.f32 1.442695, %v1946_v17  ;;  %v2256_v17 = vld [vmem:[%s3264_s17] ss:$0 sm:$0xff] }
0x2118   :  { %2382 = vpow2.f32 %v1947_v55 }
0x211e   :  { %v2383_v60 = vpop.eup %2382 }
0x211f   :  { %v1949_v25 = vsel %vm1784_vm1, %v2383_v60, 0.0  ;;  %vm2041_vm1 = vcmp.eq.f32.partialorder %v2040_v30, 8.507059e+37 }
0x2120   :  { %1950 = vadd.xlane.f32.xlu0 %v1949_v25  ;;  %v2044_v40 = vsel %vm2041_vm1, %v2043_v39, %v2039_v38 }
0x2121   :  { %v2045_v41 = vmul.f32 %v3159_v11, %v2044_v40 }
0x2126   :  { %v1889_v34 = vpop.permute.xlu0 %1888 }
0x2127   :  { %2220 = vmatpush.msk.msra.mxu3 %vm810_vm14, %v1889_v34 }
0x2128   :  { %2221 = vmatmul.msk.f32.vlgmr.msra.gmra.mxu3 %vm1809_vm3, %v1887_v33 }
0x2129   :  { %2228 = vmatpush.msk.msrb.mxu3 %vm810_vm14, %v2047_v37 }
0x2130   :  { %2229 = vmatmul.msk.f32.vlgmr.msrb.gmra.mxu3 %vm1809_vm3, %v2045_v41 }
0x2134   :  { %1967 = vrot.lane.b32.xlu0 %v3132_v22, %s2393_s30 }
0x2193   :  { %v1951_v45 = vpop.xlane.xlu0 %1950 }
0x2194   :  { %2384 = vrcp.f32 %v1951_v45  ;;  %v1963_v51 = vand.u32 2147483648, %v1951_v45  ;;  %v1961_v63 = vand.u32 2147483647, %v1951_v45  ;;  %vm1957_vm2 = vweird.f32 %v1951_v45 }
0x2196   :  { %v1964_v53 = vor.u32 1.1754944e-38, %v1963_v51  ;;  %vm1962_vm5 = vcmp.eq.f32.partialorder %v1961_v63, 8.507059e+37 }
0x219a   :  { %v2385_v48 = vpop.eup %2384 }
0x219b   :  { %v1953_v49 = vmul.f32 %v2385_v48, %v1951_v45  ;;  %vm1958_vm15 = vweird.f32 %v2385_v48 }
0x219c   :  { %vm1959_vm4 = vmor %vm1957_vm2, %vm1958_vm15 }
0x219d   :  { %v1954_v50 = vsub.f32 1.0, %v1953_v49 }
0x219f   :  { %v1955_v52 = vmul.f32 %v2385_v48, %v1954_v50 }
0x21a1   :  { %v1956_v44 = vadd.f32 %v2385_v48, %v1955_v52 }
0x21a3   :  { %v1960_v42 = vsel %vm1959_vm4, %v2385_v48, %v1956_v44 }
0x21a4   :  { %v1965_v11 = vsel %vm1962_vm5, %v1964_v53, %v1960_v42 }
0x21a5   :  { %v1966_v46 = vmul.f32 %v2383_v60, %v1965_v11 }
0x21a6   :  { %v1968_v19 = vpop.permute.xlu0 %1967 }
0x21a7   :  { %2224 = vmatpush.msk.msra.mxu1 %vm810_vm14, %v1968_v19 }
0x21a8   :  { %2225 = vmatmul.msk.f32.vlgmr.msra.gmra.mxu1 %vm1809_vm3, %v1966_v46 }
0x21a9   :  { %2138 = vmatpush.msrb.mxu1 %v2121_v31 }
0x21ab   :  { %v1912_v22 = vpop.f32.mrf.mxu3  ;;  %2139 = vmatpush.msrb.mxu1 %v2120_v1 }
0x21ac   :  { %2074 = vrot.lane.b32.xlu0 %v1912_v22, %s2390_s8 }
0x21ad   :  { %2140 = vmatpush.msrb.mxu1 %v2119_v5 }
0x21af   :  { %2141 = vmatpush.msrb.mxu1 %v2118_v6 }
0x21b1   :  { %2142 = vmatpush.msrb.mxu1 %v2117_v47 }
0x21b3   :  { %v2070_v54 = vpop.f32.mrf.mxu3  ;;  %2143 = vmatpush.msrb.mxu1 %v2116_v15 }
0x21b4   :  { %2082 = vrot.lane.b32.xlu1 %v2070_v54, %s2391_s29 }
0x21b5   :  { %2144 = vmatpush.msrb.mxu1 %v2115_v16 }
0x221e   :  { %v2075_v43 = vpop.permute.xlu0 %2074 }
0x221f   :  { %v2085_v8 = vsel %vm87_vm0, %v3166_v7, %v2075_v43  ;;  %v2114_v7 = vld [vmem:[%s3265_s18] sm:$0xff]  ;;  %vm2150_vm0 = vcmask 1024  }
0x2220   :  { %2145 = vmatpush.msrb.mxu1 %v2114_v7 }
0x2225   :  { %v1991_v3 = vpop.f32.mrf.mxu1 }
0x2226   :  { %2078 = vrot.lane.b32.xlu2 %v1991_v3, %s2387_s24  ;;  %v2083_v12 = vpop.permute.xlu1 %2082 }
0x2280   :  { %v2079_v10 = vpop.permute.xlu2 %2078 }
0x2281   :  { %v2086_v13 = vsel %vm198_vm7, %v2085_v8, %v2079_v10 }
0x2282   :  { %v2087_v14 = vsel %vm1412_vm13, %v2086_v13, %v2083_v12 }
0x2283   :  { %2230 = vmatmul.msk.f32.vlgmr.msra.gmra.mxu0 %vm206_vm8, %v2087_v14 }
0x2300   :  { %v2111_v18 = vpop.f32.mrf.mxu0 }
0x2301   :  { %v2112_v55 = vadd.f32 %v2256_v17, %v2111_v18 }
0x2303   :  { %v2127_v20 = vrot.slane %v2112_v55, 2 }
0x2305   :  { %2231 = vmatmul.msk.f32.vlgmr.msrb.gmra.mxu1 %vm206_vm8, %v2127_v20 }
0x2382   :  { %v2147_v59 = vpop.f32.mrf.mxu1 }
0x2383   :  { %v2148_v23 = vadd.f32 %v2257_v21, %v2147_v59 }
0x2385   :  { %2151 = vst.msk [vmem:[%s3267_s20] sm:$0x3] %vm2150_vm0, %v2148_v23 }

</bundles_post_ra>
